<compile_context>
chip_gen: v7x
topology: tpu7x:2x2x1
jax: 0.10.0
libtpu: 0.0.40
codegen_flags: <defaults>
</compile_context>

<pallas_src>
import jax
import jax.numpy as jnp
from jax import lax
from jax.experimental import pallas as pl
from jax.experimental.pallas import tpu as pltpu


def _shift2d(x, sy, sx):
    """x: (H, W, C) -> y with y[i, j] = x[i+sy, j+sx], zero outside bounds."""
    H, W, C = x.shape
    if sy != 0:
        zr = jnp.zeros((abs(sy), W, C), x.dtype)
        if sy > 0:
            x = jnp.concatenate([x[sy:], zr], axis=0)
        else:
            x = jnp.concatenate([zr, x[:sy]], axis=0)
    if sx != 0:
        zc = jnp.zeros((H, abs(sx), C), x.dtype)
        if sx > 0:
            x = jnp.concatenate([x[:, sx:, :], zc], axis=1)
        else:
            x = jnp.concatenate([zc, x[:, :sx, :]], axis=1)
    return x


def _conv3x3_bn_relu(x3, w_ref, shift_ref):
    """x3: (H, W, Cin); w_ref: (9*Cin, Cout) (BN scale folded in);
    shift_ref: (1, Cout) (conv bias + BN shift folded). Returns (H*W, Cout)."""
    H, W, Cin = x3.shape
    patches = []
    for sy in (-1, 0, 1):                     # tap rows kh = sy + 1
        xr = _shift2d(x3, sy, 0)
        for sx in (-1, 0, 1):                 # tap cols kw = sx + 1
            patches.append(_shift2d(xr, 0, sx).reshape(H * W, Cin))
    a = jnp.concatenate(patches, axis=-1)     # im2col: (H*W, 9*Cin)
    y = jnp.dot(a, w_ref[...], preferred_element_type=jnp.float32)
    y = y + shift_ref[...]                    # conv bias + BN (eval) shift
    return jnp.maximum(y, 0.0)                # ReLU


def _dconv_kernel(x_ref, w1_ref, sh1_ref, w2_ref, sh2_ref, o_ref):
    # x_ref : (1, H, W, Cin)   unpadded NHWC input tile (one batch element)
    # w1_ref: (9*Cin, Cin)     conv1 weights (tap-major, channel-minor, *BN scale)
    # w2_ref: (9*Cin, Cout)    conv2 weights (same layout)
    # sh*   : (1, C)           folded conv-bias + BN shift
    # o_ref : (1, H, W, Cout)
    _, H, W, Cin = x_ref.shape
    Cout = o_ref.shape[-1]

    x3 = x_ref[0]                                            # (H, W, Cin)
    y = _conv3x3_bn_relu(x3, w1_ref, sh1_ref)                # (H*W, Cin)
    z = _conv3x3_bn_relu(y.reshape(H, W, Cin), w2_ref, sh2_ref)  # (H*W, Cout)
    o_ref[...] = z.reshape(1, H, W, Cout).astype(o_ref.dtype)


def d_conv_layer(x_nchw, params, *, eps=1e-5):
    """Pallas implementation of D_ConvLayer.forward (NCHW in, NCHW out)."""
    (w1, b1, g1, be1, m1, v1, w2, b2, g2, be2, m2, v2) = params
    N, Cin, H, W = x_nchw.shape
    Cout = w2.shape[0]

    # NCHW -> NHWC (channels on the 128-lane axis inside the kernel).
    x = jnp.transpose(x_nchw, (0, 2, 3, 1)).astype(jnp.float32)

    # PyTorch OIHW -> (KH, KW, I, O) -> (9*I, O): rows ordered tap-major,
    # channel-minor, matching the in-kernel im2col column order.
    w1_mat = jnp.transpose(w1, (2, 3, 1, 0)).reshape(9 * Cin, Cin)
    w2_mat = jnp.transpose(w2, (2, 3, 1, 0)).reshape(9 * Cin, Cout)

    # Fold BN (eval mode) into the weights / shift:
    #   relu(((A @ W + b) * s + t)) == relu(A @ (W * s) + (b * s + t))
    s1 = g1 / jnp.sqrt(v1 + eps)
    t1 = be1 - m1 * s1
    s2 = g2 / jnp.sqrt(v2 + eps)
    t2 = be2 - m2 * s2
    w1_f = (w1_mat * s1[None, :]).astype(jnp.float32)
    w2_f = (w2_mat * s2[None, :]).astype(jnp.float32)
    sh1 = (b1 * s1 + t1).reshape(1, Cin).astype(jnp.float32)
    sh2 = (b2 * s2 + t2).reshape(1, Cout).astype(jnp.float32)

    out_nhwc = pl.pallas_call(
        _dconv_kernel,
        out_shape=jax.ShapeDtypeStruct((N, H, W, Cout), jnp.float32),
        grid=(N,),
        in_specs=[
            pl.BlockSpec((1, H, W, Cin), lambda n: (n, 0, 0, 0)),
            pl.BlockSpec((9 * Cin, Cin), lambda n: (0, 0)),
            pl.BlockSpec((1, Cin), lambda n: (0, 0)),
            pl.BlockSpec((9 * Cin, Cout), lambda n: (0, 0)),
            pl.BlockSpec((1, Cout), lambda n: (0, 0)),
        ],
        out_specs=pl.BlockSpec((1, H, W, Cout), lambda n: (n, 0, 0, 0)),
        compiler_params=pltpu.CompilerParams(dimension_semantics=("parallel",)),
    )(x, w1_f, sh1, w2_f, sh2)

    return jnp.transpose(out_nhwc, (0, 3, 1, 2))  # back to NCHW


def _ref_forward(x, params, *, eps=1e-5):
    """Pure-JAX (XLA) reference for correctness checking."""
    (w1, b1, g1, be1, m1, v1, w2, b2, g2, be2, m2, v2) = params
    dn = ('NCHW', 'OIHW', 'NCHW')

    def bn(y, g, be, m, v):
        return (y - m[None, :, None, None]) / jnp.sqrt(v[None, :, None, None] + eps) \
               * g[None, :, None, None] + be[None, :, None, None]

    y = lax.conv_general_dilated(x, w1, (1, 1), 'SAME', dimension_numbers=dn)
    y = y + b1[None, :, None, None]
    y = jnp.maximum(bn(y, g1, be1, m1, v1), 0.0)
    z = lax.conv_general_dilated(y, w2, (1, 1), 'SAME', dimension_numbers=dn)
    z = z + b2[None, :, None, None]
    z = jnp.maximum(bn(z, g2, be2, m2, v2), 0.0)
    return z


def _init_params(key, in_ch, out_ch):
    ks = jax.random.split(key, 12)
    w1 = jax.random.normal(ks[0], (in_ch, in_ch, 3, 3), jnp.float32) * 0.2
    b1 = jax.random.normal(ks[1], (in_ch,), jnp.float32) * 0.1
    g1 = jax.random.uniform(ks[2], (in_ch,), jnp.float32, 0.5, 1.5)
    be1 = jax.random.normal(ks[3], (in_ch,), jnp.float32) * 0.1
    m1 = jax.random.normal(ks[4], (in_ch,), jnp.float32) * 0.1
    v1 = jax.random.uniform(ks[5], (in_ch,), jnp.float32, 0.5, 1.5)
    w2 = jax.random.normal(ks[6], (out_ch, in_ch, 3, 3), jnp.float32) * 0.2
    b2 = jax.random.normal(ks[7], (out_ch,), jnp.float32) * 0.1
    g2 = jax.random.uniform(ks[8], (out_ch,), jnp.float32, 0.5, 1.5)
    be2 = jax.random.normal(ks[9], (out_ch,), jnp.float32) * 0.1
    m2 = jax.random.normal(ks[10], (out_ch,), jnp.float32) * 0.1
    v2 = jax.random.uniform(ks[11], (out_ch,), jnp.float32, 0.5, 1.5)
    return (w1, b1, g1, be1, m1, v1, w2, b2, g2, be2, m2, v2)


if __name__ == "__main__":
    N, Cin, Cout, H, W = 2, 4, 8, 16, 16
    key = jax.random.PRNGKey(0)
    kx, kp = jax.random.split(key)
    x = jax.random.normal(kx, (N, Cin, H, W), jnp.float32)
    params = _init_params(kp, Cin, Cout)

    out = d_conv_layer(x, params)
    out = jax.block_until_ready(out)

    ref = jax.block_until_ready(_ref_forward(x, params))
    assert out.shape == (N, Cout, H, W), out.shape
    err = jnp.max(jnp.abs(out - ref))
    assert jnp.allclose(out, ref, atol=1e-3, rtol=1e-3), f"max abs err {err}"
    print("KERNEL_OK")
</pallas_src>

<mosaic_0001>
module attributes {stable_mosaic.version = 11 : i64} {
  func.func @_dconv_kernel(%arg0: i32, %arg1: memref<1x16x16x4xf32, #tpu.memory_space<vmem>>, %arg2: memref<36x4xf32, #tpu.memory_space<vmem>>, %arg3: memref<1x4xf32, #tpu.memory_space<vmem>>, %arg4: memref<36x8xf32, #tpu.memory_space<vmem>>, %arg5: memref<1x8xf32, #tpu.memory_space<vmem>>, %arg6: memref<1x16x16x8xf32, #tpu.memory_space<vmem>>) attributes {dimension_semantics = [#tpu.dimension_semantics<parallel>], iteration_bounds = array<i64: 2>, scalar_prefetch = 0 : i64, scratch_operands = 0 : i64, tpu.core_type = #tpu.core_type<tc>, window_params = [{transform_indices = @transform_0, window_bounds = array<i64: 1, 16, 16, 4>}, {pipeline_mode = #tpu.pipeline_mode<synchronous>, transform_indices = @transform_1, window_bounds = array<i64: 36, 4>}, {pipeline_mode = #tpu.pipeline_mode<synchronous>, transform_indices = @transform_2, window_bounds = array<i64: 1, 4>}, {pipeline_mode = #tpu.pipeline_mode<synchronous>, transform_indices = @transform_3, window_bounds = array<i64: 36, 8>}, {pipeline_mode = #tpu.pipeline_mode<synchronous>, transform_indices = @transform_4, window_bounds = array<i64: 1, 8>}, {transform_indices = @transform_5, window_bounds = array<i64: 1, 16, 16, 8>}]} {
    %c0 = arith.constant 0 : index
    %c0_0 = arith.constant 0 : index
    %c0_1 = arith.constant 0 : index
    %c0_2 = arith.constant 0 : index
    %0 = vector.load %arg1[%c0, %c0_0, %c0_1, %c0_2] : memref<1x16x16x4xf32, #tpu.memory_space<vmem>>, vector<1x16x16x4xf32>
    %1 = vector.shape_cast %0 : vector<1x16x16x4xf32> to vector<16x16x4xf32>
    %cst = arith.constant 0.000000e+00 : f32
    %2 = vector.broadcast %cst : f32 to vector<1x16x4xf32>
    %3 = vector.extract_strided_slice %1 {offsets = [0, 0, 0], sizes = [15, 16, 4], strides = [1, 1, 1]} : vector<16x16x4xf32> to vector<15x16x4xf32>
    %4 = tpu.concatenate %2, %3 in 0 : vector<1x16x4xf32>, vector<15x16x4xf32> -> vector<16x16x4xf32>
    %cst_3 = arith.constant 0.000000e+00 : f32
    %5 = vector.broadcast %cst_3 : f32 to vector<16x1x4xf32>
    %6 = vector.extract_strided_slice %4 {offsets = [0, 0, 0], sizes = [16, 15, 4], strides = [1, 1, 1]} : vector<16x16x4xf32> to vector<16x15x4xf32>
    %7 = tpu.concatenate %5, %6 in 1 : vector<16x1x4xf32>, vector<16x15x4xf32> -> vector<16x16x4xf32>
    %8 = vector.shape_cast %7 : vector<16x16x4xf32> to vector<256x4xf32>
    %9 = vector.shape_cast %4 : vector<16x16x4xf32> to vector<256x4xf32>
    %cst_4 = arith.constant 0.000000e+00 : f32
    %10 = vector.broadcast %cst_4 : f32 to vector<16x1x4xf32>
    %11 = vector.extract_strided_slice %4 {offsets = [0, 1, 0], sizes = [16, 15, 4], strides = [1, 1, 1]} : vector<16x16x4xf32> to vector<16x15x4xf32>
    %12 = tpu.concatenate %11, %10 in 1 : vector<16x15x4xf32>, vector<16x1x4xf32> -> vector<16x16x4xf32>
    %13 = vector.shape_cast %12 : vector<16x16x4xf32> to vector<256x4xf32>
    %cst_5 = arith.constant 0.000000e+00 : f32
    %14 = vector.broadcast %cst_5 : f32 to vector<16x1x4xf32>
    %15 = vector.extract_strided_slice %1 {offsets = [0, 0, 0], sizes = [16, 15, 4], strides = [1, 1, 1]} : vector<16x16x4xf32> to vector<16x15x4xf32>
    %16 = tpu.concatenate %14, %15 in 1 : vector<16x1x4xf32>, vector<16x15x4xf32> -> vector<16x16x4xf32>
    %17 = vector.shape_cast %16 : vector<16x16x4xf32> to vector<256x4xf32>
    %18 = vector.shape_cast %1 : vector<16x16x4xf32> to vector<256x4xf32>
    %cst_6 = arith.constant 0.000000e+00 : f32
    %19 = vector.broadcast %cst_6 : f32 to vector<16x1x4xf32>
    %20 = vector.extract_strided_slice %1 {offsets = [0, 1, 0], sizes = [16, 15, 4], strides = [1, 1, 1]} : vector<16x16x4xf32> to vector<16x15x4xf32>
    %21 = tpu.concatenate %20, %19 in 1 : vector<16x15x4xf32>, vector<16x1x4xf32> -> vector<16x16x4xf32>
    %22 = vector.shape_cast %21 : vector<16x16x4xf32> to vector<256x4xf32>
    %cst_7 = arith.constant 0.000000e+00 : f32
    %23 = vector.broadcast %cst_7 : f32 to vector<1x16x4xf32>
    %24 = vector.extract_strided_slice %1 {offsets = [1, 0, 0], sizes = [15, 16, 4], strides = [1, 1, 1]} : vector<16x16x4xf32> to vector<15x16x4xf32>
    %25 = tpu.concatenate %24, %23 in 0 : vector<15x16x4xf32>, vector<1x16x4xf32> -> vector<16x16x4xf32>
    %cst_8 = arith.constant 0.000000e+00 : f32
    %26 = vector.broadcast %cst_8 : f32 to vector<16x1x4xf32>
    %27 = vector.extract_strided_slice %25 {offsets = [0, 0, 0], sizes = [16, 15, 4], strides = [1, 1, 1]} : vector<16x16x4xf32> to vector<16x15x4xf32>
    %28 = tpu.concatenate %26, %27 in 1 : vector<16x1x4xf32>, vector<16x15x4xf32> -> vector<16x16x4xf32>
    %29 = vector.shape_cast %28 : vector<16x16x4xf32> to vector<256x4xf32>
    %30 = vector.shape_cast %25 : vector<16x16x4xf32> to vector<256x4xf32>
    %cst_9 = arith.constant 0.000000e+00 : f32
    %31 = vector.broadcast %cst_9 : f32 to vector<16x1x4xf32>
    %32 = vector.extract_strided_slice %25 {offsets = [0, 1, 0], sizes = [16, 15, 4], strides = [1, 1, 1]} : vector<16x16x4xf32> to vector<16x15x4xf32>
    %33 = tpu.concatenate %32, %31 in 1 : vector<16x15x4xf32>, vector<16x1x4xf32> -> vector<16x16x4xf32>
    %34 = vector.shape_cast %33 : vector<16x16x4xf32> to vector<256x4xf32>
    %35 = tpu.concatenate %8, %9, %13, %17, %18, %22, %29, %30, %34 in 1 : vector<256x4xf32>, vector<256x4xf32>, vector<256x4xf32>, vector<256x4xf32>, vector<256x4xf32>, vector<256x4xf32>, vector<256x4xf32>, vector<256x4xf32>, vector<256x4xf32> -> vector<256x36xf32>
    %c0_10 = arith.constant 0 : index
    %c0_11 = arith.constant 0 : index
    %36 = vector.load %arg2[%c0_10, %c0_11] : memref<36x4xf32, #tpu.memory_space<vmem>>, vector<36x4xf32>
    %cst_12 = arith.constant dense<0.000000e+00> : vector<256x4xf32>
    %37 = tpu.matmul %35, %36, %cst_12 {dimension_numbers = #tpu.dot_dimension_numbers<[1], [0], [0], [1], [0, 0, 1, 1], [], []>} : vector<256x36xf32>, vector<36x4xf32>, vector<256x4xf32> -> vector<256x4xf32>
    %c0_13 = arith.constant 0 : index
    %c0_14 = arith.constant 0 : index
    %38 = vector.load %arg3[%c0_13, %c0_14] : memref<1x4xf32, #tpu.memory_space<vmem>>, vector<1x4xf32>
    %39 = vector.broadcast %38 : vector<1x4xf32> to vector<256x4xf32>
    %40 = arith.addf %37, %39 : vector<256x4xf32>
    %cst_15 = arith.constant 0.000000e+00 : f32
    %41 = vector.broadcast %cst_15 : f32 to vector<256x4xf32>
    %42 = arith.maximumf %40, %41 : vector<256x4xf32>
    %43 = vector.shape_cast %42 : vector<256x4xf32> to vector<16x16x4xf32>
    %cst_16 = arith.constant 0.000000e+00 : f32
    %44 = vector.broadcast %cst_16 : f32 to vector<1x16x4xf32>
    %45 = vector.extract_strided_slice %43 {offsets = [0, 0, 0], sizes = [15, 16, 4], strides = [1, 1, 1]} : vector<16x16x4xf32> to vector<15x16x4xf32>
    %46 = tpu.concatenate %44, %45 in 0 : vector<1x16x4xf32>, vector<15x16x4xf32> -> vector<16x16x4xf32>
    %cst_17 = arith.constant 0.000000e+00 : f32
    %47 = vector.broadcast %cst_17 : f32 to vector<16x1x4xf32>
    %48 = vector.extract_strided_slice %46 {offsets = [0, 0, 0], sizes = [16, 15, 4], strides = [1, 1, 1]} : vector<16x16x4xf32> to vector<16x15x4xf32>
    %49 = tpu.concatenate %47, %48 in 1 : vector<16x1x4xf32>, vector<16x15x4xf32> -> vector<16x16x4xf32>
    %50 = vector.shape_cast %49 : vector<16x16x4xf32> to vector<256x4xf32>
    %51 = vector.shape_cast %46 : vector<16x16x4xf32> to vector<256x4xf32>
    %cst_18 = arith.constant 0.000000e+00 : f32
    %52 = vector.broadcast %cst_18 : f32 to vector<16x1x4xf32>
    %53 = vector.extract_strided_slice %46 {offsets = [0, 1, 0], sizes = [16, 15, 4], strides = [1, 1, 1]} : vector<16x16x4xf32> to vector<16x15x4xf32>
    %54 = tpu.concatenate %53, %52 in 1 : vector<16x15x4xf32>, vector<16x1x4xf32> -> vector<16x16x4xf32>
    %55 = vector.shape_cast %54 : vector<16x16x4xf32> to vector<256x4xf32>
    %cst_19 = arith.constant 0.000000e+00 : f32
    %56 = vector.broadcast %cst_19 : f32 to vector<16x1x4xf32>
    %57 = vector.extract_strided_slice %43 {offsets = [0, 0, 0], sizes = [16, 15, 4], strides = [1, 1, 1]} : vector<16x16x4xf32> to vector<16x15x4xf32>
    %58 = tpu.concatenate %56, %57 in 1 : vector<16x1x4xf32>, vector<16x15x4xf32> -> vector<16x16x4xf32>
    %59 = vector.shape_cast %58 : vector<16x16x4xf32> to vector<256x4xf32>
    %60 = vector.shape_cast %43 : vector<16x16x4xf32> to vector<256x4xf32>
    %cst_20 = arith.constant 0.000000e+00 : f32
    %61 = vector.broadcast %cst_20 : f32 to vector<16x1x4xf32>
    %62 = vector.extract_strided_slice %43 {offsets = [0, 1, 0], sizes = [16, 15, 4], strides = [1, 1, 1]} : vector<16x16x4xf32> to vector<16x15x4xf32>
    %63 = tpu.concatenate %62, %61 in 1 : vector<16x15x4xf32>, vector<16x1x4xf32> -> vector<16x16x4xf32>
    %64 = vector.shape_cast %63 : vector<16x16x4xf32> to vector<256x4xf32>
    %cst_21 = arith.constant 0.000000e+00 : f32
    %65 = vector.broadcast %cst_21 : f32 to vector<1x16x4xf32>
    %66 = vector.extract_strided_slice %43 {offsets = [1, 0, 0], sizes = [15, 16, 4], strides = [1, 1, 1]} : vector<16x16x4xf32> to vector<15x16x4xf32>
    %67 = tpu.concatenate %66, %65 in 0 : vector<15x16x4xf32>, vector<1x16x4xf32> -> vector<16x16x4xf32>
    %cst_22 = arith.constant 0.000000e+00 : f32
    %68 = vector.broadcast %cst_22 : f32 to vector<16x1x4xf32>
    %69 = vector.extract_strided_slice %67 {offsets = [0, 0, 0], sizes = [16, 15, 4], strides = [1, 1, 1]} : vector<16x16x4xf32> to vector<16x15x4xf32>
    %70 = tpu.concatenate %68, %69 in 1 : vector<16x1x4xf32>, vector<16x15x4xf32> -> vector<16x16x4xf32>
    %71 = vector.shape_cast %70 : vector<16x16x4xf32> to vector<256x4xf32>
    %72 = vector.shape_cast %67 : vector<16x16x4xf32> to vector<256x4xf32>
    %cst_23 = arith.constant 0.000000e+00 : f32
    %73 = vector.broadcast %cst_23 : f32 to vector<16x1x4xf32>
    %74 = vector.extract_strided_slice %67 {offsets = [0, 1, 0], sizes = [16, 15, 4], strides = [1, 1, 1]} : vector<16x16x4xf32> to vector<16x15x4xf32>
    %75 = tpu.concatenate %74, %73 in 1 : vector<16x15x4xf32>, vector<16x1x4xf32> -> vector<16x16x4xf32>
    %76 = vector.shape_cast %75 : vector<16x16x4xf32> to vector<256x4xf32>
    %77 = tpu.concatenate %50, %51, %55, %59, %60, %64, %71, %72, %76 in 1 : vector<256x4xf32>, vector<256x4xf32>, vector<256x4xf32>, vector<256x4xf32>, vector<256x4xf32>, vector<256x4xf32>, vector<256x4xf32>, vector<256x4xf32>, vector<256x4xf32> -> vector<256x36xf32>
    %c0_24 = arith.constant 0 : index
    %c0_25 = arith.constant 0 : index
    %78 = vector.load %arg4[%c0_24, %c0_25] : memref<36x8xf32, #tpu.memory_space<vmem>>, vector<36x8xf32>
    %cst_26 = arith.constant dense<0.000000e+00> : vector<256x8xf32>
    %79 = tpu.matmul %77, %78, %cst_26 {dimension_numbers = #tpu.dot_dimension_numbers<[1], [0], [0], [1], [0, 0, 1, 1], [], []>} : vector<256x36xf32>, vector<36x8xf32>, vector<256x8xf32> -> vector<256x8xf32>
    %c0_27 = arith.constant 0 : index
    %c0_28 = arith.constant 0 : index
    %80 = vector.load %arg5[%c0_27, %c0_28] : memref<1x8xf32, #tpu.memory_space<vmem>>, vector<1x8xf32>
    %81 = vector.broadcast %80 : vector<1x8xf32> to vector<256x8xf32>
    %82 = arith.addf %79, %81 : vector<256x8xf32>
    %cst_29 = arith.constant 0.000000e+00 : f32
    %83 = vector.broadcast %cst_29 : f32 to vector<256x8xf32>
    %84 = arith.maximumf %82, %83 : vector<256x8xf32>
    %85 = vector.shape_cast %84 : vector<256x8xf32> to vector<1x16x16x8xf32>
    %c0_30 = arith.constant 0 : index
    %c0_31 = arith.constant 0 : index
    %c0_32 = arith.constant 0 : index
    %c0_33 = arith.constant 0 : index
    %86 = vector.load %arg6[%c0_30, %c0_31, %c0_32, %c0_33] : memref<1x16x16x8xf32, #tpu.memory_space<vmem>>, vector<1x16x16x8xf32>
    tpu.vector_store %arg6[%c0_30, %c0_31, %c0_32, %c0_33], %85 {strides = array<i32>} : memref<1x16x16x8xf32, #tpu.memory_space<vmem>>, vector<1x16x16x8xf32>,
    return
  }
  func.func @transform_0(%arg0: i32) -> (i32, i32, i32, i32) {
    %c0_i32 = arith.constant 0 : i32
    %c0_i32_0 = arith.constant 0 : i32
    %c0_i32_1 = arith.constant 0 : i32
    %c0_i32_2 = arith.constant 0 : i32
    return %arg0, %c0_i32, %c0_i32_0, %c0_i32_1 : i32, i32, i32, i32
  }
  func.func @transform_1(%arg0: i32) -> (i32, i32) {
    %c0_i32 = arith.constant 0 : i32
    %c0_i32_0 = arith.constant 0 : i32
    %c0_i32_1 = arith.constant 0 : i32
    return %c0_i32, %c0_i32_0 : i32, i32
  }
  func.func @transform_2(%arg0: i32) -> (i32, i32) {
    %c0_i32 = arith.constant 0 : i32
    %c0_i32_0 = arith.constant 0 : i32
    %c0_i32_1 = arith.constant 0 : i32
    return %c0_i32, %c0_i32_0 : i32, i32
  }
  func.func @transform_3(%arg0: i32) -> (i32, i32) {
    %c0_i32 = arith.constant 0 : i32
    %c0_i32_0 = arith.constant 0 : i32
    %c0_i32_1 = arith.constant 0 : i32
    return %c0_i32, %c0_i32_0 : i32, i32
  }
  func.func @transform_4(%arg0: i32) -> (i32, i32) {
    %c0_i32 = arith.constant 0 : i32
    %c0_i32_0 = arith.constant 0 : i32
    %c0_i32_1 = arith.constant 0 : i32
    return %c0_i32, %c0_i32_0 : i32, i32
  }
  func.func @transform_5(%arg0: i32) -> (i32, i32, i32, i32) {
    %c0_i32 = arith.constant 0 : i32
    %c0_i32_0 = arith.constant 0 : i32
    %c0_i32_1 = arith.constant 0 : i32
    %c0_i32_2 = arith.constant 0 : i32
    return %arg0, %c0_i32, %c0_i32_0, %c0_i32_1 : i32, i32, i32, i32
  }
}

</mosaic_0001>

<bundles_post_ra>
// kernel: tpu_custom_call.1
= control target key start
LH: loop header
LB: loop body
LE: loop exit
PB: predicated region body
PF: predicated region fallthrough
CT: control target
= control target key end

     0   :  { %s3975_s18 = smov 0   ;;  %s7304_s0 = inlined_call_operand.vmem [shape: f32[2,16,16,4], index: 0, kind: input, shape index: {}]   ;;  %s7305_s1 = inlined_call_operand.vmem [shape: f32[36,4], index: 1, kind: input, shape index: {}]   ;;  %s7306_s2 = inlined_call_operand.vmem [shape: f32[1,4], index: 2, kind: input, shape index: {}]   ;;  %s7307_s3 = inlined_call_operand.vmem [shape: f32[36,8], index: 3, kind: input, shape index: {}]   ;;  %s7308_s4 = inlined_call_operand.vmem [shape: f32[1,8], index: 4, kind: input, shape index: {}]   ;;  %s7309_s5 = inlined_call_operand.vmem [shape: f32[2,16,16,8], index: 5, kind: output, shape index: {}]  }
   0x1 LB: > { %s3590_s19 = sadd.s32 4294967295, %s3934_s18   ;;  %p3594_p0 = scmp.ge.s32.totalorder %s3934_s18, 1  ;;  %s3934_s18 = sphi %s3975_s18, %s15_s18  }
   0x2   : > { %p187_p1 = scmp.lt.s32.totalorder %s3934_s18, 3 }
   0x4   : > { %p188_p2 = pnand %p3594_p0, %p187_p1 }
   0x6   : > { %191 = sbr.rel (%p188_p2) target bundleno = 1614 (0x64e), region = 40 }
   0xd   : > { %p215_p3 = scmp.lt.s32.totalorder %s3590_s19, 1  ;;  %vm384_vm0 = vcmask 1046528   ;;  %v7310_v0 = vmov 0.0   ;;  %s3937_s20 = smov 4   ;;  %vm288_vm1 = vcmask 1040384   ;;  %vm1645_vm2 = vcmask 1043456  }
   0xe   : > { %476 = vrot.lane.b32.xlu0 %v7310_v0, %s3937_s20  ;;  %v385_v1 = vrot.slane %v7310_v0, 1  ;;  %s3938_s25 = smov 8   ;;  %s3939_s26 = smov 12   ;;  %vm1272_vm3 = vcmask 31744   ;;  %vm1338_vm4 = vcmask 97280   ;;  %vm1305_vm5 = vcmask 64512  }
   0xf   : > { %s8021_s19 = smov (!%p215_p3, %s3590_s19), 1  ;;  %s3940_s27 = smov 16   ;;  %vm1371_vm6 = vcmask 130048   ;;  %vm1404_vm7 = vcmask 162816   ;;  %vm1437_vm8 = vcmask 195584   ;;  %vm1470_vm9 = vcmask 228352  }
  0x10   : > { %v448_v2 = vsel %vm384_vm0, %v385_v1, 0.0  ;;  %s3669_s21 = sshll.u32 %s8021_s19, 8  ;;  %s3941_s28 = smov 20   ;;  %vm1503_vm10 = vcmask 261120   ;;  %vm1548_vm11 = vcmask 293888  }
  0x11   : > { %v3990_v3 = vpack.i.bf16 %v448_v2, %v385_v1  ;;  %s3997_s24 = scalar_lea.vmem %s7304_s0, %s3669_s21  ;;  %s3942_s29 = smov 24  }
  0x12   : > { %v4000_v4 = vld [vmem:[%s3997_s24 + $0x8] sm:$0xff]  ;;  %v4003_v5 = vld [vmem:[%s3997_s24] sm:$0xff]  ;;  %v4010_v6 = vld [vmem:[%s3997_s24 + $0x10] sm:$0xff]  ;;  %s3943_s15 = smov 28   ;;  %s3944_s16 = smov 32  }
  0x13   : > { %7457 = vst [vmem:[#allocation2_spill] sm:$0xff] %v3990_v3  ;;  %480 = vrot.lane.b32.xlu1 %v4000_v4, %s3937_s20  ;;  %478 = vrot.lane.b32.xlu0 %v4003_v5, %s3937_s20  ;;  %v4013_v7 = vld [vmem:[%s3997_s24 + $0x18] sm:$0xff]  ;;  %v4020_v8 = vld [vmem:[%s3997_s24 + $0x20] sm:$0xff]  ;;  %v387_v34 = vrot.slane %v4003_v5, 1  ;;  %v388_v35 = vrot.slane %v4000_v4, 1  ;;  %v390_v37 = vrot.slane %v4010_v6, 1  ;;  %s7071_s11 = scalar_lea.vmem %s7309_s5, %s3669_s21 }
  0x14   : > { %v4023_v9 = vld [vmem:[%s3997_s24 + $0x28] sm:$0xff]  ;;  %v4030_v10 = vld [vmem:[%s3997_s24 + $0x30] sm:$0xff]  ;;  %v4033_v11 = vld [vmem:[%s3997_s24 + $0x38] sm:$0xff]  ;;  %v391_v38 = vrot.slane %v4013_v7, 1  ;;  %v393_v41 = vrot.slane %v4020_v8, 1 }
  0x15   : > { %v4040_v12 = vld [vmem:[%s3997_s24 + $0x40] sm:$0xff]  ;;  %v4043_v13 = vld [vmem:[%s3997_s24 + $0x48] sm:$0xff]  ;;  %v4050_v14 = vld [vmem:[%s3997_s24 + $0x50] sm:$0xff]  ;;  %v4152_v36 = vsel %vm384_vm0, %v387_v34, %v388_v35  ;;  %v4161_v39 = vsel %vm384_vm0, %v388_v35, 0.0  ;;  %v394_v42 = vrot.slane %v4023_v9, 1  ;;  %v396_v45 = vrot.slane %v4030_v10, 1 }
  0x16   : > { %v4053_v15 = vld [vmem:[%s3997_s24 + $0x58] sm:$0xff]  ;;  %v4060_v16 = vld [vmem:[%s3997_s24 + $0x60] sm:$0xff]  ;;  %v4063_v17 = vld [vmem:[%s3997_s24 + $0x68] sm:$0xff]  ;;  %v4164_v40 = vsel %vm384_vm0, %v390_v37, %v391_v38  ;;  %v4173_v43 = vsel %vm384_vm0, %v391_v38, 0.0  ;;  %v397_v46 = vrot.slane %v4033_v11, 1  ;;  %v399_v49 = vrot.slane %v4040_v12, 1 }
  0x17   : > { %482 = vrot.lane.b32.xlu1 %v4010_v6, %s3937_s20  ;;  %484 = vrot.lane.b32.xlu0 %v4013_v7, %s3937_s20  ;;  %v4070_v18 = vld [vmem:[%s3997_s24 + $0x70] sm:$0xff]  ;;  %v4073_v19 = vld [vmem:[%s3997_s24 + $0x78] sm:$0xff]  ;;  %v4176_v44 = vsel %vm384_vm0, %v393_v41, %v394_v42  ;;  %v4185_v47 = vsel %vm384_vm0, %v394_v42, 0.0  ;;  %v400_v50 = vrot.slane %v4043_v13, 1  ;;  %v402_v53 = vrot.slane %v4050_v14, 1 }
  0x18   : > { %v4080_v20 = vld [vmem:[%s3997_s24 + $0x80] sm:$0xff]  ;;  %v4083_v21 = vld [vmem:[%s3997_s24 + $0x88] sm:$0xff]  ;;  %v4090_v22 = vld [vmem:[%s3997_s24 + $0x90] sm:$0xff]  ;;  %v4188_v48 = vsel %vm384_vm0, %v396_v45, %v397_v46  ;;  %v4197_v51 = vsel %vm384_vm0, %v397_v46, 0.0  ;;  %v403_v54 = vrot.slane %v4053_v15, 1  ;;  %v405_v57 = vrot.slane %v4060_v16, 1 }
  0x19   : > { %v4093_v23 = vld [vmem:[%s3997_s24 + $0x98] sm:$0xff]  ;;  %v4100_v24 = vld [vmem:[%s3997_s24 + $0xa0] sm:$0xff]  ;;  %v4103_v25 = vld [vmem:[%s3997_s24 + $0xa8] sm:$0xff]  ;;  %v4200_v52 = vsel %vm384_vm0, %v399_v49, %v400_v50  ;;  %v4209_v55 = vsel %vm384_vm0, %v400_v50, 0.0  ;;  %v406_v58 = vrot.slane %v4063_v17, 1  ;;  %v408_v61 = vrot.slane %v4070_v18, 1 }
  0x1a   : > { %v4110_v26 = vld [vmem:[%s3997_s24 + $0xb0] sm:$0xff]  ;;  %v4113_v27 = vld [vmem:[%s3997_s24 + $0xb8] sm:$0xff]  ;;  %v4120_v28 = vld [vmem:[%s3997_s24 + $0xc0] sm:$0xff]  ;;  %v4212_v56 = vsel %vm384_vm0, %v402_v53, %v403_v54  ;;  %v4221_v59 = vsel %vm384_vm0, %v403_v54, 0.0  ;;  %v409_v62 = vrot.slane %v4073_v19, 1  ;;  %v411_v2 = vrot.slane %v4080_v20, 1 }
  0x1b   : > { %486 = vrot.lane.b32.xlu1 %v4020_v8, %s3937_s20  ;;  %488 = vrot.lane.b32.xlu0 %v4023_v9, %s3937_s20  ;;  %v4123_v29 = vld [vmem:[%s3997_s24 + $0xc8] sm:$0xff]  ;;  %v4130_v30 = vld [vmem:[%s3997_s24 + $0xd0] sm:$0xff]  ;;  %v4224_v60 = vsel %vm384_vm0, %v405_v57, %v406_v58  ;;  %v4233_v63 = vsel %vm384_vm0, %v406_v58, 0.0  ;;  %v412_v34 = vrot.slane %v4083_v21, 1  ;;  %v414_v38 = vrot.slane %v4090_v22, 1 }
  0x1c   : > { %v4133_v31 = vld [vmem:[%s3997_s24 + $0xd8] sm:$0xff]  ;;  %v4140_v32 = vld [vmem:[%s3997_s24 + $0xe0] sm:$0xff]  ;;  %v4143_v33 = vld [vmem:[%s3997_s24 + $0xe8] sm:$0xff]  ;;  %v4236_v1 = vsel %vm384_vm0, %v408_v61, %v409_v62  ;;  %v4245_v35 = vsel %vm384_vm0, %v409_v62, 0.0  ;;  %v415_v41 = vrot.slane %v4093_v23, 1  ;;  %v417_v46 = vrot.slane %v4100_v24, 1 }
  0x1d   : > { %v4248_v37 = vsel %vm384_vm0, %v411_v2, %v412_v34  ;;  %v4257_v42 = vsel %vm384_vm0, %v412_v34, 0.0  ;;  %v418_v49 = vrot.slane %v4103_v25, 1  ;;  %v420_v54 = vrot.slane %v4110_v26, 1 }
  0x1e   : > { %v4260_v45 = vsel %vm384_vm0, %v414_v38, %v415_v41  ;;  %v4269_v50 = vsel %vm384_vm0, %v415_v41, 0.0  ;;  %v421_v57 = vrot.slane %v4113_v27, 1  ;;  %v423_v62 = vrot.slane %v4120_v28, 1 }
  0x1f   : > { %490 = vrot.lane.b32.xlu1 %v4030_v10, %s3937_s20  ;;  %492 = vrot.lane.b32.xlu0 %v4033_v11, %s3937_s20  ;;  %v4272_v53 = vsel %vm384_vm0, %v417_v46, %v418_v49  ;;  %v4281_v58 = vsel %vm384_vm0, %v418_v49, 0.0  ;;  %v424_v2 = vrot.slane %v4123_v29, 1  ;;  %v426_v41 = vrot.slane %v4130_v30, 1 }
  0x20   : > { %7458 = vst [vmem:[#allocation3_spill] sm:$0xff] %v4281_v58  ;;  %v4284_v61 = vsel %vm384_vm0, %v420_v54, %v421_v57  ;;  %v4293_v34 = vsel %vm384_vm0, %v421_v57, 0.0  ;;  %v427_v46 = vrot.slane %v4133_v31, 1  ;;  %v430_v0 = vrot.slane %v4143_v33, 1 }
  0x21   : > { %7459 = vst [vmem:[#allocation4_spill] sm:$0xff] %v4284_v61  ;;  %7460 = vst [vmem:[#allocation5_spill] sm:$0xff] %v4293_v34  ;;  %v4296_v38 = vsel %vm384_vm0, %v423_v62, %v424_v2  ;;  %v4307_v54 = vsel %vm384_vm0, %v424_v2, 0.0  ;;  %v429_v62 = vrot.slane %v4140_v32, 1 }
  0x22   : > { %7461 = vst [vmem:[#allocation6_spill] sm:$0xff] %v4296_v38  ;;  %7463 = vst [vmem:[#allocation8_spill] sm:$0xff] %v4307_v54  ;;  %v4310_v57 = vsel %vm384_vm0, %v426_v41, %v427_v46 }
  0x23   : > { %494 = vrot.lane.b32.xlu1 %v4040_v12, %s3937_s20  ;;  %496 = vrot.lane.b32.xlu0 %v4043_v13, %s3937_s20  ;;  %7464 = vst [vmem:[#allocation9_spill] sm:$0xff] %v4310_v57 }
  0x27   : > { %498 = vrot.lane.b32.xlu1 %v4050_v14, %s3937_s20  ;;  %500 = vrot.lane.b32.xlu0 %v4053_v15, %s3937_s20 }
  0x2b   : > { %502 = vrot.lane.b32.xlu1 %v4060_v16, %s3937_s20  ;;  %504 = vrot.lane.b32.xlu0 %v4063_v17, %s3937_s20 }
  0x2f   : > { %506 = vrot.lane.b32.xlu1 %v4070_v18, %s3937_s20  ;;  %508 = vrot.lane.b32.xlu0 %v4073_v19, %s3937_s20 }
  0x33   : > { %510 = vrot.lane.b32.xlu1 %v4080_v20, %s3937_s20  ;;  %512 = vrot.lane.b32.xlu0 %v4083_v21, %s3937_s20 }
  0x37   : > { %514 = vrot.lane.b32.xlu1 %v4090_v22, %s3937_s20  ;;  %516 = vrot.lane.b32.xlu0 %v4093_v23, %s3937_s20 }
  0x3b   : > { %518 = vrot.lane.b32.xlu1 %v4100_v24, %s3937_s20  ;;  %520 = vrot.lane.b32.xlu0 %v4103_v25, %s3937_s20 }
  0x3f   : > { %522 = vrot.lane.b32.xlu1 %v4110_v26, %s3937_s20  ;;  %524 = vrot.lane.b32.xlu0 %v4113_v27, %s3937_s20 }
  0x43   : > { %526 = vrot.lane.b32.xlu1 %v4120_v28, %s3937_s20  ;;  %528 = vrot.lane.b32.xlu0 %v4123_v29, %s3937_s20 }
  0x47   : > { %530 = vrot.lane.b32.xlu1 %v4130_v30, %s3937_s20  ;;  %532 = vrot.lane.b32.xlu0 %v4133_v31, %s3937_s20 }
  0x4b   : > { %534 = vrot.lane.b32.xlu1 %v4140_v32, %s3937_s20  ;;  %536 = vrot.lane.b32.xlu0 %v4143_v33, %s3937_s20 }
  0x4f   : > { %3895 = vrot.lane.b32.xlu1 %v3990_v3, %s3938_s25  ;;  %589 = vrot.lane.b32.xlu0 %v4152_v36, %s3938_s25  ;;  %v4319_v3 = vsel %vm384_vm0, %v427_v46, 0.0 }
  0x50   : > { %7465 = vst [vmem:[#allocation10_spill] sm:$0xff] %v4319_v3 }
  0x53   : > { %591 = vrot.lane.b32.xlu1 %v4161_v39, %s3938_s25  ;;  %593 = vrot.lane.b32.xlu0 %v4164_v40, %s3938_s25 }
  0x57   : > { %595 = vrot.lane.b32.xlu1 %v4173_v43, %s3938_s25  ;;  %597 = vrot.lane.b32.xlu0 %v4176_v44, %s3938_s25 }
  0x5b   : > { %599 = vrot.lane.b32.xlu1 %v4185_v47, %s3938_s25  ;;  %601 = vrot.lane.b32.xlu0 %v4188_v48, %s3938_s25 }
  0x5f   : > { %603 = vrot.lane.b32.xlu1 %v4197_v51, %s3938_s25  ;;  %605 = vrot.lane.b32.xlu0 %v4200_v52, %s3938_s25 }
  0x63   : > { %607 = vrot.lane.b32.xlu1 %v4209_v55, %s3938_s25  ;;  %609 = vrot.lane.b32.xlu0 %v4212_v56, %s3938_s25 }
  0x67   : > { %611 = vrot.lane.b32.xlu1 %v4221_v59, %s3938_s25  ;;  %613 = vrot.lane.b32.xlu0 %v4224_v60, %s3938_s25 }
  0x6b   : > { %615 = vrot.lane.b32.xlu1 %v4233_v63, %s3938_s25  ;;  %617 = vrot.lane.b32.xlu0 %v4236_v1, %s3938_s25 }
  0x6f   : > { %619 = vrot.lane.b32.xlu1 %v4245_v35, %s3938_s25  ;;  %621 = vrot.lane.b32.xlu0 %v4248_v37, %s3938_s25 }
  0x73   : > { %623 = vrot.lane.b32.xlu1 %v4257_v42, %s3938_s25  ;;  %625 = vrot.lane.b32.xlu0 %v4260_v45, %s3938_s25 }
  0x77   : > { %627 = vrot.lane.b32.xlu1 %v4269_v50, %s3938_s25  ;;  %629 = vrot.lane.b32.xlu0 %v4272_v53, %s3938_s25 }
  0x7b   : > { %631 = vrot.lane.b32.xlu1 %v4281_v58, %s3938_s25  ;;  %633 = vrot.lane.b32.xlu0 %v4284_v61, %s3938_s25  ;;  %v333_v58 = vrot.slane %v4140_v32, 7  ;;  %v334_v61 = vrot.slane %v4143_v33, 7 }
  0x7f   : > { %635 = vrot.lane.b32.xlu1 %v4293_v34, %s3938_s25  ;;  %637 = vrot.lane.b32.xlu0 %v4296_v38, %s3938_s25  ;;  %v295_v34 = vrot.slane %v4013_v7, 7  ;;  %v297_v38 = vrot.slane %v4020_v8, 7 }
  0x80   : > { %v4304_v49 = vpop.permute.xlu0 %476 }
  0x81   : > { %7462 = vst [vmem:[#allocation7_spill] sm:$0xff] %v4304_v49  ;;  %v4322_v49 = vsel %vm384_vm0, %v429_v62, %v430_v0 }
  0x82   : > { %7466 = vst [vmem:[#allocation11_spill] sm:$0xff] %v4322_v49 }
  0x83   : > { %639 = vrot.lane.b32.xlu1 %v4307_v54, %s3938_s25  ;;  %641 = vrot.lane.b32.xlu0 %v4310_v57, %s3938_s25  ;;  %v291_v54 = vrot.slane %v4003_v5, 7  ;;  %v4334_v57 = vsel %vm384_vm0, %v430_v0, 0.0 }
  0x84   : > { %7469 = vst [vmem:[#allocation14_spill] sm:$0xff] %v4334_v57 }
  0x85   : > { %v4324_v2 = vpop.permute.xlu1 %480  ;;  %v4326_v41 = vpop.permute.xlu0 %478 }
  0x86   : > { %7467 = vst [vmem:[#allocation12_spill] sm:$0xff] %v4324_v2  ;;  %7468 = vst [vmem:[#allocation13_spill] sm:$0xff] %v4326_v41  ;;  %v292_v2 = vrot.slane %v4000_v4, 7  ;;  %v4342_v41 = vsel %vm288_vm1, 0.0, %v291_v54 }
  0x87   : > { %643 = vrot.lane.b32.xlu1 %v4319_v3, %s3938_s25  ;;  %645 = vrot.lane.b32.xlu0 %v4322_v49, %s3938_s25  ;;  %7472 = vst [vmem:[#allocation17_spill] sm:$0xff] %v4342_v41  ;;  %v294_v3 = vrot.slane %v4010_v6, 7 }
  0x89   : > { %v4336_v46 = vpop.permute.xlu1 %482  ;;  %v4338_v62 = vpop.permute.xlu0 %484 }
  0x8a   : > { %7470 = vst [vmem:[#allocation15_spill] sm:$0xff] %v4336_v46  ;;  %7471 = vst [vmem:[#allocation16_spill] sm:$0xff] %v4338_v62  ;;  %v4354_v62 = vsel %vm288_vm1, %v291_v54, %v292_v2  ;;  %v4357_v46 = vsel %vm288_vm1, 0.0, %v294_v3  ;;  %v4370_v54 = vsel %vm288_vm1, %v294_v3, %v295_v34  ;;  %v4373_v2 = vsel %vm288_vm1, 0.0, %v297_v38 }
  0x8b   : > { %647 = vrot.lane.b32.xlu1 %v4334_v57, %s3938_s25  ;;  %697 = vrot.lane.b32.xlu0 %v4342_v41, %s3939_s26  ;;  %7475 = vst [vmem:[#allocation20_spill] sm:$0xff] %v4354_v62  ;;  %7476 = vst [vmem:[#allocation21_spill] sm:$0xff] %v4357_v46  ;;  %v300_v57 = vrot.slane %v4030_v10, 7 }
  0x8c   : > { %7479 = vst [vmem:[#allocation24_spill] sm:$0xff] %v4370_v54  ;;  %7480 = vst [vmem:[#allocation25_spill] sm:$0xff] %v4373_v2 }
  0x8d   : > { %v4349_v0 = vpop.permute.xlu1 %486  ;;  %v4351_v49 = vpop.permute.xlu0 %488  ;;  %v4389_v34 = vsel %vm288_vm1, 0.0, %v300_v57 }
  0x8e   : > { %7473 = vst [vmem:[#allocation18_spill] sm:$0xff] %v4349_v0  ;;  %7474 = vst [vmem:[#allocation19_spill] sm:$0xff] %v4351_v49  ;;  %v298_v49 = vrot.slane %v4023_v9, 7 }
  0x8f   : > { %701 = vrot.lane.b32.xlu0 %v4357_v46, %s3939_s26  ;;  %699 = vrot.lane.b32.xlu1 %v4354_v62, %s3939_s26  ;;  %7484 = vst [vmem:[#allocation29_spill] sm:$0xff] %v4389_v34  ;;  %v303_v46 = vrot.slane %v4040_v12, 7 }
  0x90   : > { %v4386_v3 = vsel %vm288_vm1, %v297_v38, %v298_v49 }
  0x91   : > { %v4365_v41 = vpop.permute.xlu1 %490  ;;  %v4367_v0 = vpop.permute.xlu0 %492  ;;  %7483 = vst [vmem:[#allocation28_spill] sm:$0xff] %v4386_v3  ;;  %v4405_v49 = vsel %vm288_vm1, 0.0, %v303_v46 }
  0x92   : > { %7477 = vst [vmem:[#allocation22_spill] sm:$0xff] %v4365_v41  ;;  %7478 = vst [vmem:[#allocation23_spill] sm:$0xff] %v4367_v0  ;;  %v301_v0 = vrot.slane %v4033_v11, 7 }
  0x93   : > { %705 = vrot.lane.b32.xlu0 %v4373_v2, %s3939_s26  ;;  %703 = vrot.lane.b32.xlu1 %v4370_v54, %s3939_s26  ;;  %7488 = vst [vmem:[#allocation33_spill] sm:$0xff] %v4405_v49  ;;  %v306_v2 = vrot.slane %v4050_v14, 7 }
  0x94   : > { %v4402_v38 = vsel %vm288_vm1, %v300_v57, %v301_v0 }
  0x95   : > { %v4381_v62 = vpop.permute.xlu1 %494  ;;  %v4383_v41 = vpop.permute.xlu0 %496  ;;  %7487 = vst [vmem:[#allocation32_spill] sm:$0xff] %v4402_v38  ;;  %v4421_v0 = vsel %vm288_vm1, 0.0, %v306_v2 }
  0x96   : > { %7481 = vst [vmem:[#allocation26_spill] sm:$0xff] %v4381_v62  ;;  %7482 = vst [vmem:[#allocation27_spill] sm:$0xff] %v4383_v41  ;;  %v304_v41 = vrot.slane %v4043_v13, 7 }
  0x97   : > { %709 = vrot.lane.b32.xlu0 %v4389_v34, %s3939_s26  ;;  %707 = vrot.lane.b32.xlu1 %v4386_v3, %s3939_s26  ;;  %7492 = vst [vmem:[#allocation37_spill] sm:$0xff] %v4421_v0  ;;  %v309_v34 = vrot.slane %v4060_v16, 7 }
  0x98   : > { %v4418_v57 = vsel %vm288_vm1, %v303_v46, %v304_v41 }
  0x99   : > { %v4397_v54 = vpop.permute.xlu1 %498  ;;  %v4399_v62 = vpop.permute.xlu0 %500  ;;  %7491 = vst [vmem:[#allocation36_spill] sm:$0xff] %v4418_v57  ;;  %v4437_v46 = vsel %vm288_vm1, 0.0, %v309_v34 }
  0x9a   : > { %7485 = vst [vmem:[#allocation30_spill] sm:$0xff] %v4397_v54  ;;  %7486 = vst [vmem:[#allocation31_spill] sm:$0xff] %v4399_v62  ;;  %v307_v62 = vrot.slane %v4053_v15, 7 }
  0x9b   : > { %713 = vrot.lane.b32.xlu0 %v4405_v49, %s3939_s26  ;;  %711 = vrot.lane.b32.xlu1 %v4402_v38, %s3939_s26  ;;  %7496 = vst [vmem:[#allocation41_spill] sm:$0xff] %v4437_v46  ;;  %v312_v49 = vrot.slane %v4070_v18, 7 }
  0x9c   : > { %v4434_v41 = vsel %vm288_vm1, %v306_v2, %v307_v62 }
  0x9d   : > { %v4413_v3 = vpop.permute.xlu1 %502  ;;  %v4415_v54 = vpop.permute.xlu0 %504  ;;  %7495 = vst [vmem:[#allocation40_spill] sm:$0xff] %v4434_v41  ;;  %v4453_v2 = vsel %vm288_vm1, 0.0, %v312_v49 }
  0x9e   : > { %7489 = vst [vmem:[#allocation34_spill] sm:$0xff] %v4413_v3  ;;  %7490 = vst [vmem:[#allocation35_spill] sm:$0xff] %v4415_v54  ;;  %v310_v54 = vrot.slane %v4063_v17, 7 }
  0x9f   : > { %717 = vrot.lane.b32.xlu0 %v4421_v0, %s3939_s26  ;;  %715 = vrot.lane.b32.xlu1 %v4418_v57, %s3939_s26  ;;  %7500 = vst [vmem:[#allocation45_spill] sm:$0xff] %v4453_v2  ;;  %v315_v0 = vrot.slane %v4080_v20, 7 }
  0xa0   : > { %v4450_v62 = vsel %vm288_vm1, %v309_v34, %v310_v54 }
  0xa1   : > { %v4429_v38 = vpop.permute.xlu1 %506  ;;  %v4431_v3 = vpop.permute.xlu0 %508  ;;  %7499 = vst [vmem:[#allocation44_spill] sm:$0xff] %v4450_v62  ;;  %v4469_v34 = vsel %vm288_vm1, 0.0, %v315_v0 }
  0xa2   : > { %7493 = vst [vmem:[#allocation38_spill] sm:$0xff] %v4429_v38  ;;  %7494 = vst [vmem:[#allocation39_spill] sm:$0xff] %v4431_v3  ;;  %v313_v3 = vrot.slane %v4073_v19, 7 }
  0xa3   : > { %721 = vrot.lane.b32.xlu0 %v4437_v46, %s3939_s26  ;;  %719 = vrot.lane.b32.xlu1 %v4434_v41, %s3939_s26  ;;  %7504 = vst [vmem:[#allocation49_spill] sm:$0xff] %v4469_v34  ;;  %v318_v46 = vrot.slane %v4090_v22, 7 }
  0xa4   : > { %v4466_v54 = vsel %vm288_vm1, %v312_v49, %v313_v3 }
  0xa5   : > { %v4445_v57 = vpop.permute.xlu1 %510  ;;  %v4447_v38 = vpop.permute.xlu0 %512  ;;  %7503 = vst [vmem:[#allocation48_spill] sm:$0xff] %v4466_v54  ;;  %v4485_v49 = vsel %vm288_vm1, 0.0, %v318_v46 }
  0xa6   : > { %7497 = vst [vmem:[#allocation42_spill] sm:$0xff] %v4445_v57  ;;  %7498 = vst [vmem:[#allocation43_spill] sm:$0xff] %v4447_v38  ;;  %v316_v38 = vrot.slane %v4083_v21, 7 }
  0xa7   : > { %725 = vrot.lane.b32.xlu0 %v4453_v2, %s3939_s26  ;;  %723 = vrot.lane.b32.xlu1 %v4450_v62, %s3939_s26  ;;  %7508 = vst [vmem:[#allocation53_spill] sm:$0xff] %v4485_v49  ;;  %v321_v2 = vrot.slane %v4100_v24, 7 }
  0xa8   : > { %v4482_v3 = vsel %vm288_vm1, %v315_v0, %v316_v38 }
  0xa9   : > { %v4461_v41 = vpop.permute.xlu1 %514  ;;  %v4463_v57 = vpop.permute.xlu0 %516  ;;  %7507 = vst [vmem:[#allocation52_spill] sm:$0xff] %v4482_v3  ;;  %v4501_v0 = vsel %vm288_vm1, 0.0, %v321_v2 }
  0xaa   : > { %7501 = vst [vmem:[#allocation46_spill] sm:$0xff] %v4461_v41  ;;  %7502 = vst [vmem:[#allocation47_spill] sm:$0xff] %v4463_v57  ;;  %v319_v57 = vrot.slane %v4093_v23, 7 }
  0xab   : > { %729 = vrot.lane.b32.xlu0 %v4469_v34, %s3939_s26  ;;  %727 = vrot.lane.b32.xlu1 %v4466_v54, %s3939_s26  ;;  %7512 = vst [vmem:[#allocation57_spill] sm:$0xff] %v4501_v0  ;;  %v324_v34 = vrot.slane %v4110_v26, 7 }
  0xac   : > { %v4498_v38 = vsel %vm288_vm1, %v318_v46, %v319_v57 }
  0xad   : > { %v4477_v62 = vpop.permute.xlu1 %518  ;;  %v4479_v41 = vpop.permute.xlu0 %520  ;;  %7511 = vst [vmem:[#allocation56_spill] sm:$0xff] %v4498_v38  ;;  %v4517_v46 = vsel %vm288_vm1, 0.0, %v324_v34 }
  0xae   : > { %7505 = vst [vmem:[#allocation50_spill] sm:$0xff] %v4477_v62  ;;  %7506 = vst [vmem:[#allocation51_spill] sm:$0xff] %v4479_v41  ;;  %v322_v41 = vrot.slane %v4103_v25, 7 }
  0xaf   : > { %733 = vrot.lane.b32.xlu0 %v4485_v49, %s3939_s26  ;;  %731 = vrot.lane.b32.xlu1 %v4482_v3, %s3939_s26  ;;  %7516 = vst [vmem:[#allocation61_spill] sm:$0xff] %v4517_v46  ;;  %v327_v49 = vrot.slane %v4120_v28, 7 }
  0xb0   : > { %v4514_v57 = vsel %vm288_vm1, %v321_v2, %v322_v41 }
  0xb1   : > { %v4493_v54 = vpop.permute.xlu1 %522  ;;  %v4495_v62 = vpop.permute.xlu0 %524  ;;  %7515 = vst [vmem:[#allocation60_spill] sm:$0xff] %v4514_v57  ;;  %v4533_v2 = vsel %vm288_vm1, 0.0, %v327_v49 }
  0xb2   : > { %7509 = vst [vmem:[#allocation54_spill] sm:$0xff] %v4493_v54  ;;  %7510 = vst [vmem:[#allocation55_spill] sm:$0xff] %v4495_v62  ;;  %v325_v62 = vrot.slane %v4113_v27, 7 }
  0xb3   : > { %737 = vrot.lane.b32.xlu0 %v4501_v0, %s3939_s26  ;;  %735 = vrot.lane.b32.xlu1 %v4498_v38, %s3939_s26  ;;  %7520 = vst [vmem:[#allocation65_spill] sm:$0xff] %v4533_v2  ;;  %v328_v38 = vrot.slane %v4123_v29, 7  ;;  %v330_v0 = vrot.slane %v4130_v30, 7 }
  0xb4   : > { %v4530_v41 = vsel %vm288_vm1, %v324_v34, %v325_v62  ;;  %v4546_v62 = vld [vmem:[%s3997_s24 + $0xf0] sm:$0xff] }
  0xb5   : > { %v4509_v3 = vpop.permute.xlu1 %526  ;;  %v4511_v54 = vpop.permute.xlu0 %528  ;;  %7519 = vst [vmem:[#allocation64_spill] sm:$0xff] %v4530_v41  ;;  %v4549_v34 = vsel %vm288_vm1, %v327_v49, %v328_v38  ;;  %v4566_v49 = vld [vmem:[%s3997_s24 + $0xf8] sm:$0xff] }
  0xb6   : > { %7513 = vst [vmem:[#allocation58_spill] sm:$0xff] %v4509_v3  ;;  %7514 = vst [vmem:[#allocation59_spill] sm:$0xff] %v4511_v54 }
  0xb7   : > { %741 = vrot.lane.b32.xlu0 %v4517_v46, %s3939_s26  ;;  %739 = vrot.lane.b32.xlu1 %v4514_v57, %s3939_s26  ;;  %7523 = vst [vmem:[#allocation68_spill] sm:$0xff] %v4549_v34  ;;  %v4552_v57 = vsel %vm288_vm1, 0.0, %v330_v0  ;;  %v331_v46 = vrot.slane %v4133_v31, 7 }
  0xb8   : > { %7524 = vst [vmem:[#allocation69_spill] sm:$0xff] %v4552_v57 }
  0xb9   : > { %v4525_v3 = vpop.permute.xlu1 %530  ;;  %v4527_v54 = vpop.permute.xlu0 %532  ;;  %v4569_v38 = vsel %vm288_vm1, %v330_v0, %v331_v46  ;;  %v4588_v46 = vsel %vm288_vm1, %v333_v58, %v334_v61 }
  0xba   : > { %7517 = vst [vmem:[#allocation62_spill] sm:$0xff] %v4525_v3  ;;  %7518 = vst [vmem:[#allocation63_spill] sm:$0xff] %v4527_v54 }
  0xbb   : > { %745 = vrot.lane.b32.xlu0 %v4533_v2, %s3939_s26  ;;  %743 = vrot.lane.b32.xlu1 %v4530_v41, %s3939_s26  ;;  %7527 = vst [vmem:[#allocation72_spill] sm:$0xff] %v4569_v38  ;;  %v4572_v2 = vsel %vm288_vm1, 0.0, %v333_v58  ;;  %7530 = vst [vmem:[#allocation75_spill] sm:$0xff] %v4588_v46 }
  0xbc   : > { %7528 = vst [vmem:[#allocation73_spill] sm:$0xff] %v4572_v2 }
  0xbd   : > { %v4541_v3 = vpop.permute.xlu1 %534  ;;  %v4543_v54 = vpop.permute.xlu0 %536 }
  0xbe   : > { %7521 = vst [vmem:[#allocation66_spill] sm:$0xff] %v4541_v3  ;;  %7522 = vst [vmem:[#allocation67_spill] sm:$0xff] %v4543_v54  ;;  %v466_v54 = vrot.slane %v4546_v62, 7 }
  0xbf   : > { %749 = vrot.lane.b32.xlu0 %v4552_v57, %s3939_s26  ;;  %747 = vrot.lane.b32.xlu1 %v4549_v34, %s3939_s26 }
  0xc1   : > { %v4561_v3 = vpop.permute.xlu1 %3895  ;;  %v4563_v41 = vpop.permute.xlu0 %589 }
  0xc2   : > { %7525 = vst [vmem:[#allocation70_spill] sm:$0xff] %v4561_v3  ;;  %7526 = vst [vmem:[#allocation71_spill] sm:$0xff] %v4563_v41  ;;  %v4580_v3 = vsel %vm288_vm1, 0.0, %v466_v54  ;;  %v467_v41 = vrot.slane %v4566_v49, 7 }
  0xc3   : > { %753 = vrot.lane.b32.xlu0 %v4572_v2, %s3939_s26  ;;  %751 = vrot.lane.b32.xlu1 %v4569_v38, %s3939_s26 }
  0xc4   : > { %v4595_v38 = vsel %vm288_vm1, %v466_v54, %v467_v41 }
  0xc5   : > { %v4583_v34 = vpop.permute.xlu1 %591  ;;  %v4585_v0 = vpop.permute.xlu0 %593 }
  0xc6   : > { %7529 = vst [vmem:[#allocation74_spill] sm:$0xff] %v4585_v0 }
  0xc7   : > { %757 = vrot.lane.b32.xlu0 %v4580_v3, %s3939_s26  ;;  %755 = vrot.lane.b32.xlu1 %v4588_v46, %s3939_s26 }
  0xc9   : > { %v4597_v2 = vpop.permute.xlu1 %595  ;;  %v4599_v57 = vpop.permute.xlu0 %597 }
  0xca   : > { %7531 = vst [vmem:[#allocation76_spill] sm:$0xff] %v4597_v2  ;;  %7532 = vst [vmem:[#allocation77_spill] sm:$0xff] %v4599_v57 }
  0xcb   : > { %793 = vrot.lane.b32.xlu0 %v4003_v5, %s3940_s27  ;;  %759 = vrot.lane.b32.xlu1 %v4595_v38, %s3939_s26 }
  0xcd   : > { %v4605_v58 = vpop.permute.xlu1 %599  ;;  %v4607_v61 = vpop.permute.xlu0 %601 }
  0xce   : > { %7533 = vst [vmem:[#allocation78_spill] sm:$0xff] %v4605_v58  ;;  %7534 = vst [vmem:[#allocation79_spill] sm:$0xff] %v4607_v61 }
  0xcf   : > { %797 = vrot.lane.b32.xlu0 %v4010_v6, %s3940_s27  ;;  %795 = vrot.lane.b32.xlu1 %v4000_v4, %s3940_s27 }
  0xd1   : > { %v4613_v54 = vpop.permute.xlu1 %603  ;;  %v4615_v41 = vpop.permute.xlu0 %605 }
  0xd2   : > { %7535 = vst [vmem:[#allocation80_spill] sm:$0xff] %v4613_v54  ;;  %7536 = vst [vmem:[#allocation81_spill] sm:$0xff] %v4615_v41 }
  0xd3   : > { %801 = vrot.lane.b32.xlu0 %v4020_v8, %s3940_s27  ;;  %799 = vrot.lane.b32.xlu1 %v4013_v7, %s3940_s27 }
  0xd5   : > { %v4621_v5 = vpop.permute.xlu1 %607  ;;  %v4623_v58 = vpop.permute.xlu0 %609 }
  0xd6   : > { %7537 = vst [vmem:[#allocation82_spill] sm:$0xff] %v4621_v5  ;;  %7538 = vst [vmem:[#allocation83_spill] sm:$0xff] %v4623_v58 }
  0xd7   : > { %805 = vrot.lane.b32.xlu0 %v4030_v10, %s3940_s27  ;;  %803 = vrot.lane.b32.xlu1 %v4023_v9, %s3940_s27 }
  0xd9   : > { %v4629_v4 = vpop.permute.xlu1 %611  ;;  %v4631_v54 = vpop.permute.xlu0 %613 }
  0xda   : > { %7539 = vst [vmem:[#allocation84_spill] sm:$0xff] %v4629_v4  ;;  %7540 = vst [vmem:[#allocation85_spill] sm:$0xff] %v4631_v54 }
  0xdb   : > { %809 = vrot.lane.b32.xlu0 %v4040_v12, %s3940_s27  ;;  %807 = vrot.lane.b32.xlu1 %v4033_v11, %s3940_s27 }
  0xdd   : > { %v4637_v41 = vpop.permute.xlu1 %615  ;;  %v4639_v5 = vpop.permute.xlu0 %617 }
  0xde   : > { %7541 = vst [vmem:[#allocation86_spill] sm:$0xff] %v4637_v41  ;;  %7542 = vst [vmem:[#allocation87_spill] sm:$0xff] %v4639_v5  ;;  %v7591_v5 = vld [vmem:[#allocation8_spill] sm:$0xff] }
  0xdf   : > { %813 = vrot.lane.b32.xlu0 %v4050_v14, %s3940_s27  ;;  %811 = vrot.lane.b32.xlu1 %v4043_v13, %s3940_s27 }
  0xe1   : > { %v4645_v58 = vpop.permute.xlu1 %619  ;;  %v4647_v4 = vpop.permute.xlu0 %621 }
  0xe2   : > { %7543 = vst [vmem:[#allocation88_spill] sm:$0xff] %v4645_v58  ;;  %7544 = vst [vmem:[#allocation89_spill] sm:$0xff] %v4647_v4 }
  0xe3   : > { %817 = vrot.lane.b32.xlu0 %v4060_v16, %s3940_s27  ;;  %815 = vrot.lane.b32.xlu1 %v4053_v15, %s3940_s27 }
  0xe5   : > { %v4653_v54 = vpop.permute.xlu1 %623  ;;  %v4655_v41 = vpop.permute.xlu0 %625 }
  0xe6   : > { %7545 = vst [vmem:[#allocation90_spill] sm:$0xff] %v4653_v54  ;;  %7546 = vst [vmem:[#allocation91_spill] sm:$0xff] %v4655_v41 }
  0xe7   : > { %821 = vrot.lane.b32.xlu0 %v4070_v18, %s3940_s27  ;;  %819 = vrot.lane.b32.xlu1 %v4063_v17, %s3940_s27 }
  0xe9   : > { %v4661_v14 = vpop.permute.xlu1 %627  ;;  %v4663_v58 = vpop.permute.xlu0 %629 }
  0xea   : > { %7547 = vst [vmem:[#allocation92_spill] sm:$0xff] %v4661_v14  ;;  %7548 = vst [vmem:[#allocation93_spill] sm:$0xff] %v4663_v58 }
  0xeb   : > { %825 = vrot.lane.b32.xlu0 %v4080_v20, %s3940_s27  ;;  %823 = vrot.lane.b32.xlu1 %v4073_v19, %s3940_s27 }
  0xed   : > { %v4669_v16 = vpop.permute.xlu1 %631  ;;  %v4671_v54 = vpop.permute.xlu0 %633 }
  0xee   : > { %7549 = vst [vmem:[#allocation94_spill] sm:$0xff] %v4669_v16  ;;  %7550 = vst [vmem:[#allocation95_spill] sm:$0xff] %v4671_v54 }
  0xef   : > { %829 = vrot.lane.b32.xlu0 %v4090_v22, %s3940_s27  ;;  %827 = vrot.lane.b32.xlu1 %v4083_v21, %s3940_s27 }
  0xf1   : > { %v4677_v17 = vpop.permute.xlu1 %635  ;;  %v4679_v18 = vpop.permute.xlu0 %637 }
  0xf2   : > { %7551 = vst [vmem:[#allocation96_spill] sm:$0xff] %v4677_v17  ;;  %7552 = vst [vmem:[#allocation97_spill] sm:$0xff] %v4679_v18 }
  0xf3   : > { %833 = vrot.lane.b32.xlu0 %v4100_v24, %s3940_s27  ;;  %831 = vrot.lane.b32.xlu1 %v4093_v23, %s3940_s27 }
  0xf5   : > { %v4685_v19 = vpop.permute.xlu1 %639  ;;  %v4687_v20 = vpop.permute.xlu0 %641 }
  0xf6   : > { %7553 = vst [vmem:[#allocation98_spill] sm:$0xff] %v4685_v19  ;;  %7554 = vst [vmem:[#allocation99_spill] sm:$0xff] %v4687_v20 }
  0xf7   : > { %837 = vrot.lane.b32.xlu0 %v4110_v26, %s3940_s27  ;;  %835 = vrot.lane.b32.xlu1 %v4103_v25, %s3940_s27 }
  0xf9   : > { %v4693_v21 = vpop.permute.xlu1 %643  ;;  %v4695_v22 = vpop.permute.xlu0 %645 }
  0xfa   : > { %7555 = vst [vmem:[#allocation100_spill] sm:$0xff] %v4693_v21  ;;  %7556 = vst [vmem:[#allocation101_spill] sm:$0xff] %v4695_v22 }
  0xfb   : > { %841 = vrot.lane.b32.xlu0 %v4120_v28, %s3940_s27  ;;  %839 = vrot.lane.b32.xlu1 %v4113_v27, %s3940_s27 }
  0xfd   : > { %v4701_v23 = vpop.permute.xlu1 %647  ;;  %v4703_v24 = vpop.permute.xlu0 %697 }
  0xfe   : > { %7557 = vst [vmem:[#allocation102_spill] sm:$0xff] %v4701_v23 }
  0xff   : > { %845 = vrot.lane.b32.xlu0 %v4130_v30, %s3940_s27  ;;  %843 = vrot.lane.b32.xlu1 %v4123_v29, %s3940_s27 }
 0x101   : > { %v4709_v25 = vpop.permute.xlu0 %701  ;;  %v4711_v26 = vpop.permute.xlu1 %699 }
 0x103   : > { %849 = vrot.lane.b32.xlu0 %v4140_v32, %s3940_s27  ;;  %847 = vrot.lane.b32.xlu1 %v4133_v31, %s3940_s27 }
 0x105   : > { %v4717_v27 = vpop.permute.xlu0 %705  ;;  %v4719_v28 = vpop.permute.xlu1 %703 }
 0x106   : > { %7558 = vst [vmem:[#allocation103_spill] sm:$0xff] %v4717_v27  ;;  %v7606_v27 = vld [vmem:[#allocation28_spill] sm:$0xff] }
 0x107   : > { %853 = vrot.lane.b32.xlu0 %v4546_v62, %s3940_s27  ;;  %851 = vrot.lane.b32.xlu1 %v4143_v33, %s3940_s27 }
 0x109   : > { %v4725_v29 = vpop.permute.xlu0 %709  ;;  %v4727_v30 = vpop.permute.xlu1 %707 }
 0x10a   : > { %7559 = vst [vmem:[#allocation104_spill] sm:$0xff] %v4725_v29  ;;  %7560 = vst [vmem:[#allocation105_spill] sm:$0xff] %v4727_v30  ;;  %v7605_v30 = vld [vmem:[#allocation29_spill] sm:$0xff] }
 0x10b   : > { %890 = vrot.lane.b32.xlu0 %v4152_v36, %s3941_s28  ;;  %855 = vrot.lane.b32.xlu1 %v4566_v49, %s3940_s27 }
 0x10d   : > { %v4733_v31 = vpop.permute.xlu0 %713  ;;  %v4735_v32 = vpop.permute.xlu1 %711 }
 0x10e   : > { %7561 = vst [vmem:[#allocation106_spill] sm:$0xff] %v4733_v31  ;;  %7562 = vst [vmem:[#allocation107_spill] sm:$0xff] %v4735_v32 }
 0x10f   : > { %894 = vrot.lane.b32.xlu0 %v4164_v40, %s3941_s28  ;;  %892 = vrot.lane.b32.xlu1 %v4161_v39, %s3941_s28 }
 0x111   : > { %v4741_v33 = vpop.permute.xlu0 %717  ;;  %v4743_v23 = vpop.permute.xlu1 %715 }
 0x112   : > { %7563 = vst [vmem:[#allocation108_spill] sm:$0xff] %v4741_v33  ;;  %7564 = vst [vmem:[#allocation109_spill] sm:$0xff] %v4743_v23  ;;  %v7595_v23 = vld [vmem:[#allocation14_spill] sm:$0xff] }
 0x113   : > { %898 = vrot.lane.b32.xlu0 %v4176_v44, %s3941_s28  ;;  %896 = vrot.lane.b32.xlu1 %v4173_v43, %s3941_s28 }
 0x115   : > { %v4749_v36 = vpop.permute.xlu0 %721  ;;  %v4751_v22 = vpop.permute.xlu1 %719 }
 0x116   : > { %7565 = vst [vmem:[#allocation110_spill] sm:$0xff] %v4749_v36  ;;  %7566 = vst [vmem:[#allocation111_spill] sm:$0xff] %v4751_v22  ;;  %v7593_v36 = vld [vmem:[#allocation10_spill] sm:$0xff] }
 0x117   : > { %902 = vrot.lane.b32.xlu0 %v4188_v48, %s3941_s28  ;;  %900 = vrot.lane.b32.xlu1 %v4185_v47, %s3941_s28 }
 0x119   : > { %v4757_v39 = vpop.permute.xlu0 %725  ;;  %v4759_v21 = vpop.permute.xlu1 %723 }
 0x11a   : > { %7567 = vst [vmem:[#allocation112_spill] sm:$0xff] %v4757_v39  ;;  %7568 = vst [vmem:[#allocation113_spill] sm:$0xff] %v4759_v21  ;;  %v7592_v21 = vld [vmem:[#allocation11_spill] sm:$0xff] }
 0x11b   : > { %906 = vrot.lane.b32.xlu0 %v4200_v52, %s3941_s28  ;;  %904 = vrot.lane.b32.xlu1 %v4197_v51, %s3941_s28 }
 0x11d   : > { %v4765_v20 = vpop.permute.xlu0 %729  ;;  %v4767_v19 = vpop.permute.xlu1 %727 }
 0x11e   : > { %7569 = vst [vmem:[#allocation114_spill] sm:$0xff] %v4765_v20  ;;  %7570 = vst [vmem:[#allocation115_spill] sm:$0xff] %v4767_v19 }
 0x11f   : > { %910 = vrot.lane.b32.xlu0 %v4212_v56, %s3941_s28  ;;  %908 = vrot.lane.b32.xlu1 %v4209_v55, %s3941_s28 }
 0x121   : > { %v4773_v18 = vpop.permute.xlu0 %733  ;;  %v4775_v17 = vpop.permute.xlu1 %731 }
 0x122   : > { %7571 = vst [vmem:[#allocation116_spill] sm:$0xff] %v4773_v18  ;;  %7572 = vst [vmem:[#allocation117_spill] sm:$0xff] %v4775_v17  ;;  %v7584_v18 = vld [vmem:[#allocation3_spill] sm:$0xff]  ;;  %v7588_v17 = vld [vmem:[#allocation5_spill] sm:$0xff] }
 0x123   : > { %914 = vrot.lane.b32.xlu0 %v4224_v60, %s3941_s28  ;;  %912 = vrot.lane.b32.xlu1 %v4221_v59, %s3941_s28 }
 0x125   : > { %v4781_v54 = vpop.permute.xlu0 %737  ;;  %v4783_v16 = vpop.permute.xlu1 %735 }
 0x126   : > { %7573 = vst [vmem:[#allocation118_spill] sm:$0xff] %v4781_v54  ;;  %7574 = vst [vmem:[#allocation119_spill] sm:$0xff] %v4783_v16 }
 0x127   : > { %918 = vrot.lane.b32.xlu0 %v4236_v1, %s3941_s28  ;;  %916 = vrot.lane.b32.xlu1 %v4233_v63, %s3941_s28 }
 0x129   : > { %v4789_v58 = vpop.permute.xlu0 %741  ;;  %v4791_v14 = vpop.permute.xlu1 %739 }
 0x12a   : > { %7575 = vst [vmem:[#allocation120_spill] sm:$0xff] %v4789_v58  ;;  %7576 = vst [vmem:[#allocation121_spill] sm:$0xff] %v4791_v14 }
 0x12b   : > { %922 = vrot.lane.b32.xlu0 %v4248_v37, %s3941_s28  ;;  %920 = vrot.lane.b32.xlu1 %v4245_v35, %s3941_s28 }
 0x12d   : > { %v4797_v41 = vpop.permute.xlu0 %745  ;;  %v4799_v54 = vpop.permute.xlu1 %743 }
 0x12e   : > { %7577 = vst [vmem:[#allocation122_spill] sm:$0xff] %v4797_v41  ;;  %7578 = vst [vmem:[#allocation123_spill] sm:$0xff] %v4799_v54  ;;  %v7583_v54 = vld [vmem:[#allocation4_spill] sm:$0xff] }
 0x12f   : > { %926 = vrot.lane.b32.xlu0 %v4260_v45, %s3941_s28  ;;  %924 = vrot.lane.b32.xlu1 %v4257_v42, %s3941_s28 }
 0x131   : > { %v4805_v16 = vpop.permute.xlu0 %749  ;;  %v4807_v58 = vpop.permute.xlu1 %747 }
 0x132   : > { %7579 = vst [vmem:[#allocation124_spill] sm:$0xff] %v4805_v16  ;;  %7580 = vst [vmem:[#allocation125_spill] sm:$0xff] %v4807_v58  ;;  %v7587_v58 = vld [vmem:[#allocation6_spill] sm:$0xff] }
 0x133   : > { %930 = vrot.lane.b32.xlu0 %v4272_v53, %s3941_s28  ;;  %928 = vrot.lane.b32.xlu1 %v4269_v50, %s3941_s28 }
 0x135   : > { %v4813_v14 = vpop.permute.xlu0 %753  ;;  %v4815_v41 = vpop.permute.xlu1 %751 }
 0x136   : > { %7581 = vst [vmem:[#allocation126_spill] sm:$0xff] %v4813_v14  ;;  %7582 = vst [vmem:[#allocation127_spill] sm:$0xff] %v4815_v41  ;;  %v7590_v41 = vld [vmem:[#allocation9_spill] sm:$0xff] }
 0x137   : > { %934 = vrot.lane.b32.xlu0 %v7583_v54, %s3941_s28  ;;  %932 = vrot.lane.b32.xlu1 %v7584_v18, %s3941_s28 }
 0x139   : > { %v4821_v4 = vpop.permute.xlu0 %757  ;;  %v4823_v16 = vpop.permute.xlu1 %755 }
 0x13a   : > { %7585 = vst [vmem:[#allocation4_spill] sm:$0xff] %v4821_v4  ;;  %7586 = vst [vmem:[#allocation3_spill] sm:$0xff] %v4823_v16  ;;  %v471_v4 = vrot.slane %v4546_v62, 1  ;;  %v472_v16 = vrot.slane %v4566_v49, 1 }
 0x13b   : > { %938 = vrot.lane.b32.xlu0 %v7587_v58, %s3941_s28  ;;  %936 = vrot.lane.b32.xlu1 %v7588_v17, %s3941_s28 }
 0x13c   : > { %v4859_v31 = vsel %vm384_vm0, %v472_v16, 0.0 }
 0x13d   : > { %v4829_v20 = vpop.permute.xlu0 %793  ;;  %v4831_v14 = vpop.permute.xlu1 %759 }
 0x13e   : > { %7589 = vst [vmem:[#allocation6_spill] sm:$0xff] %v4831_v14  ;;  %v4848_v14 = vsel %vm384_vm0, %v471_v4, %v472_v16  ;;  %v7598_v4 = vld [vmem:[#allocation21_spill] sm:$0xff]  ;;  %v7602_v16 = vld [vmem:[#allocation24_spill] sm:$0xff] }
 0x13f   : > { %942 = vrot.lane.b32.xlu0 %v7590_v41, %s3941_s28  ;;  %940 = vrot.lane.b32.xlu1 %v7591_v5, %s3941_s28 }
 0x141   : > { %v4839_v19 = vpop.permute.xlu0 %797  ;;  %v4841_v39 = vpop.permute.xlu1 %795 }
 0x143   : > { %946 = vrot.lane.b32.xlu0 %v7592_v21, %s3941_s28  ;;  %944 = vrot.lane.b32.xlu1 %v7593_v36, %s3941_s28 }
 0x145   : > { %v4850_v22 = vpop.permute.xlu0 %801  ;;  %v4852_v33 = vpop.permute.xlu1 %799 }
 0x146   : > { %7594 = vst [vmem:[#allocation5_spill] sm:$0xff] %v4850_v22  ;;  %v7601_v22 = vld [vmem:[#allocation25_spill] sm:$0xff] }
 0x147   : > { %950 = vrot.lane.b32.xlu0 %v4848_v14, %s3941_s28  ;;  %948 = vrot.lane.b32.xlu1 %v7595_v23, %s3941_s28 }
 0x149   : > { %v4861_v61 = vpop.permute.xlu0 %805  ;;  %v4863_v32 = vpop.permute.xlu1 %803 }
 0x14a   : > { %7596 = vst [vmem:[#allocation9_spill] sm:$0xff] %v4861_v61  ;;  %7597 = vst [vmem:[#allocation8_spill] sm:$0xff] %v4863_v32 }
 0x14b   : > { %987 = vrot.lane.b32.xlu0 %v7598_v4, %s3942_s29  ;;  %952 = vrot.lane.b32.xlu1 %v4859_v31, %s3941_s28 }
 0x14d   : > { %v4869_v29 = vpop.permute.xlu0 %809  ;;  %v4871_v57 = vpop.permute.xlu1 %807 }
 0x14e   : > { %7599 = vst [vmem:[#allocation11_spill] sm:$0xff] %v4869_v29  ;;  %7600 = vst [vmem:[#allocation10_spill] sm:$0xff] %v4871_v57  ;;  %v7609_v57 = vld [vmem:[#allocation33_spill] sm:$0xff] }
 0x14f   : > { %991 = vrot.lane.b32.xlu0 %v7601_v22, %s3942_s29  ;;  %989 = vrot.lane.b32.xlu1 %v7602_v16, %s3942_s29  ;;  %v7610_v22 = vld [vmem:[#allocation32_spill] sm:$0xff] }
 0x151   : > { %v4877_v61 = vpop.permute.xlu0 %813  ;;  %v4879_v32 = vpop.permute.xlu1 %811 }
 0x152   : > { %7603 = vst [vmem:[#allocation14_spill] sm:$0xff] %v4877_v61  ;;  %7604 = vst [vmem:[#allocation21_spill] sm:$0xff] %v4879_v32  ;;  %v7613_v32 = vld [vmem:[#allocation37_spill] sm:$0xff] }
 0x153   : > { %995 = vrot.lane.b32.xlu0 %v7605_v30, %s3942_s29  ;;  %993 = vrot.lane.b32.xlu1 %v7606_v27, %s3942_s29  ;;  %v7614_v30 = vld [vmem:[#allocation36_spill] sm:$0xff] }
 0x155   : > { %v4885_v2 = vpop.permute.xlu0 %817  ;;  %v4887_v29 = vpop.permute.xlu1 %815 }
 0x156   : > { %7607 = vst [vmem:[#allocation128_spill] sm:$0xff] %v4885_v2  ;;  %7608 = vst [vmem:[#allocation129_spill] sm:$0xff] %v4887_v29  ;;  %v7617_v29 = vld [vmem:[#allocation41_spill] sm:$0xff] }
 0x157   : > { %999 = vrot.lane.b32.xlu0 %v7609_v57, %s3942_s29  ;;  %997 = vrot.lane.b32.xlu1 %v7610_v22, %s3942_s29  ;;  %v7618_v57 = vld [vmem:[#allocation40_spill] sm:$0xff] }
 0x159   : > { %v4893_v0 = vpop.permute.xlu0 %821  ;;  %v4895_v61 = vpop.permute.xlu1 %819 }
 0x15a   : > { %7611 = vst [vmem:[#allocation130_spill] sm:$0xff] %v4893_v0  ;;  %7612 = vst [vmem:[#allocation131_spill] sm:$0xff] %v4895_v61  ;;  %v7621_v61 = vld [vmem:[#allocation45_spill] sm:$0xff] }
 0x15b   : > { %1003 = vrot.lane.b32.xlu0 %v7613_v32, %s3942_s29  ;;  %1001 = vrot.lane.b32.xlu1 %v7614_v30, %s3942_s29  ;;  %v7622_v32 = vld [vmem:[#allocation44_spill] sm:$0xff] }
 0x15d   : > { %v4901_v27 = vpop.permute.xlu0 %825  ;;  %v4903_v2 = vpop.permute.xlu1 %823 }
 0x15e   : > { %7615 = vst [vmem:[#allocation132_spill] sm:$0xff] %v4901_v27  ;;  %7616 = vst [vmem:[#allocation133_spill] sm:$0xff] %v4903_v2  ;;  %v7625_v2 = vld [vmem:[#allocation49_spill] sm:$0xff] }
 0x15f   : > { %1007 = vrot.lane.b32.xlu0 %v7617_v29, %s3942_s29  ;;  %1005 = vrot.lane.b32.xlu1 %v7618_v57, %s3942_s29  ;;  %v7626_v29 = vld [vmem:[#allocation48_spill] sm:$0xff] }
 0x161   : > { %v4909_v22 = vpop.permute.xlu0 %829  ;;  %v4911_v0 = vpop.permute.xlu1 %827 }
 0x162   : > { %7619 = vst [vmem:[#allocation134_spill] sm:$0xff] %v4909_v22  ;;  %7620 = vst [vmem:[#allocation135_spill] sm:$0xff] %v4911_v0  ;;  %v7629_v0 = vld [vmem:[#allocation53_spill] sm:$0xff] }
 0x163   : > { %1011 = vrot.lane.b32.xlu0 %v7621_v61, %s3942_s29  ;;  %1009 = vrot.lane.b32.xlu1 %v7622_v32, %s3942_s29  ;;  %v7630_v61 = vld [vmem:[#allocation52_spill] sm:$0xff] }
 0x165   : > { %v4917_v30 = vpop.permute.xlu0 %833  ;;  %v4919_v27 = vpop.permute.xlu1 %831 }
 0x166   : > { %7623 = vst [vmem:[#allocation136_spill] sm:$0xff] %v4917_v30  ;;  %7624 = vst [vmem:[#allocation137_spill] sm:$0xff] %v4919_v27  ;;  %v7633_v27 = vld [vmem:[#allocation57_spill] sm:$0xff] }
 0x167   : > { %1015 = vrot.lane.b32.xlu0 %v7625_v2, %s3942_s29  ;;  %1013 = vrot.lane.b32.xlu1 %v7626_v29, %s3942_s29  ;;  %v7634_v2 = vld [vmem:[#allocation56_spill] sm:$0xff] }
 0x169   : > { %v4925_v57 = vpop.permute.xlu0 %837  ;;  %v4927_v22 = vpop.permute.xlu1 %835 }
 0x16a   : > { %7627 = vst [vmem:[#allocation138_spill] sm:$0xff] %v4925_v57  ;;  %7628 = vst [vmem:[#allocation139_spill] sm:$0xff] %v4927_v22  ;;  %v7637_v22 = vld [vmem:[#allocation61_spill] sm:$0xff] }
 0x16b   : > { %1019 = vrot.lane.b32.xlu0 %v7629_v0, %s3942_s29  ;;  %1017 = vrot.lane.b32.xlu1 %v7630_v61, %s3942_s29  ;;  %v7638_v0 = vld [vmem:[#allocation60_spill] sm:$0xff]  ;;  %v1539_v61 = vld [vmem:[%s7305_s1 + $0x18] sm:$0xff] }
 0x16d   : > { %v4933_v32 = vpop.permute.xlu0 %841  ;;  %v4935_v30 = vpop.permute.xlu1 %839 }
 0x16e   : > { %7631 = vst [vmem:[#allocation140_spill] sm:$0xff] %v4933_v32  ;;  %7632 = vst [vmem:[#allocation141_spill] sm:$0xff] %v4935_v30  ;;  %v1536_v32 = vld [vmem:[%s7305_s1] sm:$0xff]  ;;  %v1537_v30 = vld [vmem:[%s7305_s1 + $0x8] sm:$0xff] }
 0x16f   : > { %1023 = vrot.lane.b32.xlu0 %v7633_v27, %s3942_s29  ;;  %1021 = vrot.lane.b32.xlu1 %v7634_v2, %s3942_s29  ;;  %v3861_v27 = vpack.c.bf16 %v1537_v30, %v1536_v32 }
 0x171   : > { %v4941_v29 = vpop.permute.xlu0 %845  ;;  %v4943_v57 = vpop.permute.xlu1 %843  ;;  %3862 = vmatprep.subr.bf16.mxu0 %v3861_v27 }
 0x172   : > { %7635 = vst [vmem:[#allocation142_spill] sm:$0xff] %v4941_v29  ;;  %7636 = vst [vmem:[#allocation143_spill] sm:$0xff] %v4943_v57  ;;  %v7641_v57 = vld [vmem:[#allocation65_spill] sm:$0xff]  ;;  %3864 = vmatpush3.bf16.msra.mxu0 %v3861_v27  ;;  %v7649_v27 = vld [vmem:[#allocation72_spill] sm:$0xff] }
 0x173   : > { %1027 = vrot.lane.b32.xlu0 %v7637_v22, %s3942_s29  ;;  %1025 = vrot.lane.b32.xlu1 %v7638_v0, %s3942_s29  ;;  %v7642_v22 = vld [vmem:[#allocation64_spill] sm:$0xff] }
 0x174   : > { %v1538_v0 = vld [vmem:[%s7305_s1 + $0x10] sm:$0xff] }
 0x175   : > { %v4955_v2 = vpop.permute.xlu0 %849  ;;  %v4957_v29 = vpop.permute.xlu1 %847  ;;  %v3865_v30 = vpack.c.bf16 %v1539_v61, %v1538_v0  ;;  %v1540_v0 = vld [vmem:[%s7305_s1 + $0x20] sm:$0xf]  ;;  %v7648_v61 = vld [vmem:[#allocation73_spill] sm:$0xff] }
 0x176   : > { %7639 = vst [vmem:[#allocation144_spill] sm:$0xff] %v4955_v2  ;;  %7640 = vst [vmem:[#allocation145_spill] sm:$0xff] %v4957_v29  ;;  %v7645_v29 = vld [vmem:[#allocation69_spill] sm:$0xff] }
 0x177   : > { %1031 = vrot.lane.b32.xlu0 %v7641_v57, %s3942_s29  ;;  %1029 = vrot.lane.b32.xlu1 %v7642_v22, %s3942_s29  ;;  %v7646_v57 = vld [vmem:[#allocation68_spill] sm:$0xff] }
 0x178   : > { %3866 = vmatprep.subr.bf16.mxu0 %v3865_v30 }
 0x179   : > { %v4969_v32 = vpop.permute.xlu0 %853  ;;  %v4971_v2 = vpop.permute.xlu1 %851  ;;  %3868 = vmatpush3.bf16.msra.mxu0 %v3865_v30 }
 0x17a   : > { %7643 = vst [vmem:[#allocation146_spill] sm:$0xff] %v4969_v32  ;;  %7644 = vst [vmem:[#allocation147_spill] sm:$0xff] %v4971_v2  ;;  %3753 = vmatprep.subr.msk.mxu0 %vm1645_vm2, %v1540_v0 }
 0x17b   : > { %1035 = vrot.lane.b32.xlu0 %v7645_v29, %s3942_s29  ;;  %1033 = vrot.lane.b32.xlu1 %v7646_v57, %s3942_s29 }
 0x17d   : > { %v4977_v22 = vpop.permute.xlu0 %890  ;;  %v4979_v16 = vpop.permute.xlu1 %855  ;;  %3754 = vmatpush3.msk.msra.mxu0 %vm1645_vm2, %v1540_v0 }
 0x17e   : > { %7647 = vst [vmem:[#allocation148_spill] sm:$0xff] %v4979_v16 }
 0x17f   : > { %1039 = vrot.lane.b32.xlu0 %v7648_v61, %s3942_s29  ;;  %1037 = vrot.lane.b32.xlu1 %v7649_v27, %s3942_s29 }
 0x181   : > { %v4990_v30 = vpop.permute.xlu0 %894  ;;  %v4992_v32 = vpop.permute.xlu1 %892 }
 0x183   : > { %1043 = vrot.lane.b32.xlu0 %v4580_v3, %s3942_s29  ;;  %1041 = vrot.lane.b32.xlu1 %v4588_v46, %s3942_s29 }
 0x185   : > { %v4998_v16 = vpop.permute.xlu0 %898  ;;  %v5000_v2 = vpop.permute.xlu1 %896 }
 0x187   : > { %1085 = vrot.lane.b32.xlu0 %v4013_v7, %s3943_s15  ;;  %1083 = vrot.lane.b32.xlu1 %v4010_v6, %s3943_s15 }
 0x189   : > { %v5006_v0 = vpop.permute.xlu0 %902  ;;  %v5008_v61 = vpop.permute.xlu1 %900 }
 0x18b   : > { %1178 = vrot.lane.b32.xlu0 %v4173_v43, %s3944_s16  ;;  %1176 = vrot.lane.b32.xlu1 %v4164_v40, %s3944_s16 }
 0x18d   : > { %v5014_v3 = vpop.permute.xlu0 %906  ;;  %v5016_v46 = vpop.permute.xlu1 %904 }
 0x18f   : > { %1089 = vrot.lane.b32.xlu0 %v4023_v9, %s3943_s15  ;;  %1087 = vrot.lane.b32.xlu1 %v4020_v8, %s3943_s15 }
 0x191   : > { %v5022_v6 = vpop.permute.xlu0 %910  ;;  %v5024_v7 = vpop.permute.xlu1 %908 }
 0x193   : > { %1182 = vrot.lane.b32.xlu0 %v4185_v47, %s3944_s16  ;;  %1180 = vrot.lane.b32.xlu1 %v4176_v44, %s3944_s16 }
 0x195   : > { %v5030_v40 = vpop.permute.xlu0 %914  ;;  %v5032_v43 = vpop.permute.xlu1 %912 }
 0x197   : > { %1093 = vrot.lane.b32.xlu0 %v4033_v11, %s3943_s15  ;;  %1091 = vrot.lane.b32.xlu1 %v4030_v10, %s3943_s15 }
 0x199   : > { %v5038_v8 = vpop.permute.xlu0 %918  ;;  %v5040_v9 = vpop.permute.xlu1 %916 }
 0x19b   : > { %1186 = vrot.lane.b32.xlu0 %v4197_v51, %s3944_s16  ;;  %1184 = vrot.lane.b32.xlu1 %v4188_v48, %s3944_s16 }
 0x19d   : > { %v5046_v44 = vpop.permute.xlu0 %922  ;;  %v5048_v47 = vpop.permute.xlu1 %920 }
 0x19f   : > { %1097 = vrot.lane.b32.xlu0 %v4043_v13, %s3943_s15  ;;  %1095 = vrot.lane.b32.xlu1 %v4040_v12, %s3943_s15  ;;  %v3909_v12 = vld [vmem:[%s3997_s24 + $0x50] sm:$0xff] }
 0x1a1   : > { %v5054_v10 = vpop.permute.xlu0 %926  ;;  %v5056_v11 = vpop.permute.xlu1 %924 }
 0x1a3   : > { %1190 = vrot.lane.b32.xlu0 %v4209_v55, %s3944_s16  ;;  %1188 = vrot.lane.b32.xlu1 %v4200_v52, %s3944_s16 }
 0x1a5   : > { %v5062_v48 = vpop.permute.xlu0 %930  ;;  %v5064_v51 = vpop.permute.xlu1 %928 }
 0x1a6   : > { %7650 = vst [vmem:[#allocation149_spill] sm:$0xff] %v5062_v48  ;;  %7651 = vst [vmem:[#allocation150_spill] sm:$0xff] %v5064_v51 }
 0x1a7   : > { %1101 = vrot.lane.b32.xlu0 %v4053_v15, %s3943_s15  ;;  %1099 = vrot.lane.b32.xlu1 %v3909_v12, %s3943_s15  ;;  %v3910_v15 = vld [vmem:[%s3997_s24 + $0x68] sm:$0xff]  ;;  %v3911_v12 = vld [vmem:[%s3997_s24 + $0x60] sm:$0xff] }
 0x1a9   : > { %v5070_v13 = vpop.permute.xlu0 %934  ;;  %v5072_v27 = vpop.permute.xlu1 %932 }
 0x1aa   : > { %7652 = vst [vmem:[#allocation151_spill] sm:$0xff] %v5070_v13  ;;  %7653 = vst [vmem:[#allocation152_spill] sm:$0xff] %v5072_v27 }
 0x1ab   : > { %1194 = vrot.lane.b32.xlu0 %v4221_v59, %s3944_s16  ;;  %1192 = vrot.lane.b32.xlu1 %v4212_v56, %s3944_s16 }
 0x1ad   : > { %v5078_v52 = vpop.permute.xlu0 %938  ;;  %v5080_v55 = vpop.permute.xlu1 %936 }
 0x1ae   : > { %7654 = vst [vmem:[#allocation153_spill] sm:$0xff] %v5078_v52  ;;  %7655 = vst [vmem:[#allocation154_spill] sm:$0xff] %v5080_v55 }
 0x1af   : > { %1105 = vrot.lane.b32.xlu0 %v3910_v15, %s3943_s15  ;;  %1103 = vrot.lane.b32.xlu1 %v3911_v12, %s3943_s15  ;;  %v3912_v15 = vld [vmem:[%s3997_s24 + $0x78] sm:$0xff]  ;;  %v3913_v12 = vld [vmem:[%s3997_s24 + $0x70] sm:$0xff] }
 0x1b1   : > { %v5086_v29 = vpop.permute.xlu0 %942  ;;  %v5088_v57 = vpop.permute.xlu1 %940 }
 0x1b2   : > { %7656 = vst [vmem:[#allocation155_spill] sm:$0xff] %v5086_v29  ;;  %7657 = vst [vmem:[#allocation156_spill] sm:$0xff] %v5088_v57 }
 0x1b3   : > { %1198 = vrot.lane.b32.xlu0 %v4233_v63, %s3944_s16  ;;  %1196 = vrot.lane.b32.xlu1 %v4224_v60, %s3944_s16 }
 0x1b5   : > { %v5094_v56 = vpop.permute.xlu0 %946  ;;  %v5096_v59 = vpop.permute.xlu1 %944 }
 0x1b6   : > { %7658 = vst [vmem:[#allocation157_spill] sm:$0xff] %v5094_v56  ;;  %7659 = vst [vmem:[#allocation158_spill] sm:$0xff] %v5096_v59 }
 0x1b7   : > { %1109 = vrot.lane.b32.xlu0 %v3912_v15, %s3943_s15  ;;  %1107 = vrot.lane.b32.xlu1 %v3913_v12, %s3943_s15  ;;  %v3914_v15 = vld [vmem:[%s3997_s24 + $0x88] sm:$0xff]  ;;  %v3915_v12 = vld [vmem:[%s3997_s24 + $0x80] sm:$0xff] }
 0x1b9   : > { %v5102_v29 = vpop.permute.xlu0 %950  ;;  %v5104_v57 = vpop.permute.xlu1 %948 }
 0x1ba   : > { %7660 = vst [vmem:[#allocation159_spill] sm:$0xff] %v5102_v29  ;;  %7661 = vst [vmem:[#allocation160_spill] sm:$0xff] %v5104_v57 }
 0x1bb   : > { %1202 = vrot.lane.b32.xlu0 %v4245_v35, %s3944_s16  ;;  %1200 = vrot.lane.b32.xlu1 %v4236_v1, %s3944_s16 }
 0x1bd   : > { %v5110_v60 = vpop.permute.xlu0 %987  ;;  %v5112_v63 = vpop.permute.xlu1 %952 }
 0x1be   : > { %7662 = vst [vmem:[#allocation161_spill] sm:$0xff] %v5112_v63 }
 0x1bf   : > { %1113 = vrot.lane.b32.xlu0 %v3914_v15, %s3943_s15  ;;  %1111 = vrot.lane.b32.xlu1 %v3915_v12, %s3943_s15  ;;  %v3916_v15 = vld [vmem:[%s3997_s24 + $0x98] sm:$0xff]  ;;  %v3917_v12 = vld [vmem:[%s3997_s24 + $0x90] sm:$0xff] }
 0x1c1   : > { %v5118_v29 = vpop.permute.xlu0 %991  ;;  %v5120_v57 = vpop.permute.xlu1 %989 }
 0x1c3   : > { %1206 = vrot.lane.b32.xlu0 %v4257_v42, %s3944_s16  ;;  %1204 = vrot.lane.b32.xlu1 %v4248_v37, %s3944_s16 }
 0x1c5   : > { %v5126_v1 = vpop.permute.xlu0 %995  ;;  %v5128_v35 = vpop.permute.xlu1 %993 }
 0x1c7   : > { %1117 = vrot.lane.b32.xlu0 %v3916_v15, %s3943_s15  ;;  %1115 = vrot.lane.b32.xlu1 %v3917_v12, %s3943_s15  ;;  %v3918_v15 = vld [vmem:[%s3997_s24 + $0xa8] sm:$0xff]  ;;  %v3919_v12 = vld [vmem:[%s3997_s24 + $0xa0] sm:$0xff] }
 0x1c9   : > { %v5134_v63 = vpop.permute.xlu0 %999  ;;  %v5136_v56 = vpop.permute.xlu1 %997 }
 0x1cb   : > { %1210 = vrot.lane.b32.xlu0 %v4269_v50, %s3944_s16  ;;  %1208 = vrot.lane.b32.xlu1 %v4260_v45, %s3944_s16 }
 0x1cd   : > { %v5142_v37 = vpop.permute.xlu0 %1003  ;;  %v5144_v42 = vpop.permute.xlu1 %1001 }
 0x1cf   : > { %1121 = vrot.lane.b32.xlu0 %v3918_v15, %s3943_s15  ;;  %1119 = vrot.lane.b32.xlu1 %v3919_v12, %s3943_s15  ;;  %v3920_v15 = vld [vmem:[%s3997_s24 + $0xb8] sm:$0xff]  ;;  %v3921_v12 = vld [vmem:[%s3997_s24 + $0xb0] sm:$0xff] }
 0x1d1   : > { %v5150_v59 = vpop.permute.xlu0 %1007  ;;  %v5152_v52 = vpop.permute.xlu1 %1005 }
 0x1d3   : > { %1214 = vrot.lane.b32.xlu0 %v7584_v18, %s3944_s16  ;;  %1212 = vrot.lane.b32.xlu1 %v4272_v53, %s3944_s16 }
 0x1d5   : > { %v5158_v45 = vpop.permute.xlu0 %1011  ;;  %v5160_v50 = vpop.permute.xlu1 %1009 }
 0x1d7   : > { %1125 = vrot.lane.b32.xlu0 %v3920_v15, %s3943_s15  ;;  %1123 = vrot.lane.b32.xlu1 %v3921_v12, %s3943_s15  ;;  %v3922_v15 = vld [vmem:[%s3997_s24 + $0xc8] sm:$0xff]  ;;  %v3923_v12 = vld [vmem:[%s3997_s24 + $0xc0] sm:$0xff] }
 0x1d9   : > { %v5166_v55 = vpop.permute.xlu0 %1015  ;;  %v5168_v13 = vpop.permute.xlu1 %1013 }
 0x1db   : > { %1218 = vrot.lane.b32.xlu0 %v7588_v17, %s3944_s16  ;;  %1216 = vrot.lane.b32.xlu1 %v7583_v54, %s3944_s16 }
 0x1dd   : > { %v5174_v53 = vpop.permute.xlu0 %1019  ;;  %v5176_v18 = vpop.permute.xlu1 %1017 }
 0x1df   : > { %1129 = vrot.lane.b32.xlu0 %v3922_v15, %s3943_s15  ;;  %1127 = vrot.lane.b32.xlu1 %v3923_v12, %s3943_s15  ;;  %v3924_v15 = vld [vmem:[%s3997_s24 + $0xd8] sm:$0xff]  ;;  %v3925_v12 = vld [vmem:[%s3997_s24 + $0xd0] sm:$0xff] }
 0x1e1   : > { %v5182_v27 = vpop.permute.xlu0 %1023  ;;  %v5184_v48 = vpop.permute.xlu1 %1021 }
 0x1e2   : > { %7663 = vst [vmem:[#allocation162_spill] sm:$0xff] %v5182_v27 }
 0x1e3   : > { %1222 = vrot.lane.b32.xlu0 %v7591_v5, %s3944_s16  ;;  %1220 = vrot.lane.b32.xlu1 %v7587_v58, %s3944_s16 }
 0x1e5   : > { %v5190_v54 = vpop.permute.xlu0 %1027  ;;  %v5192_v17 = vpop.permute.xlu1 %1025 }
 0x1e6   : > { %7664 = vst [vmem:[#allocation163_spill] sm:$0xff] %v5190_v54  ;;  %7665 = vst [vmem:[#allocation164_spill] sm:$0xff] %v5192_v17  ;;  %v3926_v54 = vld [vmem:[%s3997_s24 + $0xe8] sm:$0xff] }
 0x1e7   : > { %1133 = vrot.lane.b32.xlu0 %v3924_v15, %s3943_s15  ;;  %1131 = vrot.lane.b32.xlu1 %v3925_v12, %s3943_s15  ;;  %v3927_v15 = vld [vmem:[%s3997_s24 + $0xe0] sm:$0xff]  ;;  %v7670_v12 = vmov 0.0  }
 0x1e9   : > { %v5198_v27 = vpop.permute.xlu0 %1031  ;;  %v5200_v51 = vpop.permute.xlu1 %1029 }
 0x1ea   : > { %7666 = vst [vmem:[#allocation165_spill] sm:$0xff] %v5198_v27  ;;  %7667 = vst [vmem:[#allocation166_spill] sm:$0xff] %v5200_v51  ;;  %v289_v27 = vrot.slane %v7670_v12, 7 }
 0x1eb   : > { %1226 = vrot.lane.b32.xlu0 %v7593_v36, %s3944_s16  ;;  %1224 = vrot.lane.b32.xlu1 %v7590_v41, %s3944_s16  ;;  %v7673_v36 = vld [vmem:[#allocation70_spill] sm:$0xff] }
 0x1ec   : > { %v368_v41 = vsel %vm288_vm1, 0.0, %v289_v27 }
 0x1ed   : > { %v5206_v58 = vpop.permute.xlu0 %1035  ;;  %v5208_v5 = vpop.permute.xlu1 %1033 }
 0x1ee   : > { %7668 = vst [vmem:[#allocation167_spill] sm:$0xff] %v5206_v58  ;;  %7669 = vst [vmem:[#allocation168_spill] sm:$0xff] %v5208_v5  ;;  %v3897_v58 = vunpack.i.l.bf16 %v7673_v36 }
 0x1ef   : > { %1137 = vrot.lane.b32.xlu0 %v3926_v54, %s3943_s15  ;;  %1135 = vrot.lane.b32.xlu1 %v3927_v15, %s3943_s15  ;;  %v3898_v54 = vunpack.i.h.bf16 %v7673_v36 }
 0x1f1   : > { %v5215_v17 = vpop.permute.xlu0 %1039  ;;  %v5217_v51 = vpop.permute.xlu1 %1037 }
 0x1f2   : > { %7671 = vst [vmem:[#allocation169_spill] sm:$0xff] %v5215_v17  ;;  %7672 = vst [vmem:[#allocation170_spill] sm:$0xff] %v5217_v51  ;;  %v7676_v17 = vld [vmem:[#allocation7_spill] sm:$0xff] }
 0x1f3   : > { %1230 = vrot.lane.b32.xlu0 %v7595_v23, %s3944_s16  ;;  %1228 = vrot.lane.b32.xlu1 %v7592_v21, %s3944_s16  ;;  %v1274_v51 = vsel %vm1272_vm3, %v289_v27, %v7676_v17  ;;  %v1273_v23 = vsel %vm1272_vm3, %v368_v41, %v7676_v17 }
 0x1f4   : > { %v5239_v21 = vsel %vm1305_vm5, %v1273_v23, %v3897_v58  ;;  %v5242_v36 = vsel %vm1305_vm5, %v1274_v51, %v3898_v54  ;;  %v3899_v51 = vpack.i.bf16 %v289_v27, %v368_v41 }
 0x1f5   : > { %v5226_v15 = vpop.permute.xlu0 %1043  ;;  %v5228_v5 = vpop.permute.xlu1 %1041  ;;  %v1340_v17 = vsel %vm1338_vm4, %v5242_v36, %v4711_v26 }
 0x1f6   : > { %7674 = vst [vmem:[#allocation70_spill] sm:$0xff] %v5226_v15  ;;  %7675 = vst [vmem:[#allocation171_spill] sm:$0xff] %v5228_v5  ;;  %v1339_v15 = vsel %vm1338_vm4, %v5239_v21, %v4703_v24  ;;  %v1373_v58 = vsel %vm1371_vm6, %v1340_v17, %v4841_v39  ;;  %v7679_v17 = vld [vmem:[#allocation13_spill] sm:$0xff] }
 0x1f7   : > { %1139 = vrot.lane.b32.xlu0 %v4546_v62, %s3943_s15  ;;  %1045 = vrot.lane.b32.xlu1 %v4595_v38, %s3942_s29  ;;  %v1372_v38 = vsel %vm1371_vm6, %v1339_v15, %v4829_v20  ;;  %v1406_v24 = vsel %vm1404_vm7, %v1373_v58, %v4992_v32  ;;  %v7677_v15 = vld [vmem:[#allocation12_spill] sm:$0xff] }
 0x1f8   : > { %v1405_v54 = vsel %vm1404_vm7, %v1372_v38, %v4977_v22  ;;  %v1439_v26 = vsel %vm1437_vm8, %v1406_v24, %v5120_v57  ;;  %v7681_v57 = vld [vmem:[#allocation71_spill] sm:$0xff] }
 0x1f9   : > { %v1086_v62 = vpop.permute.xlu0 %1085  ;;  %v1084_v5 = vpop.permute.xlu1 %1083  ;;  %v1438_v20 = vsel %vm1437_vm8, %v1405_v54, %v5110_v60  ;;  %v7680_v60 = vld [vmem:[#allocation17_spill] sm:$0xff] }
 0x1fa   : > { %v1472_v39 = vsel %vm1470_vm9, %v1439_v26, %v1086_v62  ;;  %v1471_v22 = vsel %vm1470_vm9, %v1438_v20, %v1084_v5  ;;  %v1275_v38 = vsel %vm1272_vm3, %v7680_v60, %v7679_v17  ;;  %v7688_v17 = vld [vmem:[#allocation103_spill] sm:$0xff] }
 0x1fb   : > { %1232 = vrot.lane.b32.xlu0 %v4848_v14, %s3944_s16  ;;  %1141 = vrot.lane.b32.xlu1 %v4566_v49, %s3943_s15  ;;  %v7678_v49 = vld [vmem:[#allocation20_spill] sm:$0xff]  ;;  %v1308_v5 = vsel %vm1305_vm5, %v1275_v38, %v7681_v57  ;;  %v7689_v38 = vld [vmem:[#allocation105_spill] sm:$0xff] }
 0x1fc   : > { %v1276_v23 = vsel %vm1272_vm3, %v7678_v49, %v7677_v15  ;;  %v1341_v58 = vsel %vm1338_vm4, %v1308_v5, %v4709_v25  ;;  %v7682_v25 = vld [vmem:[#allocation2_spill] sm:$0xff]  ;;  %v7687_v49 = vld [vmem:[#allocation76_spill] sm:$0xff] }
 0x1fd   : > { %v1179_v27 = vpop.permute.xlu0 %1178  ;;  %v1177_v41 = vpop.permute.xlu1 %1176  ;;  %v1309_v62 = vsel %vm1305_vm5, %v1276_v23, %v4583_v34 }
 0x1fe   : > { %v1505_v32 = vsel %vm1503_vm10, %v1472_v39, %v1179_v27  ;;  %v1504_v14 = vsel %vm1503_vm10, %v1471_v22, %v1177_v41  ;;  %v1342_v54 = vsel %vm1338_vm4, %v1309_v62, %v4719_v28  ;;  %v7683_v41 = vld [vmem:[#allocation15_spill] sm:$0xff]  ;;  %v7690_v62 = vld [vmem:[#allocation5_spill] sm:$0xff] }
 0x1ff   : > { %3900 = vrot.lane.b32.xlu0 %v3899_v51, %s3942_s29  ;;  %1234 = vrot.lane.b32.xlu1 %v4859_v31, %s3944_s16  ;;  %v1374_v31 = vsel %vm1371_vm6, %v1341_v58, %v4839_v19  ;;  %v1375_v20 = vsel %vm1371_vm6, %v1342_v54, %v4852_v33  ;;  %v7691_v54 = vld [vmem:[#allocation8_spill] sm:$0xff] }
 0x200   : > { %3755 = vmatprep.mubr.msk.f32.mxu0 %vm1548_vm11, %v1504_v14  ;;  %v1407_v34 = vsel %vm1404_vm7, %v1374_v31, %v4990_v30  ;;  %v1408_v26 = vsel %vm1404_vm7, %v1375_v20, %v5000_v2  ;;  %v7685_v14 = vld [vmem:[#allocation24_spill] sm:$0xff] }
 0x201   : > { %3756 = vmatmul.mubr.msk.f32.vlgmr.msra.gmra.mrb[0].mxu0 %vm1548_vm11, %v1505_v32  ;;  %v1090_v51 = vpop.permute.xlu0 %1089  ;;  %v1088_v24 = vpop.permute.xlu1 %1087  ;;  %v1440_v28 = vsel %vm1437_vm8, %v1407_v34, %v5118_v29  ;;  %v1441_v19 = vsel %vm1437_vm8, %v1408_v26, %v5128_v35  ;;  %v7684_v32 = vld [vmem:[#allocation16_spill] sm:$0xff]  ;;  %v7686_v35 = vld [vmem:[#allocation74_spill] sm:$0xff] }
 0x202   : > { %v1474_v33 = vsel %vm1470_vm9, %v1441_v19, %v1090_v51  ;;  %v1473_v39 = vsel %vm1470_vm9, %v1440_v28, %v1088_v24  ;;  %v1278_v29 = vsel %vm1272_vm3, %v7685_v14, %v7684_v32  ;;  %v7698_v32 = vld [vmem:[#allocation104_spill] sm:$0xff] }
 0x203   : > { %3905 = vrot.lane.b32.xlu0 %v7682_v25, %s3944_s16  ;;  %1143 = vrot.lane.b32.xlu1 %v7670_v12, %s3943_s15  ;;  %v1277_v12 = vsel %vm1272_vm3, %v7598_v4, %v7683_v41  ;;  %v1311_v23 = vsel %vm1305_vm5, %v1278_v29, %v7687_v49  ;;  %v7697_v41 = vld [vmem:[#allocation78_spill] sm:$0xff]  ;;  %v7699_v29 = vld [vmem:[#allocation107_spill] sm:$0xff] }
 0x204   : > { %v1310_v15 = vsel %vm1305_vm5, %v1277_v12, %v7686_v35  ;;  %v1344_v4 = vsel %vm1338_vm4, %v1311_v23, %v7689_v38  ;;  %v7700_v23 = vld [vmem:[#allocation9_spill] sm:$0xff] }
 0x205   : > { %v1183_v30 = vpop.permute.xlu0 %1182  ;;  %v1181_v22 = vpop.permute.xlu1 %1180  ;;  %v1343_v60 = vsel %vm1338_vm4, %v1310_v15, %v7688_v17  ;;  %v1377_v51 = vsel %vm1371_vm6, %v1344_v4, %v7691_v54 }
 0x206   : > { %v1507_v2 = vsel %vm1503_vm10, %v1474_v33, %v1183_v30  ;;  %v1506_v27 = vsel %vm1503_vm10, %v1473_v39, %v1181_v22  ;;  %v1376_v58 = vsel %vm1371_vm6, %v1343_v60, %v7690_v62  ;;  %v1410_v31 = vsel %vm1404_vm7, %v1377_v51, %v5008_v61  ;;  %v7693_v30 = vld [vmem:[#allocation25_spill] sm:$0xff]  ;;  %v7694_v22 = vld [vmem:[#allocation19_spill] sm:$0xff]  ;;  %v7701_v60 = vld [vmem:[#allocation10_spill] sm:$0xff] }
 0x207   : > { %3758 = vmatprep.mubr.msk.f32.mxu0 %vm1548_vm11, %v1506_v27  ;;  %v1409_v24 = vsel %vm1404_vm7, %v1376_v58, %v4998_v16  ;;  %v1443_v34 = vsel %vm1437_vm8, %v1410_v31, %v5136_v56  ;;  %v7692_v16 = vld [vmem:[#allocation18_spill] sm:$0xff]  ;;  %v7696_v56 = vld [vmem:[#allocation77_spill] sm:$0xff] }
 0x208   : > { %3759 = vmatmul.mubr.msk.f32.gmra.mrb[2].mxu0 %vm1548_vm11, %v1507_v2  ;;  %v1442_v20 = vsel %vm1437_vm8, %v1409_v24, %v5126_v1  ;;  %v1279_v61 = vsel %vm1272_vm3, %v7693_v30, %v7692_v16  ;;  %v7695_v2 = vld [vmem:[#allocation28_spill] sm:$0xff]  ;;  %v7709_v30 = vld [vmem:[#allocation109_spill] sm:$0xff] }
 0x209   : > { %v1094_v57 = vpop.permute.xlu0 %1093  ;;  %v1092_v5 = vpop.permute.xlu1 %1091  ;;  %v1280_v1 = vsel %vm1272_vm3, %v7695_v2, %v7694_v22  ;;  %v1312_v27 = vsel %vm1305_vm5, %v1279_v61, %v7696_v56 }
 0x20a   : > { %v1476_v26 = vsel %vm1470_vm9, %v1443_v34, %v1094_v57  ;;  %v1475_v25 = vsel %vm1470_vm9, %v1442_v20, %v1092_v5  ;;  %v1313_v12 = vsel %vm1305_vm5, %v1280_v1, %v7697_v41  ;;  %v1345_v14 = vsel %vm1338_vm4, %v1312_v27, %v7698_v32  ;;  %v7703_v34 = vld [vmem:[#allocation29_spill] sm:$0xff]  ;;  %v7710_v1 = vld [vmem:[#allocation11_spill] sm:$0xff] }
 0x20b   : > { %v1346_v35 = vsel %vm1338_vm4, %v1313_v12, %v7699_v29  ;;  %v1378_v17 = vsel %vm1371_vm6, %v1345_v14, %v7700_v23  ;;  %v7711_v27 = vld [vmem:[#allocation21_spill] sm:$0xff] }
 0x20c   : > { %v1379_v38 = vsel %vm1371_vm6, %v1346_v35, %v7701_v60  ;;  %v1411_v4 = vsel %vm1404_vm7, %v1378_v17, %v5006_v0  ;;  %v7702_v0 = vld [vmem:[#allocation22_spill] sm:$0xff] }
 0x20d   : > { %v1187_v28 = vpop.permute.xlu0 %1186  ;;  %v1185_v19 = vpop.permute.xlu1 %1184  ;;  %v1412_v57 = vsel %vm1404_vm7, %v1379_v38, %v5016_v46  ;;  %v1444_v5 = vsel %vm1437_vm8, %v1411_v4, %v5134_v63  ;;  %v1281_v46 = vsel %vm1272_vm3, %v7703_v34, %v7702_v0  ;;  %v7713_v38 = vld [vmem:[#allocation33_spill] sm:$0xff]  ;;  %v7714_v4 = vld [vmem:[#allocation27_spill] sm:$0xff]  ;;  %v7720_v34 = vld [vmem:[#allocation14_spill] sm:$0xff] }
 0x20e   : > { %v1509_v33 = vsel %vm1503_vm10, %v1476_v26, %v1187_v28  ;;  %v1508_v39 = vsel %vm1503_vm10, %v1475_v25, %v1185_v19  ;;  %v1445_v62 = vsel %vm1437_vm8, %v1412_v57, %v5144_v42  ;;  %v7704_v26 = vld [vmem:[#allocation23_spill] sm:$0xff]  ;;  %v7705_v25 = vld [vmem:[#allocation32_spill] sm:$0xff] }
 0x20f   : > { %3761 = vmatprep.mubr.msk.f32.mxu0 %vm1548_vm11, %v1508_v39  ;;  %v1282_v63 = vsel %vm1272_vm3, %v7705_v25, %v7704_v26  ;;  %v7706_v42 = vld [vmem:[#allocation79_spill] sm:$0xff]  ;;  %v7707_v19 = vld [vmem:[#allocation80_spill] sm:$0xff]  ;;  %v7708_v39 = vld [vmem:[#allocation106_spill] sm:$0xff] }
 0x210   : > { %3762 = vmatmul.mubr.msk.f32.gmra.mrb[4].mxu0 %vm1548_vm11, %v1509_v33  ;;  %v1314_v28 = vsel %vm1305_vm5, %v1281_v46, %v7706_v42  ;;  %v1315_v33 = vsel %vm1305_vm5, %v1282_v63, %v7707_v19  ;;  %v7715_v57 = vld [vmem:[#allocation36_spill] sm:$0xff]  ;;  %v7721_v26 = vld [vmem:[#allocation129_spill] sm:$0xff] }
 0x211   : > { %v1098_v15 = vpop.permute.xlu0 %1097  ;;  %v1096_v49 = vpop.permute.xlu1 %1095  ;;  %v1347_v16 = vsel %vm1338_vm4, %v1314_v28, %v7708_v39  ;;  %v1348_v61 = vsel %vm1338_vm4, %v1315_v33, %v7709_v30 }
 0x212   : > { %v1478_v58 = vsel %vm1470_vm9, %v1445_v62, %v1098_v15  ;;  %v1477_v54 = vsel %vm1470_vm9, %v1444_v5, %v1096_v49  ;;  %v1380_v56 = vsel %vm1371_vm6, %v1347_v16, %v7710_v1  ;;  %v1381_v41 = vsel %vm1371_vm6, %v1348_v61, %v7711_v27  ;;  %v7717_v62 = vld [vmem:[#allocation82_spill] sm:$0xff]  ;;  %v7724_v1 = vld [vmem:[#allocation31_spill] sm:$0xff] }
 0x213   : > { %v1413_v12 = vsel %vm1404_vm7, %v1380_v56, %v5014_v3  ;;  %v1414_v32 = vsel %vm1404_vm7, %v1381_v41, %v5024_v7  ;;  %v7712_v3 = vld [vmem:[#allocation26_spill] sm:$0xff]  ;;  %v7725_v56 = vld [vmem:[#allocation40_spill] sm:$0xff] }
 0x214   : > { %v1446_v14 = vsel %vm1437_vm8, %v1413_v12, %v5142_v37  ;;  %v1447_v29 = vsel %vm1437_vm8, %v1414_v32, %v5152_v52  ;;  %v1283_v7 = vsel %vm1272_vm3, %v7713_v38, %v7712_v3  ;;  %v1284_v37 = vsel %vm1272_vm3, %v7715_v57, %v7714_v4  ;;  %v7716_v52 = vld [vmem:[#allocation81_spill] sm:$0xff]  ;;  %v7727_v41 = vld [vmem:[#allocation84_spill] sm:$0xff]  ;;  %v7728_v32 = vld [vmem:[#allocation110_spill] sm:$0xff] }
 0x215   : > { %v1191_v51 = vpop.permute.xlu0 %1190  ;;  %v1189_v24 = vpop.permute.xlu1 %1188  ;;  %v1316_v5 = vsel %vm1305_vm5, %v1283_v7, %v7716_v52 }
 0x216   : > { %v1511_v31 = vsel %vm1503_vm10, %v1478_v58, %v1191_v51  ;;  %v1510_v20 = vsel %vm1503_vm10, %v1477_v54, %v1189_v24  ;;  %v1317_v58 = vsel %vm1305_vm5, %v1284_v37, %v7717_v62  ;;  %v7718_v54 = vld [vmem:[#allocation108_spill] sm:$0xff]  ;;  %v7719_v24 = vld [vmem:[#allocation111_spill] sm:$0xff] }
 0x217   : > { %3764 = vmatprep.mubr.msk.f32.mxu0 %vm1548_vm11, %v1510_v20  ;;  %v1349_v51 = vsel %vm1338_vm4, %v1316_v5, %v7718_v54 }
 0x218   : > { %3765 = vmatmul.mubr.msk.f32.gmra.mrb[6].mxu0 %vm1548_vm11, %v1511_v31  ;;  %v1350_v31 = vsel %vm1338_vm4, %v1317_v58, %v7719_v24  ;;  %v1382_v46 = vsel %vm1371_vm6, %v1349_v51, %v7720_v34  ;;  %v7733_v51 = vld [vmem:[#allocation41_spill] sm:$0xff]  ;;  %v7734_v24 = vld [vmem:[#allocation35_spill] sm:$0xff] }
 0x219   : > { %v1102_v22 = vpop.permute.xlu0 %1101  ;;  %v1100_v2 = vpop.permute.xlu1 %1099  ;;  %v1383_v25 = vsel %vm1371_vm6, %v1350_v31, %v7721_v26  ;;  %v1415_v63 = vsel %vm1404_vm7, %v1382_v46, %v5022_v6  ;;  %v7722_v6 = vld [vmem:[#allocation30_spill] sm:$0xff]  ;;  %v7735_v31 = vld [vmem:[#allocation44_spill] sm:$0xff] }
 0x21a   : > { %v1480_v35 = vsel %vm1470_vm9, %v1447_v29, %v1102_v22  ;;  %v1479_v15 = vsel %vm1470_vm9, %v1446_v14, %v1100_v2  ;;  %v1416_v42 = vsel %vm1404_vm7, %v1383_v25, %v5032_v43  ;;  %v1448_v28 = vsel %vm1437_vm8, %v1415_v63, %v5150_v59  ;;  %v7723_v2 = vld [vmem:[#allocation37_spill] sm:$0xff]  ;;  %v7738_v46 = vld [vmem:[#allocation112_spill] sm:$0xff]  ;;  %v7739_v25 = vld [vmem:[#allocation115_spill] sm:$0xff] }
 0x21b   : > { %v1449_v19 = vsel %vm1437_vm8, %v1416_v42, %v5160_v50  ;;  %v1285_v43 = vsel %vm1272_vm3, %v7723_v2, %v7722_v6  ;;  %v1286_v59 = vsel %vm1272_vm3, %v7725_v56, %v7724_v1  ;;  %v7726_v50 = vld [vmem:[#allocation83_spill] sm:$0xff]  ;;  %v7729_v29 = vld [vmem:[#allocation113_spill] sm:$0xff] }
 0x21c   : > { %v1318_v27 = vsel %vm1305_vm5, %v1285_v43, %v7726_v50  ;;  %v1319_v12 = vsel %vm1305_vm5, %v1286_v59, %v7727_v41  ;;  %v7744_v41 = vld [vmem:[#allocation39_spill] sm:$0xff] }
 0x21d   : > { %v1195_v49 = vpop.permute.xlu0 %1194  ;;  %v1193_v23 = vpop.permute.xlu1 %1192  ;;  %v1351_v14 = vsel %vm1338_vm4, %v1318_v27, %v7728_v32  ;;  %v7743_v27 = vld [vmem:[#allocation45_spill] sm:$0xff] }
 0x21e   : > { %v1513_v17 = vsel %vm1503_vm10, %v1480_v35, %v1195_v49  ;;  %v1512_v60 = vsel %vm1503_vm10, %v1479_v15, %v1193_v23  ;;  %v1352_v35 = vsel %vm1338_vm4, %v1319_v12, %v7729_v29  ;;  %v7730_v23 = vld [vmem:[#allocation128_spill] sm:$0xff] }
 0x21f   : > { %3767 = vmatprep.mubr.msk.f32.mxu0 %vm1548_vm11, %v1512_v60  ;;  %v7731_v60 = vld [vmem:[#allocation131_spill] sm:$0xff]  ;;  %v7745_v12 = vld [vmem:[#allocation48_spill] sm:$0xff] }
 0x220   : > { %3768 = vmatmul.mubr.msk.f32.gmra.mrb[8].mxu0 %vm1548_vm11, %v1513_v17  ;;  %v1384_v17 = vsel %vm1371_vm6, %v1351_v14, %v7730_v23  ;;  %v1385_v3 = vsel %vm1371_vm6, %v1352_v35, %v7731_v60  ;;  %v7747_v14 = vld [vmem:[#allocation88_spill] sm:$0xff]  ;;  %v7748_v35 = vld [vmem:[#allocation114_spill] sm:$0xff] }
 0x221   : > { %v1106_v20 = vpop.permute.xlu0 %1105  ;;  %v1104_v0 = vpop.permute.xlu1 %1103  ;;  %v1417_v38 = vsel %vm1404_vm7, %v1384_v17, %v5030_v40  ;;  %v1418_v7 = vsel %vm1404_vm7, %v1385_v3, %v5040_v9  ;;  %v7732_v40 = vld [vmem:[#allocation34_spill] sm:$0xff]  ;;  %v7750_v3 = vld [vmem:[#allocation132_spill] sm:$0xff] }
 0x222   : > { %v1482_v33 = vsel %vm1470_vm9, %v1449_v19, %v1106_v20  ;;  %v1481_v39 = vsel %vm1470_vm9, %v1448_v28, %v1104_v0  ;;  %v1450_v4 = vsel %vm1437_vm8, %v1417_v38, %v5158_v45  ;;  %v1451_v57 = vsel %vm1437_vm8, %v1418_v7, %v5168_v13  ;;  %v7736_v13 = vld [vmem:[#allocation85_spill] sm:$0xff]  ;;  %v7737_v0 = vld [vmem:[#allocation86_spill] sm:$0xff]  ;;  %v7751_v7 = vld [vmem:[#allocation135_spill] sm:$0xff] }
 0x223   : > { %v1287_v9 = vsel %vm1272_vm3, %v7733_v51, %v7732_v40  ;;  %v1288_v45 = vsel %vm1272_vm3, %v7735_v31, %v7734_v24  ;;  %v7740_v19 = vld [vmem:[#allocation130_spill] sm:$0xff]  ;;  %v7753_v24 = vld [vmem:[#allocation49_spill] sm:$0xff]  ;;  %v7754_v31 = vld [vmem:[#allocation43_spill] sm:$0xff] }
 0x224   : > { %v1320_v20 = vsel %vm1305_vm5, %v1287_v9, %v7736_v13  ;;  %v1321_v34 = vsel %vm1305_vm5, %v1288_v45, %v7737_v0  ;;  %v7755_v45 = vld [vmem:[#allocation52_spill] sm:$0xff] }
 0x225   : > { %v1199_v16 = vpop.permute.xlu0 %1198  ;;  %v1197_v30 = vpop.permute.xlu1 %1196  ;;  %v1353_v26 = vsel %vm1338_vm4, %v1320_v20, %v7738_v46  ;;  %v1354_v63 = vsel %vm1338_vm4, %v1321_v34, %v7739_v25  ;;  %v7757_v20 = vld [vmem:[#allocation90_spill] sm:$0xff]  ;;  %v7758_v34 = vld [vmem:[#allocation116_spill] sm:$0xff] }
 0x226   : > { %v1515_v61 = vsel %vm1503_vm10, %v1482_v33, %v1199_v16  ;;  %v1514_v22 = vsel %vm1503_vm10, %v1481_v39, %v1197_v30  ;;  %v1386_v33 = vsel %vm1371_vm6, %v1353_v26, %v7740_v19  ;;  %v7741_v39 = vld [vmem:[#allocation133_spill] sm:$0xff]  ;;  %v7759_v26 = vld [vmem:[#allocation119_spill] sm:$0xff] }
 0x227   : > { %3770 = vmatprep.mubr.msk.f32.mxu0 %vm1548_vm11, %v1514_v22  ;;  %v1387_v16 = vsel %vm1371_vm6, %v1354_v63, %v7741_v39  ;;  %v1419_v30 = vsel %vm1404_vm7, %v1386_v33, %v5038_v8  ;;  %v7742_v8 = vld [vmem:[#allocation38_spill] sm:$0xff]  ;;  %v7761_v33 = vld [vmem:[#allocation137_spill] sm:$0xff] }
 0x228   : > { %3771 = vmatmul.mubr.msk.f32.gmra.mrb[10].mxu0 %vm1548_vm11, %v1515_v61  ;;  %v1420_v61 = vsel %vm1404_vm7, %v1387_v16, %v5048_v47  ;;  %v1452_v22 = vsel %vm1437_vm8, %v1419_v30, %v5166_v55  ;;  %v1289_v47 = vsel %vm1272_vm3, %v7743_v27, %v7742_v8  ;;  %v1290_v55 = vsel %vm1272_vm3, %v7745_v12, %v7744_v41  ;;  %v7762_v30 = vld [vmem:[#allocation150_spill] sm:$0xff]  ;;  %v7767_v12 = vld [vmem:[#allocation47_spill] sm:$0xff] }
 0x229   : > { %v1110_v15 = vpop.permute.xlu0 %1109  ;;  %v1108_v49 = vpop.permute.xlu1 %1107  ;;  %v1453_v6 = vsel %vm1437_vm8, %v1420_v61, %v5176_v18  ;;  %v7746_v18 = vld [vmem:[#allocation87_spill] sm:$0xff]  ;;  %v1323_v29 = vsel %vm1305_vm5, %v1290_v55, %v7747_v14  ;;  %v7768_v55 = vld [vmem:[#allocation56_spill] sm:$0xff] }
 0x22a   : > { %v1484_v37 = vsel %vm1470_vm9, %v1451_v57, %v1110_v15  ;;  %v1483_v52 = vsel %vm1470_vm9, %v1450_v4, %v1108_v49  ;;  %v1322_v32 = vsel %vm1305_vm5, %v1289_v47, %v7746_v18  ;;  %v7749_v49 = vld [vmem:[#allocation117_spill] sm:$0xff]  ;;  %v1294_v18 = vsel %vm1272_vm3, %v7768_v55, %v7767_v12 }
 0x22b   : > { %v1355_v15 = vsel %vm1338_vm4, %v1322_v32, %v7748_v35  ;;  %v1356_v23 = vsel %vm1338_vm4, %v1323_v29, %v7749_v49  ;;  %v7766_v47 = vld [vmem:[#allocation53_spill] sm:$0xff]  ;;  %v7769_v32 = vld [vmem:[#allocation91_spill] sm:$0xff]  ;;  %v7770_v29 = vld [vmem:[#allocation92_spill] sm:$0xff] }
 0x22c   : > { %v1388_v38 = vsel %vm1371_vm6, %v1355_v15, %v7750_v3  ;;  %v1389_v4 = vsel %vm1371_vm6, %v1356_v23, %v7751_v7  ;;  %v1327_v35 = vsel %vm1305_vm5, %v1294_v18, %v7770_v29  ;;  %v7771_v15 = vld [vmem:[#allocation118_spill] sm:$0xff]  ;;  %v7772_v23 = vld [vmem:[#allocation121_spill] sm:$0xff] }
 0x22d   : > { %v1203_v5 = vpop.permute.xlu0 %1202  ;;  %v1201_v62 = vpop.permute.xlu1 %1200  ;;  %v1421_v57 = vsel %vm1404_vm7, %v1388_v38, %v5046_v44  ;;  %v7752_v44 = vld [vmem:[#allocation42_spill] sm:$0xff]  ;;  %v7773_v38 = vld [vmem:[#allocation136_spill] sm:$0xff] }
 0x22e   : > { %v1517_v58 = vsel %vm1503_vm10, %v1484_v37, %v1203_v5  ;;  %v1516_v54 = vsel %vm1503_vm10, %v1483_v52, %v1201_v62  ;;  %v1422_v37 = vsel %vm1404_vm7, %v1389_v4, %v5056_v11  ;;  %v1454_v52 = vsel %vm1437_vm8, %v1421_v57, %v5174_v53  ;;  %v7774_v4 = vld [vmem:[#allocation139_spill] sm:$0xff] }
 0x22f   : > { %3773 = vmatprep.mubr.msk.f32.mxu0 %vm1548_vm11, %v1516_v54  ;;  %v1455_v5 = vsel %vm1437_vm8, %v1422_v37, %v5184_v48  ;;  %v1291_v11 = vsel %vm1272_vm3, %v7753_v24, %v7752_v44  ;;  %v1292_v53 = vsel %vm1272_vm3, %v7755_v45, %v7754_v31  ;;  %v7756_v48 = vld [vmem:[#allocation89_spill] sm:$0xff] }
 0x230   : > { %3774 = vmatmul.mubr.msk.f32.gmra.mrb[12].mxu0 %vm1548_vm11, %v1517_v58  ;;  %v1324_v13 = vsel %vm1305_vm5, %v1291_v11, %v7756_v48  ;;  %v1325_v0 = vsel %vm1305_vm5, %v1292_v53, %v7757_v20  ;;  %v7775_v37 = vld [vmem:[#allocation149_spill] sm:$0xff]  ;;  %v7779_v53 = vld [vmem:[#allocation50_spill] sm:$0xff]  ;;  %v7781_v20 = vld [vmem:[#allocation51_spill] sm:$0xff] }
 0x231   : > { %v1114_v42 = vpop.permute.xlu0 %1113  ;;  %v1112_v28 = vpop.permute.xlu1 %1111  ;;  %v1357_v46 = vsel %vm1338_vm4, %v1324_v13, %v7758_v34  ;;  %v1358_v25 = vsel %vm1338_vm4, %v1325_v0, %v7759_v26  ;;  %v7780_v48 = vld [vmem:[#allocation57_spill] sm:$0xff]  ;;  %v7782_v0 = vld [vmem:[#allocation60_spill] sm:$0xff] }
 0x232   : > { %v1486_v2 = vsel %vm1470_vm9, %v1453_v6, %v1114_v42  ;;  %v1485_v43 = vsel %vm1470_vm9, %v1452_v22, %v1112_v28  ;;  %v7760_v28 = vld [vmem:[#allocation134_spill] sm:$0xff]  ;;  %v1391_v39 = vsel %vm1371_vm6, %v1358_v25, %v7761_v33  ;;  %v1295_v13 = vsel %vm1272_vm3, %v7780_v48, %v7779_v53 }
 0x233   : > { %v1390_v19 = vsel %vm1371_vm6, %v1357_v46, %v7760_v28  ;;  %v1424_v61 = vsel %vm1404_vm7, %v1391_v39, %v7762_v30  ;;  %v7763_v22 = vld [vmem:[#allocation162_spill] sm:$0xff]  ;;  %v1296_v34 = vsel %vm1272_vm3, %v7782_v0, %v7781_v20  ;;  %v7783_v46 = vld [vmem:[#allocation93_spill] sm:$0xff] }
 0x234   : > { %v1423_v16 = vsel %vm1404_vm7, %v1390_v19, %v5054_v10  ;;  %v7765_v10 = vld [vmem:[#allocation46_spill] sm:$0xff]  ;;  %v1328_v26 = vsel %vm1305_vm5, %v1295_v13, %v7783_v46  ;;  %v7786_v19 = vld [vmem:[#allocation123_spill] sm:$0xff] }
 0x235   : > { %v1207_v1 = vpop.permute.xlu0 %1206  ;;  %v1205_v56 = vpop.permute.xlu1 %1204  ;;  %v1456_v6 = vsel %vm1437_vm8, %v1423_v16, %v7763_v22  ;;  %v1293_v41 = vsel %vm1272_vm3, %v7766_v47, %v7765_v10  ;;  %v7784_v25 = vld [vmem:[#allocation94_spill] sm:$0xff]  ;;  %v7788_v22 = vld [vmem:[#allocation141_spill] sm:$0xff] }
 0x236   : > { %v1519_v59 = vsel %vm1503_vm10, %v1486_v2, %v1207_v1  ;;  %v1518_v50 = vsel %vm1503_vm10, %v1485_v43, %v1205_v56  ;;  %v7764_v2 = vld [vmem:[#allocation164_spill] sm:$0xff]  ;;  %v1326_v14 = vsel %vm1305_vm5, %v1293_v41, %v7769_v32  ;;  %v7787_v30 = vld [vmem:[#allocation138_spill] sm:$0xff] }
 0x237   : > { %3776 = vmatprep.mubr.msk.f32.mxu0 %vm1548_vm11, %v1518_v50  ;;  %v1457_v43 = vsel %vm1437_vm8, %v1424_v61, %v7764_v2  ;;  %v1359_v49 = vsel %vm1338_vm4, %v1326_v14, %v7771_v15  ;;  %v7789_v2 = vld [vmem:[#allocation151_spill] sm:$0xff]  ;;  %v7793_v32 = vld [vmem:[#allocation54_spill] sm:$0xff]  ;;  %v7794_v14 = vld [vmem:[#allocation61_spill] sm:$0xff] }
 0x238   : > { %3777 = vmatmul.mubr.msk.f32.gmra.mrb[14].mxu0 %vm1548_vm11, %v1519_v59  ;;  %v1392_v7 = vsel %vm1371_vm6, %v1359_v49, %v7773_v38  ;;  %v1297_v29 = vsel %vm1272_vm3, %v7794_v14, %v7793_v32  ;;  %v7796_v15 = vld [vmem:[#allocation64_spill] sm:$0xff]  ;;  %v7799_v38 = vld [vmem:[#allocation122_spill] sm:$0xff] }
 0x239   : > { %v1118_v17 = vpop.permute.xlu0 %1117  ;;  %v1116_v60 = vpop.permute.xlu1 %1115  ;;  %v7807_v46 = vld [vmem:[#allocation58_spill] sm:$0xff] }
 0x23a   : > { %v1488_v62 = vsel %vm1470_vm9, %v1455_v5, %v1118_v17  ;;  %v1487_v58 = vsel %vm1470_vm9, %v1454_v52, %v1116_v60  ;;  %v1360_v17 = vsel %vm1338_vm4, %v1327_v35, %v7772_v23  ;;  %v1425_v52 = vsel %vm1404_vm7, %v1392_v7, %v7775_v37  ;;  %v7776_v5 = vld [vmem:[#allocation152_spill] sm:$0xff]  ;;  %v7795_v35 = vld [vmem:[#allocation55_spill] sm:$0xff] }
 0x23b   : > { %v1393_v57 = vsel %vm1371_vm6, %v1360_v17, %v7774_v4  ;;  %v1298_v49 = vsel %vm1272_vm3, %v7796_v15, %v7795_v35  ;;  %v7797_v23 = vld [vmem:[#allocation95_spill] sm:$0xff]  ;;  %v7800_v4 = vld [vmem:[#allocation125_spill] sm:$0xff] }
 0x23c   : > { %v1330_v17 = vsel %vm1305_vm5, %v1297_v29, %v7797_v23  ;;  %v7821_v23 = vld [vmem:[#allocation62_spill] sm:$0xff] }
 0x23d   : > { %v1211_v54 = vpop.permute.xlu0 %1210  ;;  %v1209_v40 = vpop.permute.xlu1 %1208  ;;  %v1363_v7 = vsel %vm1338_vm4, %v1330_v17, %v7799_v38  ;;  %v7822_v17 = vld [vmem:[#allocation69_spill] sm:$0xff] }
 0x23e   : > { %v1521_v51 = vsel %vm1503_vm10, %v1488_v62, %v1211_v54  ;;  %v1520_v9 = vsel %vm1503_vm10, %v1487_v58, %v1209_v40  ;;  %v1426_v62 = vsel %vm1404_vm7, %v1393_v57, %v7776_v5  ;;  %v7777_v58 = vld [vmem:[#allocation163_spill] sm:$0xff]  ;;  %v7778_v40 = vld [vmem:[#allocation166_spill] sm:$0xff]  ;;  %v7801_v5 = vld [vmem:[#allocation140_spill] sm:$0xff] }
 0x23f   : > { %3779 = vmatprep.mubr.msk.f32.mxu0 %vm1548_vm11, %v1520_v9  ;;  %v1458_v54 = vsel %vm1437_vm8, %v1425_v52, %v7777_v58  ;;  %v7802_v58 = vld [vmem:[#allocation143_spill] sm:$0xff] }
 0x240   : > { %3780 = vmatmul.mubr.msk.f32.gmra.mrb[16].mxu0 %vm1548_vm11, %v1521_v51  ;;  %v1459_v51 = vsel %vm1437_vm8, %v1426_v62, %v7778_v40  ;;  %v1396_v62 = vsel %vm1371_vm6, %v1363_v7, %v7801_v5  ;;  %v7803_v40 = vld [vmem:[#allocation153_spill] sm:$0xff]  ;;  %v7824_v7 = vld [vmem:[#allocation126_spill] sm:$0xff] }
 0x241   : > { %v1122_v63 = vpop.permute.xlu0 %1121  ;;  %v1120_v42 = vpop.permute.xlu1 %1119 }
 0x242   : > { %v1490_v1 = vsel %vm1470_vm9, %v1457_v43, %v1122_v63  ;;  %v1489_v56 = vsel %vm1470_vm9, %v1456_v6, %v1120_v42  ;;  %v1329_v63 = vsel %vm1305_vm5, %v1296_v34, %v7784_v25  ;;  %v7785_v42 = vld [vmem:[#allocation120_spill] sm:$0xff] }
 0x243   : > { %v1361_v28 = vsel %vm1338_vm4, %v1328_v26, %v7785_v42  ;;  %v1362_v33 = vsel %vm1338_vm4, %v1329_v63, %v7786_v19  ;;  %v7808_v26 = vld [vmem:[#allocation65_spill] sm:$0xff]  ;;  %v7809_v63 = vld [vmem:[#allocation59_spill] sm:$0xff]  ;;  %v7810_v42 = vld [vmem:[#allocation68_spill] sm:$0xff] }
 0x244   : > { %v1394_v61 = vsel %vm1371_vm6, %v1361_v28, %v7787_v30  ;;  %v1395_v6 = vsel %vm1371_vm6, %v1362_v33, %v7788_v22  ;;  %v1299_v25 = vsel %vm1272_vm3, %v7808_v26, %v7807_v46  ;;  %v1300_v28 = vsel %vm1272_vm3, %v7810_v42, %v7809_v63  ;;  %v7811_v19 = vld [vmem:[#allocation97_spill] sm:$0xff]  ;;  %v7813_v30 = vld [vmem:[#allocation124_spill] sm:$0xff]  ;;  %v7814_v22 = vld [vmem:[#allocation127_spill] sm:$0xff] }
 0x245   : > { %v1215_v59 = vpop.permute.xlu0 %1214  ;;  %v1213_v50 = vpop.permute.xlu1 %1212  ;;  %v1427_v43 = vsel %vm1404_vm7, %v1394_v61, %v7789_v2  ;;  %v1332_v33 = vsel %vm1305_vm5, %v1299_v25, %v7811_v19  ;;  %v7834_v46 = vld [vmem:[#allocation147_spill] sm:$0xff]  ;;  %v7837_v19 = vld [vmem:[#allocation101_spill] sm:$0xff] }
 0x246   : > { %v1523_v8 = vsel %vm1503_vm10, %v1490_v1, %v1215_v59  ;;  %v1522_v27 = vsel %vm1503_vm10, %v1489_v56, %v1213_v50  ;;  %v7790_v1 = vld [vmem:[#allocation154_spill] sm:$0xff]  ;;  %v7791_v59 = vld [vmem:[#allocation165_spill] sm:$0xff]  ;;  %v1365_v61 = vsel %vm1338_vm4, %v1332_v33, %v7813_v30  ;;  %v7835_v63 = vld [vmem:[#allocation67_spill] sm:$0xff] }
 0x247   : > { %3782 = vmatprep.mubr.msk.f32.mxu0 %vm1548_vm11, %v1522_v27  ;;  %v1428_v56 = vsel %vm1404_vm7, %v1395_v6, %v7790_v1  ;;  %v1460_v50 = vsel %vm1437_vm8, %v1427_v43, %v7791_v59  ;;  %v7815_v1 = vld [vmem:[#allocation142_spill] sm:$0xff]  ;;  %v7816_v59 = vld [vmem:[#allocation145_spill] sm:$0xff]  ;;  %v7836_v42 = vld [vmem:[#allocation75_spill] sm:$0xff] }
 0x248   : > { %3783 = vmatmul.mubr.msk.f32.gmra.mrb[18].mxu0 %vm1548_vm11, %v1523_v8  ;;  %v7792_v8 = vld [vmem:[#allocation168_spill] sm:$0xff]  ;;  %v7839_v30 = vld [vmem:[#allocation102_spill] sm:$0xff] }
 0x249   : > { %v1126_v60 = vpop.permute.xlu0 %1125  ;;  %v1124_v3 = vpop.permute.xlu1 %1123  ;;  %v1461_v27 = vsel %vm1437_vm8, %v1428_v56, %v7792_v8  ;;  %v1398_v56 = vsel %vm1371_vm6, %v1365_v61, %v7815_v1  ;;  %v7817_v8 = vld [vmem:[#allocation155_spill] sm:$0xff] }
 0x24a   : > { %v1492_v9 = vsel %vm1470_vm9, %v1459_v51, %v1126_v60  ;;  %v1491_v44 = vsel %vm1470_vm9, %v1458_v54, %v1124_v3  ;;  %v7798_v60 = vld [vmem:[#allocation96_spill] sm:$0xff]  ;;  %v1429_v51 = vsel %vm1404_vm7, %v1396_v62, %v7803_v40  ;;  %v7826_v62 = vld [vmem:[#allocation63_spill] sm:$0xff]  ;;  %v7828_v40 = vld [vmem:[#allocation157_spill] sm:$0xff] }
 0x24b   : > { %v1331_v3 = vsel %vm1305_vm5, %v1298_v49, %v7798_v60  ;;  %v1301_v60 = vsel %vm1272_vm3, %v7822_v17, %v7821_v23 }
 0x24c   : > { %v1364_v57 = vsel %vm1338_vm4, %v1331_v3, %v7800_v4  ;;  %v7823_v3 = vld [vmem:[#allocation99_spill] sm:$0xff] }
 0x24d   : > { %v1219_v24 = vpop.permute.xlu0 %1218  ;;  %v1217_v11 = vpop.permute.xlu1 %1216  ;;  %v1397_v54 = vsel %vm1371_vm6, %v1364_v57, %v7802_v58  ;;  %v1334_v38 = vsel %vm1305_vm5, %v1301_v60, %v7823_v3  ;;  %v7827_v58 = vld [vmem:[#allocation72_spill] sm:$0xff] }
 0x24e   : > { %v1525_v31 = vsel %vm1503_vm10, %v1492_v9, %v1219_v24  ;;  %v1524_v45 = vsel %vm1503_vm10, %v1491_v44, %v1217_v11  ;;  %v7804_v9 = vld [vmem:[#allocation156_spill] sm:$0xff]  ;;  %v7805_v24 = vld [vmem:[#allocation167_spill] sm:$0xff]  ;;  %v1367_v4 = vsel %vm1338_vm4, %v1334_v38, %v7824_v7 }
 0x24f   : > { %3785 = vmatprep.mubr.msk.f32.mxu0 %vm1548_vm11, %v1524_v45  ;;  %v1430_v44 = vsel %vm1404_vm7, %v1397_v54, %v7804_v9  ;;  %v1462_v11 = vsel %vm1437_vm8, %v1429_v51, %v7805_v24  ;;  %v1302_v54 = vsel %vm1272_vm3, %v7827_v58, %v7826_v62  ;;  %v7829_v9 = vld [vmem:[#allocation100_spill] sm:$0xff]  ;;  %v7830_v24 = vld [vmem:[#allocation70_spill] sm:$0xff] }
 0x250   : > { %3786 = vmatmul.mubr.msk.f32.gmra.mrb[20].mxu0 %vm1548_vm11, %v1525_v31  ;;  %v7806_v31 = vld [vmem:[#allocation170_spill] sm:$0xff] }
 0x251   : > { %v1130_v39 = vpop.permute.xlu0 %1129  ;;  %v1128_v16 = vpop.permute.xlu1 %1127  ;;  %v1463_v45 = vsel %vm1437_vm8, %v1430_v44, %v7806_v31  ;;  %v1335_v44 = vsel %vm1305_vm5, %v1302_v54, %v7829_v9  ;;  %v7831_v31 = vld [vmem:[#allocation3_spill] sm:$0xff] }
 0x252   : > { %v1494_v10 = vsel %vm1470_vm9, %v1461_v27, %v1130_v39  ;;  %v1493_v47 = vsel %vm1470_vm9, %v1460_v50, %v1128_v16  ;;  %v7812_v39 = vld [vmem:[#allocation98_spill] sm:$0xff]  ;;  %v1431_v27 = vsel %vm1404_vm7, %v1398_v56, %v7817_v8 }
 0x253   : > { %v1333_v16 = vsel %vm1305_vm5, %v1300_v28, %v7812_v39  ;;  %v1304_v28 = vsel %vm1272_vm3, %v7836_v42, %v7835_v63  ;;  %v7838_v39 = vld [vmem:[#allocation160_spill] sm:$0xff]  ;;  %v7842_v56 = vld [vmem:[#allocation146_spill] sm:$0xff] }
 0x254   : > { %v1366_v6 = vsel %vm1338_vm4, %v1333_v16, %v7814_v22  ;;  %v1337_v61 = vsel %vm1305_vm5, %v1304_v28, %v7839_v30  ;;  %v7840_v22 = vld [vmem:[#allocation4_spill] sm:$0xff] }
 0x255   : > { %v1223_v41 = vpop.permute.xlu0 %1222  ;;  %v1221_v12 = vpop.permute.xlu1 %1220  ;;  %v1399_v50 = vsel %vm1371_vm6, %v1366_v6, %v7816_v59 }
 0x256   : > { %v1527_v55 = vsel %vm1503_vm10, %v1494_v10, %v1223_v41  ;;  %v1526_v18 = vsel %vm1503_vm10, %v1493_v47, %v1221_v12  ;;  %v7818_v10 = vld [vmem:[#allocation158_spill] sm:$0xff]  ;;  %v7819_v41 = vld [vmem:[#allocation169_spill] sm:$0xff] }
 0x257   : > { %3788 = vmatprep.mubr.msk.f32.mxu0 %vm1548_vm11, %v1526_v18  ;;  %v1432_v47 = vsel %vm1404_vm7, %v1399_v50, %v7818_v10  ;;  %v1464_v12 = vsel %vm1437_vm8, %v1431_v27, %v7819_v41  ;;  %v7844_v10 = vld [vmem:[#allocation148_spill] sm:$0xff] }
 0x258   : > { %3789 = vmatmul.mubr.msk.f32.gmra.mrb[22].mxu0 %vm1548_vm11, %v1527_v55  ;;  %v7820_v55 = vld [vmem:[#allocation171_spill] sm:$0xff] }
 0x259   : > { %v1134_v37 = vpop.permute.xlu0 %1133  ;;  %v1132_v52 = vpop.permute.xlu1 %1131  ;;  %v1465_v18 = vsel %vm1437_vm8, %v1432_v47, %v7820_v55 }
 0x25a   : > { %v1496_v53 = vsel %vm1470_vm9, %v1463_v45, %v1134_v37  ;;  %v1495_v48 = vsel %vm1470_vm9, %v1462_v11, %v1132_v52  ;;  %v7825_v52 = vld [vmem:[#allocation144_spill] sm:$0xff]  ;;  %v1368_v45 = vsel %vm1338_vm4, %v1335_v44, %v7831_v31 }
 0x25b   : > { %v1400_v5 = vsel %vm1371_vm6, %v1367_v4, %v7825_v52  ;;  %v1401_v26 = vsel %vm1371_vm6, %v1368_v45, %v7834_v46 }
 0x25c   : > { %v1433_v51 = vsel %vm1404_vm7, %v1400_v5, %v7828_v40  ;;  %v1434_v16 = vsel %vm1404_vm7, %v1401_v26, %v7838_v39 }
 0x25d   : > { %v1227_v13 = vpop.permute.xlu0 %1226  ;;  %v1225_v20 = vpop.permute.xlu1 %1224  ;;  %v1466_v11 = vsel %vm1437_vm8, %v1433_v51, %v7830_v24 }
 0x25e   : > { %v1529_v0 = vsel %vm1503_vm10, %v1496_v53, %v1227_v13  ;;  %v1528_v34 = vsel %vm1503_vm10, %v1495_v48, %v1225_v20  ;;  %v7832_v20 = vld [vmem:[#allocation66_spill] sm:$0xff] }
 0x25f   : > { %3791 = vmatprep.mubr.msk.f32.mxu0 %vm1548_vm11, %v1528_v34 }
 0x260   : > { %3792 = vmatmul.mubr.msk.f32.gmra.mrb[24].mxu0 %vm1548_vm11, %v1529_v0  ;;  %v7833_v0 = vld [vmem:[#allocation73_spill] sm:$0xff] }
 0x261   : > { %v1138_v2 = vpop.permute.xlu0 %1137  ;;  %v1136_v43 = vpop.permute.xlu1 %1135  ;;  %v1303_v34 = vsel %vm1272_vm3, %v7833_v0, %v7832_v20 }
 0x262   : > { %v1498_v32 = vsel %vm1470_vm9, %v1465_v18, %v1138_v2  ;;  %v1497_v14 = vsel %vm1470_vm9, %v1464_v12, %v1136_v43  ;;  %v1336_v33 = vsel %vm1305_vm5, %v1303_v34, %v7837_v19  ;;  %v7841_v43 = vld [vmem:[#allocation6_spill] sm:$0xff]  ;;  %v7845_v18 = vld [vmem:[#allocation159_spill] sm:$0xff] }
 0x263   : > { %v1369_v6 = vsel %vm1338_vm4, %v1336_v33, %v7840_v22  ;;  %v1370_v1 = vsel %vm1338_vm4, %v1337_v61, %v7841_v43 }
 0x264   : > { %v1402_v59 = vsel %vm1371_vm6, %v1369_v6, %v7842_v56  ;;  %v1403_v47 = vsel %vm1371_vm6, %v1370_v1, %v7844_v10 }
 0x265   : > { %v1231_v29 = vpop.permute.xlu0 %1230  ;;  %v1229_v35 = vpop.permute.xlu1 %1228 }
 0x266   : > { %v1531_v15 = vsel %vm1503_vm10, %v1498_v32, %v1231_v29  ;;  %v1530_v49 = vsel %vm1503_vm10, %v1497_v14, %v1229_v35  ;;  %v1435_v32 = vsel %vm1404_vm7, %v1402_v59, %v7845_v18  ;;  %v7846_v14 = vld [vmem:[#allocation161_spill] sm:$0xff] }
 0x267   : > { %3794 = vmatprep.mubr.msk.f32.mxu0 %vm1548_vm11, %v1530_v49  ;;  %v1436_v29 = vsel %vm1404_vm7, %v1403_v47, %v7846_v14 }
 0x268   : > { %3795 = vmatmul.mubr.msk.f32.gmra.mrb[26].mxu0 %vm1548_vm11, %v1531_v15 }
 0x269   : > { %v1140_v57 = vpop.permute.xlu0 %1139  ;;  %v1046_v37 = vpop.permute.xlu1 %1045 }
 0x26a   : > { %v1499_v53 = vsel %vm1470_vm9, %v1466_v11, %v1140_v57  ;;  %v1467_v2 = vsel %vm1437_vm8, %v1434_v16, %v1046_v37  ;;  %v5779_v57 = vld [vmem:[%s7306_s2] ss:$0 sm:$0xff] }
 0x26d   : > { %v1233_v48 = vpop.permute.xlu0 %1232  ;;  %v1142_v13 = vpop.permute.xlu1 %1141 }
 0x26e   : > { %v1532_v25 = vsel %vm1503_vm10, %v1499_v53, %v1233_v48  ;;  %v1500_v50 = vsel %vm1470_vm9, %v1467_v2, %v1142_v13 }
 0x26f   : > { %3797 = vmatprep.mubr.msk.f32.mxu0 %vm1548_vm11, %v1532_v25 }
 0x271   : > { %v5740_v8 = vpop.permute.xlu0 %3900  ;;  %v1235_v27 = vpop.permute.xlu1 %1234 }
 0x272   : > { %7843 = vst [vmem:[#allocation7_spill] sm:$0xff] %v5740_v8  ;;  %v7392_v41 = vunpack.i.h.bf16 %v5740_v8  ;;  %v7393_v12 = vunpack.i.l.bf16 %v5740_v8  ;;  %v1533_v55 = vsel %vm1503_vm10, %v1500_v50, %v1235_v27 }
 0x273   : > { %3798 = vmatmul.mubr.msk.f32.gmra.mrb[28].mxu0 %vm1548_vm11, %v1533_v55 }
 0x274   : > { %v1468_v35 = vsel %vm1437_vm8, %v1435_v32, %v7393_v12  ;;  %v1469_v15 = vsel %vm1437_vm8, %v1436_v29, %v7392_v41 }
 0x275   : > { %v5758_v49 = vpop.permute.xlu0 %3905  ;;  %v5760_v23 = vpop.permute.xlu1 %1143 }
 0x276   : > { %7847 = vst [vmem:[#allocation12_spill] sm:$0xff] %v5758_v49  ;;  %7848 = vst [vmem:[#allocation20_spill] sm:$0xff] %v5760_v23  ;;  %v7390_v17 = vunpack.i.h.bf16 %v5758_v49  ;;  %v7391_v60 = vunpack.i.l.bf16 %v5758_v49  ;;  %v1501_v3 = vsel %vm1470_vm9, %v1468_v35, %v5760_v23  ;;  %v1502_v38 = vsel %vm1470_vm9, %v1469_v15, %v5760_v23 }
 0x278   : > { %v1534_v7 = vsel %vm1503_vm10, %v1501_v3, %v7391_v60  ;;  %v1535_v4 = vsel %vm1503_vm10, %v1502_v38, %v7390_v17 }
 0x279   : > { %3800 = vmatprep.mubr.msk.f32.mxu0 %vm1548_vm11, %v1534_v7 }
 0x27a   : > { %3801 = vmatmul.mubr.msk.f32.gmra.mrb[30].mxu0 %vm1548_vm11, %v1535_v4 }
 0x2d4   : > { %v3757_v37 = vpop.f32.mrb[0].mxu0 }
 0x2d5   : > { %v1721_v52 = vadd.f32 %v3757_v37, %v5779_v57  ;;  %v1715_v5 = vpop.f32.mrb[1].mxu0 }
 0x2d6   : > { %v1716_v62 = vadd.f32 %v5779_v57, %v1715_v5 }
 0x2d7   : > { %v5783_v58 = vmax.f32 %v1721_v52, 0.0 }
 0x2d8   : > { %v5785_v54 = vmax.f32 %v1716_v62, 0.0 }
 0x2d9   : > { %2115 = vrot.lane.b32.xlu0 %v5783_v58, %s3937_s20 }
 0x2da   : > { %2113 = vrot.lane.b32.xlu1 %v5785_v54, %s3937_s20 }
 0x2db   : > { %v3760_v40 = vpop.f32.mrb[2].mxu0 }
 0x2dc   : > { %v1731_v51 = vadd.f32 %v3760_v40, %v5779_v57  ;;  %v1725_v9 = vpop.f32.mrb[3].mxu0 }
 0x2dd   : > { %v1726_v44 = vadd.f32 %v5779_v57, %v1725_v9 }
 0x2de   : > { %v5793_v24 = vmax.f32 %v1731_v51, 0.0 }
 0x2df   : > { %v5795_v11 = vmax.f32 %v1726_v44, 0.0 }
 0x2e0   : > { %2119 = vrot.lane.b32.xlu0 %v5793_v24, %s3937_s20 }
 0x2e1   : > { %2117 = vrot.lane.b32.xlu1 %v5795_v11, %s3937_s20 }
 0x2e3   : > { %v3763_v31 = vpop.f32.mrb[4].mxu0 }
 0x2e4   : > { %v1741_v45 = vadd.f32 %v3763_v31, %v5779_v57  ;;  %v1735_v53 = vpop.f32.mrb[5].mxu0 }
 0x2e5   : > { %v1736_v48 = vadd.f32 %v5779_v57, %v1735_v53 }
 0x2e6   : > { %v5803_v13 = vmax.f32 %v1741_v45, 0.0 }
 0x2e7   : > { %v5805_v20 = vmax.f32 %v1736_v48, 0.0 }
 0x2e8   : > { %2123 = vrot.lane.b32.xlu0 %v5803_v13, %s3937_s20 }
 0x2e9   : > { %2121 = vrot.lane.b32.xlu1 %v5805_v20, %s3937_s20 }
 0x2eb   : > { %v3766_v0 = vpop.f32.mrb[6].mxu0 }
 0x2ec   : > { %v1751_v34 = vadd.f32 %v3766_v0, %v5779_v57  ;;  %v1745_v46 = vpop.f32.mrb[7].mxu0 }
 0x2ed   : > { %v1746_v26 = vadd.f32 %v5779_v57, %v1745_v46 }
 0x2ee   : > { %v5813_v25 = vmax.f32 %v1751_v34, 0.0 }
 0x2ef   : > { %v5815_v63 = vmax.f32 %v1746_v26, 0.0 }
 0x2f0   : > { %2127 = vrot.lane.b32.xlu0 %v5813_v25, %s3937_s20 }
 0x2f1   : > { %2125 = vrot.lane.b32.xlu1 %v5815_v63, %s3937_s20 }
 0x2f3   : > { %v3769_v42 = vpop.f32.mrb[8].mxu0 }
 0x2f4   : > { %v1761_v28 = vadd.f32 %v3769_v42, %v5779_v57  ;;  %v1755_v19 = vpop.f32.mrb[9].mxu0 }
 0x2f5   : > { %v1756_v33 = vadd.f32 %v5779_v57, %v1755_v19 }
 0x2f6   : > { %v5823_v39 = vmax.f32 %v1761_v28, 0.0 }
 0x2f7   : > { %v5825_v16 = vmax.f32 %v1756_v33, 0.0 }
 0x2f8   : > { %2131 = vrot.lane.b32.xlu0 %v5823_v39, %s3937_s20 }
 0x2f9   : > { %2129 = vrot.lane.b32.xlu1 %v5825_v16, %s3937_s20 }
 0x2fb   : > { %v3772_v30 = vpop.f32.mrb[10].mxu0 }
 0x2fc   : > { %v1771_v61 = vadd.f32 %v3772_v30, %v5779_v57  ;;  %v1765_v22 = vpop.f32.mrb[11].mxu0 }
 0x2fd   : > { %v1766_v6 = vadd.f32 %v5779_v57, %v1765_v22 }
 0x2fe   : > { %v5833_v2 = vmax.f32 %v1771_v61, 0.0 }
 0x2ff   : > { %v5835_v43 = vmax.f32 %v1766_v6, 0.0 }
 0x300   : > { %2135 = vrot.lane.b32.xlu0 %v5833_v2, %s3937_s20 }
 0x301   : > { %2133 = vrot.lane.b32.xlu1 %v5835_v43, %s3937_s20 }
 0x303   : > { %v3775_v1 = vpop.f32.mrb[12].mxu0 }
 0x304   : > { %v1781_v56 = vadd.f32 %v3775_v1, %v5779_v57  ;;  %v1775_v59 = vpop.f32.mrb[13].mxu0 }
 0x305   : > { %v1776_v50 = vadd.f32 %v5779_v57, %v1775_v59 }
 0x306   : > { %v5843_v27 = vmax.f32 %v1781_v56, 0.0 }
 0x307   : > { %v5845_v10 = vmax.f32 %v1776_v50, 0.0 }
 0x308   : > { %2139 = vrot.lane.b32.xlu0 %v5843_v27, %s3937_s20 }
 0x309   : > { %2137 = vrot.lane.b32.xlu1 %v5845_v10, %s3937_s20 }
 0x30b   : > { %v3778_v47 = vpop.f32.mrb[14].mxu0 }
 0x30c   : > { %v1791_v55 = vadd.f32 %v3778_v47, %v5779_v57  ;;  %v1785_v18 = vpop.f32.mrb[15].mxu0 }
 0x30d   : > { %v1786_v32 = vadd.f32 %v5779_v57, %v1785_v18 }
 0x30e   : > { %v5853_v14 = vmax.f32 %v1791_v55, 0.0 }
 0x30f   : > { %v5855_v29 = vmax.f32 %v1786_v32, 0.0 }
 0x310   : > { %2143 = vrot.lane.b32.xlu0 %v5853_v14, %s3937_s20 }
 0x311   : > { %2141 = vrot.lane.b32.xlu1 %v5855_v29, %s3937_s20  ;;  %v2047_v17 = vrot.slane %v5855_v29, 1 }
 0x313   : > { %v3781_v35 = vpop.f32.mrb[16].mxu0 }
 0x314   : > { %v1801_v15 = vadd.f32 %v3781_v35, %v5779_v57  ;;  %v1795_v3 = vpop.f32.mrb[17].mxu0 }
 0x315   : > { %v1796_v38 = vadd.f32 %v5779_v57, %v1795_v3 }
 0x316   : > { %v5863_v7 = vmax.f32 %v1801_v15, 0.0 }
 0x317   : > { %v5865_v4 = vmax.f32 %v1796_v38, 0.0 }
 0x318   : > { %2147 = vrot.lane.b32.xlu0 %v5863_v7, %s3937_s20 }
 0x319   : > { %2145 = vrot.lane.b32.xlu1 %v5865_v4, %s3937_s20  ;;  %v2050_v41 = vrot.slane %v5865_v4, 1 }
 0x31b   : > { %v3784_v37 = vpop.f32.mrb[18].mxu0 }
 0x31c   : > { %v1811_v52 = vadd.f32 %v3784_v37, %v5779_v57  ;;  %v1805_v5 = vpop.f32.mrb[19].mxu0  ;;  %v2027_v37 = vrot.slane %v5783_v58, 1 }
 0x31d   : > { %v1806_v62 = vadd.f32 %v5779_v57, %v1805_v5 }
 0x31e   : > { %v5873_v40 = vmax.f32 %v1811_v52, 0.0  ;;  %v2026_v52 = vrot.slane %v5785_v54, 1 }
 0x31f   : > { %v5875_v51 = vmax.f32 %v1806_v62, 0.0 }
 0x320   : > { %7849 = vst [vmem:[#allocation13_spill] sm:$0xff] %v5873_v40  ;;  %2151 = vrot.lane.b32.xlu0 %v5873_v40, %s3937_s20 }
 0x321   : > { %2149 = vrot.lane.b32.xlu1 %v5875_v51, %s3937_s20 }
 0x323   : > { %v3787_v9 = vpop.f32.mrb[20].mxu0 }
 0x324   : > { %v1821_v44 = vadd.f32 %v3787_v9, %v5779_v57  ;;  %v1815_v31 = vpop.f32.mrb[21].mxu0 }
 0x325   : > { %v1816_v45 = vadd.f32 %v5779_v57, %v1815_v31  ;;  %v2030_v31 = vrot.slane %v5793_v24, 1 }
 0x326   : > { %v5883_v53 = vmax.f32 %v1821_v44, 0.0  ;;  %v5935_v44 = vsel %vm384_vm0, %v2027_v37, 0.0 }
 0x327   : > { %v5885_v48 = vmax.f32 %v1816_v45, 0.0 }
 0x328   : > { %7850 = vst [vmem:[#allocation17_spill] sm:$0xff] %v5883_v53  ;;  %2155 = vrot.lane.b32.xlu0 %v5883_v53, %s3937_s20 }
 0x329   : > { %7851 = vst [vmem:[#allocation71_spill] sm:$0xff] %v5885_v48  ;;  %2153 = vrot.lane.b32.xlu1 %v5885_v48, %s3937_s20  ;;  %v2056_v49 = vrot.slane %v5885_v48, 1  ;;  %v1955_v48 = vrot.slane %v5843_v27, 7 }
 0x32b   : > { %v3790_v0 = vpop.f32.mrb[22].mxu0 }
 0x32c   : > { %v1831_v34 = vadd.f32 %v3790_v0, %v5779_v57  ;;  %v1825_v46 = vpop.f32.mrb[23].mxu0  ;;  %v5942_v0 = vsel %vm384_vm0, %v2026_v52, %v2027_v37  ;;  %v2035_v37 = vrot.slane %v5815_v63, 1 }
 0x32d   : > { %v1826_v26 = vadd.f32 %v5779_v57, %v1825_v46 }
 0x32e   : > { %v5893_v42 = vmax.f32 %v1831_v34, 0.0  ;;  %v2029_v34 = vrot.slane %v5795_v11, 1 }
 0x32f   : > { %v5895_v28 = vmax.f32 %v1826_v26, 0.0 }
 0x330   : > { %7852 = vst [vmem:[#allocation2_spill] sm:$0xff] %v5893_v42  ;;  %2159 = vrot.lane.b32.xlu0 %v5893_v42, %s3937_s20 }
 0x331   : > { %7853 = vst [vmem:[#allocation15_spill] sm:$0xff] %v5895_v28  ;;  %2157 = vrot.lane.b32.xlu1 %v5895_v28, %s3937_s20  ;;  %v2059_v8 = vrot.slane %v5895_v28, 1 }
 0x333   : > { %v3793_v19 = vpop.f32.mrb[24].mxu0 }
 0x334   : > { %v1841_v33 = vadd.f32 %v3793_v19, %v5779_v57  ;;  %v1835_v30 = vpop.f32.mrb[25].mxu0  ;;  %v5952_v19 = vsel %vm384_vm0, %v2030_v31, 0.0 }
 0x335   : > { %v1836_v61 = vadd.f32 %v5779_v57, %v1835_v30 }
 0x336   : > { %v5903_v22 = vmax.f32 %v1841_v33, 0.0 }
 0x337   : > { %v5905_v6 = vmax.f32 %v1836_v61, 0.0  ;;  %v5960_v61 = vsel %vm384_vm0, %v2029_v34, %v2030_v31 }
 0x338   : > { %7854 = vst [vmem:[#allocation16_spill] sm:$0xff] %v5903_v22  ;;  %2163 = vrot.lane.b32.xlu0 %v5903_v22, %s3937_s20 }
 0x339   : > { %7855 = vst [vmem:[#allocation24_spill] sm:$0xff] %v5905_v6  ;;  %2161 = vrot.lane.b32.xlu1 %v5905_v6, %s3937_s20 }
 0x33b   : > { %v3796_v1 = vpop.f32.mrb[26].mxu0 }
 0x33c   : > { %v1851_v56 = vadd.f32 %v3796_v1, %v5779_v57  ;;  %v1845_v59 = vpop.f32.mrb[27].mxu0  ;;  %v2032_v1 = vrot.slane %v5805_v20, 1 }
 0x33d   : > { %v1846_v50 = vadd.f32 %v5779_v57, %v1845_v59 }
 0x33e   : > { %v5913_v47 = vmax.f32 %v1851_v56, 0.0 }
 0x33f   : > { %v5915_v55 = vmax.f32 %v1846_v50, 0.0 }
 0x340   : > { %7856 = vst [vmem:[#allocation74_spill] sm:$0xff] %v5913_v47  ;;  %2167 = vrot.lane.b32.xlu0 %v5913_v47, %s3937_s20 }
 0x341   : > { %7857 = vst [vmem:[#allocation76_spill] sm:$0xff] %v5915_v55  ;;  %2165 = vrot.lane.b32.xlu1 %v5915_v55, %s3937_s20 }
 0x346   : > { %v3799_v18 = vpop.f32.mrb[28].mxu0 }
 0x347   : > { %v1861_v32 = vadd.f32 %v3799_v18, %v5779_v57  ;;  %v1855_v35 = vpop.f32.mrb[29].mxu0 }
 0x348   : > { %v1856_v15 = vadd.f32 %v5779_v57, %v1855_v35  ;;  %v2036_v35 = vrot.slane %v5813_v25, 1 }
 0x349   : > { %v5923_v3 = vmax.f32 %v1861_v32, 0.0 }
 0x34a   : > { %v5925_v38 = vmax.f32 %v1856_v15, 0.0  ;;  %v5990_v52 = vsel %vm384_vm0, %v2036_v35, 0.0 }
 0x34b   : > { %7858 = vst [vmem:[#allocation103_spill] sm:$0xff] %v5923_v3  ;;  %2171 = vrot.lane.b32.xlu0 %v5923_v3, %s3937_s20 }
 0x34c   : > { %7859 = vst [vmem:[#allocation105_spill] sm:$0xff] %v5925_v38  ;;  %2169 = vrot.lane.b32.xlu1 %v5925_v38, %s3937_s20 }
 0x34d   : > { %v3802_v5 = vpop.f32.mrb[30].mxu0 }
 0x34e   : > { %v1871_v62 = vadd.f32 %v3802_v5, %v5779_v57  ;;  %v1865_v9 = vpop.f32.mrb[31].mxu0  ;;  %v2039_v5 = vrot.slane %v5823_v39, 1 }
 0x34f   : > { %v1866_v45 = vadd.f32 %v5779_v57, %v1865_v9  ;;  %2220 = vrot.lane.b32.xlu0 %v5935_v44, %s3938_s25  ;;  %v2033_v57 = vrot.slane %v5803_v13, 1  ;;  %v2038_v9 = vrot.slane %v5825_v16, 1 }
 0x350   : > { %v5945_v46 = vmax.f32 %v1871_v62, 0.0  ;;  %2218 = vrot.lane.b32.xlu1 %v5942_v0, %s3938_s25  ;;  %v5996_v62 = vsel %vm384_vm0, %v2035_v37, %v2036_v35  ;;  %v6002_v31 = vsel %vm384_vm0, %v2039_v5, 0.0  ;;  %v2044_v35 = vrot.slane %v5845_v10, 1 }
 0x351   : > { %v5949_v26 = vmax.f32 %v1866_v45, 0.0  ;;  %v5978_v32 = vsel %vm384_vm0, %v2033_v57, 0.0  ;;  %v5984_v15 = vsel %vm384_vm0, %v2032_v1, %v2033_v57  ;;  %v2042_v45 = vrot.slane %v5833_v2, 1 }
 0x352   : > { %7860 = vst [vmem:[#allocation5_spill] sm:$0xff] %v5945_v46  ;;  %v2104_v33 = vrot.slane %v5945_v46, 7  ;;  %v7394_v30 = vrot.slane %v5945_v46, 1  ;;  %v6008_v34 = vsel %vm384_vm0, %v2038_v9, %v2039_v5  ;;  %v2041_v57 = vrot.slane %v5835_v43, 1 }
 0x353   : > { %7861 = vst [vmem:[#allocation8_spill] sm:$0xff] %v5949_v26  ;;  %2224 = vrot.lane.b32.xlu0 %v5952_v19, %s3938_s25  ;;  %v7395_v56 = vrot.slane %v5949_v26, 7  ;;  %v2108_v59 = vrot.slane %v5949_v26, 1  ;;  %v2045_v1 = vrot.slane %v5843_v27, 1  ;;  %v2048_v5 = vrot.slane %v5853_v14, 1 }
 0x354   : > { %2222 = vrot.lane.b32.xlu1 %v5960_v61, %s3938_s25  ;;  %v2065_v26 = vrot.slane %v5915_v55, 1  ;;  %v1937_v55 = vrot.slane %v5783_v58, 7 }
 0x355   : > { %v5970_v50 = vsel %vm288_vm1, %v7395_v56, %v2104_v33  ;;  %v5975_v18 = vsel %vm384_vm0, %v2108_v59, %v7394_v30  ;;  %v6014_v33 = vsel %vm384_vm0, %v2042_v45, 0.0  ;;  %v6020_v59 = vsel %vm384_vm0, %v2041_v57, %v2042_v45 }
 0x356   : > { %7862 = vst [vmem:[#allocation18_spill] sm:$0xff] %v5970_v50  ;;  %7863 = vst [vmem:[#allocation25_spill] sm:$0xff] %v5975_v18  ;;  %v6026_v37 = vsel %vm384_vm0, %v2045_v1, 0.0  ;;  %v6032_v9 = vsel %vm384_vm0, %v2044_v35, %v2045_v1  ;;  %v6038_v45 = vsel %vm384_vm0, %v2048_v5, 0.0  ;;  %v2051_v57 = vrot.slane %v5863_v7, 1 }
 0x357   : > { %2228 = vrot.lane.b32.xlu0 %v5978_v32, %s3938_s25  ;;  %v6044_v60 = vsel %vm384_vm0, %v2047_v17, %v2048_v5  ;;  %v2054_v35 = vrot.slane %v5873_v40, 1  ;;  %v2053_v30 = vrot.slane %v5875_v51, 1  ;;  %v2057_v5 = vrot.slane %v5883_v53, 1 }
 0x358   : > { %2226 = vrot.lane.b32.xlu1 %v5984_v15, %s3938_s25  ;;  %v6050_v1 = vsel %vm384_vm0, %v2051_v57, 0.0  ;;  %v6056_v12 = vsel %vm384_vm0, %v2050_v41, %v2051_v57  ;;  %v2060_v57 = vrot.slane %v5893_v42, 1  ;;  %v2062_v18 = vrot.slane %v5905_v6, 1 }
 0x359   : > { %v6062_v17 = vsel %vm384_vm0, %v2054_v35, 0.0  ;;  %v6068_v56 = vsel %vm384_vm0, %v2053_v30, %v2054_v35  ;;  %v6074_v41 = vsel %vm384_vm0, %v2057_v5, 0.0  ;;  %v6080_v23 = vsel %vm384_vm0, %v2056_v49, %v2057_v5 }
 0x35a   : > { %7864 = vst [vmem:[#allocation19_spill] sm:$0xff] %v6062_v17  ;;  %7865 = vst [vmem:[#allocation28_spill] sm:$0xff] %v6068_v56  ;;  %v6086_v30 = vsel %vm384_vm0, %v2060_v57, 0.0  ;;  %v2063_v35 = vrot.slane %v5903_v22, 1  ;;  %v6092_v46 = vsel %vm384_vm0, %v2059_v8, %v2060_v57  ;;  %v2066_v5 = vrot.slane %v5913_v47, 1 }
 0x35b   : > { %2232 = vrot.lane.b32.xlu0 %v5990_v52, %s3938_s25  ;;  %7866 = vst [vmem:[#allocation77_spill] sm:$0xff] %v6074_v41  ;;  %7867 = vst [vmem:[#allocation78_spill] sm:$0xff] %v6080_v23  ;;  %v2069_v57 = vrot.slane %v5923_v3, 1  ;;  %v1946_v42 = vrot.slane %v5813_v25, 7 }
 0x35c   : > { %2230 = vrot.lane.b32.xlu1 %v5996_v62, %s3938_s25  ;;  %7868 = vst [vmem:[#allocation104_spill] sm:$0xff] %v6086_v30  ;;  %7869 = vst [vmem:[#allocation107_spill] sm:$0xff] %v6092_v46  ;;  %v6098_v49 = vsel %vm384_vm0, %v2063_v35, 0.0  ;;  %v6104_v50 = vsel %vm384_vm0, %v2062_v18, %v2063_v35  ;;  %v6110_v8 = vsel %vm384_vm0, %v2066_v5, 0.0  ;;  %v6116_v47 = vsel %vm384_vm0, %v2065_v26, %v2066_v5  ;;  %v6121_v18 = vpop.permute.xlu0 %2115 }
 0x35d   : > { %7870 = vst [vmem:[#allocation9_spill] sm:$0xff] %v6098_v49  ;;  %7871 = vst [vmem:[#allocation10_spill] sm:$0xff] %v6104_v50  ;;  %v1936_v35 = vrot.slane %v5785_v54, 7  ;;  %v6128_v3 = vsel %vm384_vm0, %v2069_v57, 0.0 }
 0x35e   : > { %7872 = vst [vmem:[#allocation22_spill] sm:$0xff] %v6110_v8  ;;  %7873 = vst [vmem:[#allocation29_spill] sm:$0xff] %v6116_v47 }
 0x35f   : > { %2236 = vrot.lane.b32.xlu0 %v6002_v31, %s3938_s25  ;;  %7874 = vst [vmem:[#allocation23_spill] sm:$0xff] %v6128_v3 }
 0x360   : > { %2234 = vrot.lane.b32.xlu1 %v6008_v34, %s3938_s25  ;;  %v6137_v5 = vpop.permute.xlu0 %2119 }
 0x361   : > { %7876 = vst [vmem:[#allocation79_spill] sm:$0xff] %v6137_v5 }
 0x363   : > { %2240 = vrot.lane.b32.xlu0 %v6014_v33, %s3938_s25 }
 0x364   : > { %2238 = vrot.lane.b32.xlu1 %v6020_v59, %s3938_s25 }
 0x367   : > { %2244 = vrot.lane.b32.xlu0 %v6026_v37, %s3938_s25 }
 0x368   : > { %2242 = vrot.lane.b32.xlu1 %v6032_v9, %s3938_s25 }
 0x36b   : > { %2248 = vrot.lane.b32.xlu0 %v6038_v45, %s3938_s25 }
 0x36c   : > { %2246 = vrot.lane.b32.xlu1 %v6044_v60, %s3938_s25 }
 0x36f   : > { %2252 = vrot.lane.b32.xlu0 %v6050_v1, %s3938_s25 }
 0x370   : > { %2250 = vrot.lane.b32.xlu1 %v6056_v12, %s3938_s25 }
 0x373   : > { %2256 = vrot.lane.b32.xlu0 %v6062_v17, %s3938_s25 }
 0x374   : > { %2254 = vrot.lane.b32.xlu1 %v6068_v56, %s3938_s25 }
 0x377   : > { %2260 = vrot.lane.b32.xlu0 %v6074_v41, %s3938_s25 }
 0x378   : > { %2258 = vrot.lane.b32.xlu1 %v6080_v23, %s3938_s25  ;;  %v1949_v23 = vrot.slane %v5823_v39, 7 }
 0x37b   : > { %2264 = vrot.lane.b32.xlu0 %v6086_v30, %s3938_s25  ;;  %v6147_v30 = vsel %vm288_vm1, 0.0, %v1936_v35 }
 0x37c   : > { %2262 = vrot.lane.b32.xlu1 %v6092_v46, %s3938_s25  ;;  %v1945_v46 = vrot.slane %v5815_v63, 7 }
 0x37f   : > { %2268 = vrot.lane.b32.xlu0 %v6098_v49, %s3938_s25  ;;  %v2068_v49 = vrot.slane %v5925_v38, 1  ;;  %v1939_v38 = vrot.slane %v5795_v11, 7 }
 0x380   : > { %2266 = vrot.lane.b32.xlu1 %v6104_v50, %s3938_s25  ;;  %v6125_v50 = vpop.permute.xlu1 %2113 }
 0x381   : > { %v6133_v26 = vsel %vm384_vm0, %v2068_v49, %v2069_v57  ;;  %v6153_v49 = vpop.permute.xlu0 %2123  ;;  %v1942_v57 = vrot.slane %v5805_v20, 7 }
 0x382   : > { %7875 = vst [vmem:[#allocation32_spill] sm:$0xff] %v6133_v26  ;;  %7877 = vst [vmem:[#allocation80_spill] sm:$0xff] %v6153_v49  ;;  %v1952_v49 = vrot.slane %v5833_v2, 7 }
 0x383   : > { %2272 = vrot.lane.b32.xlu0 %v6110_v8, %s3938_s25  ;;  %v6140_v8 = vsel %vm288_vm1, %v1936_v35, %v1937_v55  ;;  %v6163_v35 = vsel %vm288_vm1, 0.0, %v1939_v38 }
 0x384   : > { %2270 = vrot.lane.b32.xlu1 %v6116_v47, %s3938_s25  ;;  %v1940_v47 = vrot.slane %v5793_v24, 7  ;;  %v6144_v22 = vpop.permute.xlu1 %2117 }
 0x385   : > { %v6169_v6 = vpop.permute.xlu0 %2127 }
 0x386   : > { %v6156_v55 = vsel %vm288_vm1, %v1939_v38, %v1940_v47  ;;  %7879 = vst [vmem:[#allocation109_spill] sm:$0xff] %v6169_v6  ;;  %v6179_v38 = vsel %vm288_vm1, 0.0, %v1942_v57  ;;  %v1948_v6 = vrot.slane %v5825_v16, 7 }
 0x387   : > { %2276 = vrot.lane.b32.xlu0 %v6128_v3, %s3938_s25  ;;  %v1943_v3 = vrot.slane %v5803_v13, 7 }
 0x388   : > { %2274 = vrot.lane.b32.xlu1 %v6133_v26, %s3938_s25  ;;  %v6160_v26 = vpop.permute.xlu1 %2121 }
 0x389   : > { %7878 = vst [vmem:[#allocation106_spill] sm:$0xff] %v6160_v26  ;;  %v6172_v47 = vsel %vm288_vm1, %v1942_v57, %v1943_v3  ;;  %v6185_v28 = vpop.permute.xlu0 %2131  ;;  %v6188_v3 = vsel %vm288_vm1, %v1945_v46, %v1946_v42  ;;  %v6195_v57 = vsel %vm288_vm1, 0.0, %v1945_v46  ;;  %v6204_v42 = vsel %vm288_vm1, %v1948_v6, %v1949_v23 }
 0x38a   : > { %7881 = vst [vmem:[#allocation21_spill] sm:$0xff] %v6185_v28  ;;  %v1951_v28 = vrot.slane %v5835_v43, 7  ;;  %v6211_v46 = vsel %vm288_vm1, 0.0, %v1948_v6  ;;  %v1958_v26 = vrot.slane %v5853_v14, 7 }
 0x38b   : > { %2326 = vrot.lane.b32.xlu0 %v6140_v8, %s3939_s26 }
 0x38c   : > { %2324 = vrot.lane.b32.xlu1 %v6147_v30, %s3939_s26  ;;  %v6176_v41 = vpop.permute.xlu1 %2125  ;;  %v6220_v23 = vsel %vm288_vm1, %v1951_v28, %v1952_v49  ;;  %v6227_v6 = vsel %vm288_vm1, 0.0, %v1951_v28 }
 0x38d   : > { %7880 = vst [vmem:[#allocation11_spill] sm:$0xff] %v6176_v41  ;;  %v6201_v41 = vpop.permute.xlu0 %2135  ;;  %7886 = vst [vmem:[#allocation81_spill] sm:$0xff] %v6220_v23 }
 0x38e   : > { %7883 = vst [vmem:[#allocation33_spill] sm:$0xff] %v6201_v41  ;;  %v1954_v41 = vrot.slane %v5845_v10, 7 }
 0x38f   : > { %2330 = vrot.lane.b32.xlu0 %v6156_v55, %s3939_s26 }
 0x390   : > { %2328 = vrot.lane.b32.xlu1 %v6163_v35, %s3939_s26  ;;  %v6192_v53 = vpop.permute.xlu1 %2129  ;;  %v6236_v49 = vsel %vm288_vm1, %v1954_v41, %v1955_v48  ;;  %v6243_v28 = vsel %vm288_vm1, 0.0, %v1954_v41 }
 0x391   : > { %7882 = vst [vmem:[#allocation26_spill] sm:$0xff] %v6192_v53  ;;  %v6217_v53 = vpop.permute.xlu0 %2139  ;;  %7889 = vst [vmem:[#allocation111_spill] sm:$0xff] %v6236_v49 }
 0x392   : > { %7885 = vst [vmem:[#allocation36_spill] sm:$0xff] %v6217_v53  ;;  %v1957_v53 = vrot.slane %v5855_v29, 7  ;;  %7891 = vst [vmem:[#allocation129_spill] sm:$0xff] %v6243_v28 }
 0x393   : > { %2334 = vrot.lane.b32.xlu0 %v6172_v47, %s3939_s26 }
 0x394   : > { %2332 = vrot.lane.b32.xlu1 %v6179_v38, %s3939_s26  ;;  %v6208_v17 = vpop.permute.xlu1 %2133  ;;  %v6252_v48 = vsel %vm288_vm1, %v1957_v53, %v1958_v26  ;;  %v6257_v40 = vsel %vm288_vm1, 0.0, %v1957_v53  ;;  %v3135_v53 = vld [vmem:[%s7307_s3] sm:$0xff]  ;;  %v3136_v26 = vld [vmem:[%s7307_s3 + $0x8] sm:$0xff] }
 0x395   : > { %7884 = vst [vmem:[#allocation27_spill] sm:$0xff] %v6208_v17  ;;  %v6233_v17 = vpop.permute.xlu0 %2143 }
 0x396   : > { %7888 = vst [vmem:[#allocation108_spill] sm:$0xff] %v6233_v17 }
 0x397   : > { %2338 = vrot.lane.b32.xlu0 %v6188_v3, %s3939_s26 }
 0x398   : > { %2336 = vrot.lane.b32.xlu1 %v6195_v57, %s3939_s26  ;;  %v6224_v56 = vpop.permute.xlu1 %2137 }
 0x399   : > { %7887 = vst [vmem:[#allocation82_spill] sm:$0xff] %v6224_v56  ;;  %v6249_v56 = vpop.permute.xlu0 %2147 }
 0x39a   : > { %7892 = vst [vmem:[#allocation30_spill] sm:$0xff] %v6249_v56 }
 0x39b   : > { %2342 = vrot.lane.b32.xlu0 %v6204_v42, %s3939_s26 }
 0x39c   : > { %2340 = vrot.lane.b32.xlu1 %v6211_v46, %s3939_s26  ;;  %v6240_v5 = vpop.permute.xlu1 %2141 }
 0x39d   : > { %7890 = vst [vmem:[#allocation14_spill] sm:$0xff] %v6240_v5  ;;  %v6263_v41 = vpop.permute.xlu0 %2151 }
 0x39e   : > { %7894 = vst [vmem:[#allocation31_spill] sm:$0xff] %v6263_v41 }
 0x39f   : > { %2346 = vrot.lane.b32.xlu0 %v6220_v23, %s3939_s26 }
 0x3a0   : > { %2344 = vrot.lane.b32.xlu1 %v6227_v6, %s3939_s26  ;;  %v6254_v17 = vpop.permute.xlu1 %2145 }
 0x3a1   : > { %7893 = vst [vmem:[#allocation37_spill] sm:$0xff] %v6254_v17  ;;  %v6277_v56 = vpop.permute.xlu0 %2155  ;;  %v3869_v17 = vpack.c.bf16 %v3136_v26, %v3135_v53 }
 0x3a2   : > { %7896 = vst [vmem:[#allocation83_spill] sm:$0xff] %v6277_v56 }
 0x3a3   : > { %2350 = vrot.lane.b32.xlu0 %v6236_v49, %s3939_s26  ;;  %3870 = vmatprep.subr.bf16.mxu1 %v3869_v17 }
 0x3a4   : > { %2348 = vrot.lane.b32.xlu1 %v6243_v28, %s3939_s26  ;;  %v6265_v5 = vpop.permute.xlu1 %2149  ;;  %3872 = vmatpush3.bf16.msra.mxu1 %v3869_v17  ;;  %v3139_v17 = vld [vmem:[%s7307_s3 + $0x20] sm:$0xf] }
 0x3a5   : > { %7895 = vst [vmem:[#allocation40_spill] sm:$0xff] %v6265_v5  ;;  %v6291_v56 = vpop.permute.xlu0 %2159 }
 0x3a6   : > { %7898 = vst [vmem:[#allocation110_spill] sm:$0xff] %v6291_v56 }
 0x3a7   : > { %2354 = vrot.lane.b32.xlu0 %v6252_v48, %s3939_s26 }
 0x3a8   : > { %2352 = vrot.lane.b32.xlu1 %v6257_v40, %s3939_s26  ;;  %v6279_v41 = vpop.permute.xlu1 %2153 }
 0x3a9   : > { %7897 = vst [vmem:[#allocation84_spill] sm:$0xff] %v6279_v41 }
 0x3ab   : > { %2422 = vrot.lane.b32.xlu0 %v5783_v58, %s3940_s27  ;;  %v3137_v58 = vld [vmem:[%s7307_s3 + $0x10] sm:$0xff] }
 0x3ac   : > { %2420 = vrot.lane.b32.xlu1 %v5785_v54, %s3940_s27  ;;  %v3138_v54 = vld [vmem:[%s7307_s3 + $0x18] sm:$0xff]  ;;  %v6293_v26 = vpop.permute.xlu1 %2157 }
 0x3ad   : > { %v3873_v53 = vpack.c.bf16 %v3138_v54, %v3137_v58  ;;  %7899 = vst [vmem:[#allocation113_spill] sm:$0xff] %v6293_v26 }
 0x3af   : > { %2519 = vrot.lane.b32.xlu0 %v5935_v44, %s3941_s28  ;;  %3874 = vmatprep.subr.bf16.mxu1 %v3873_v53  ;;  %v6299_v44 = vpop.permute.xlu0 %2163 }
 0x3b0   : > { %2517 = vrot.lane.b32.xlu1 %v5942_v0, %s3941_s28  ;;  %3876 = vmatpush3.bf16.msra.mxu1 %v3873_v53  ;;  %7900 = vst [vmem:[#allocation128_spill] sm:$0xff] %v6299_v44  ;;  %v6301_v0 = vpop.permute.xlu1 %2161 }
 0x3b1   : > { %7901 = vst [vmem:[#allocation131_spill] sm:$0xff] %v6301_v0  ;;  %3811 = vmatprep.subr.msk.mxu1 %vm1645_vm2, %v3139_v17 }
 0x3b3   : > { %2615 = vrot.lane.b32.xlu0 %v6156_v55, %s3942_s29  ;;  %v6312_v58 = vpop.permute.xlu0 %2167 }
 0x3b4   : > { %2613 = vrot.lane.b32.xlu1 %v6163_v35, %s3942_s29  ;;  %3812 = vmatpush3.msk.msra.mxu1 %vm1645_vm2, %v3139_v17  ;;  %7902 = vst [vmem:[#allocation34_spill] sm:$0xff] %v6312_v58  ;;  %v6314_v54 = vpop.permute.xlu1 %2165 }
 0x3b5   : > { %7903 = vst [vmem:[#allocation41_spill] sm:$0xff] %v6314_v54 }
 0x3b7   : > { %2424 = vrot.lane.b32.xlu0 %v5795_v11, %s3940_s27 }
 0x3b8   : > { %2703 = vrot.lane.b32.xlu1 %v5795_v11, %s3943_s15 }
 0x3bb   : > { %2793 = vrot.lane.b32.xlu0 %v5960_v61, %s3944_s16 }
 0x3bc   : > { %2705 = vrot.lane.b32.xlu1 %v5793_v24, %s3943_s15 }
 0x3bd   : > { %v6320_v53 = vpop.permute.xlu0 %2171 }
 0x3be   : > { %7904 = vst [vmem:[#allocation35_spill] sm:$0xff] %v6320_v53  ;;  %v6322_v44 = vpop.permute.xlu1 %2169 }
 0x3bf   : > { %7905 = vst [vmem:[#allocation44_spill] sm:$0xff] %v6322_v44  ;;  %2521 = vrot.lane.b32.xlu0 %v5960_v61, %s3941_s28 }
 0x3c0   : > { %2426 = vrot.lane.b32.xlu1 %v5793_v24, %s3940_s27 }
 0x3c1   : > { %v6328_v11 = vpop.permute.xlu0 %2220 }
 0x3c2   : > { %v6330_v17 = vpop.permute.xlu1 %2218 }
 0x3c3   : > { %2523 = vrot.lane.b32.xlu0 %v5952_v19, %s3941_s28 }
 0x3c4   : > { %2795 = vrot.lane.b32.xlu1 %v5952_v19, %s3944_s16 }
 0x3c5   : > { %v6336_v58 = vpop.permute.xlu0 %2224 }
 0x3c6   : > { %v6338_v53 = vpop.permute.xlu1 %2222 }
 0x3c7   : > { %2619 = vrot.lane.b32.xlu0 %v6172_v47, %s3942_s29 }
 0x3c8   : > { %2617 = vrot.lane.b32.xlu1 %v6179_v38, %s3942_s29 }
 0x3c9   : > { %v6344_v24 = vpop.permute.xlu0 %2228 }
 0x3ca   : > { %v6346_v61 = vpop.permute.xlu1 %2226 }
 0x3cb   : > { %2428 = vrot.lane.b32.xlu0 %v5805_v20, %s3940_s27 }
 0x3cc   : > { %2707 = vrot.lane.b32.xlu1 %v5805_v20, %s3943_s15 }
 0x3cd   : > { %v6352_v19 = vpop.permute.xlu0 %2232 }
 0x3ce   : > { %v6354_v44 = vpop.permute.xlu1 %2230 }
 0x3cf   : > { %2797 = vrot.lane.b32.xlu0 %v5984_v15, %s3944_s16 }
 0x3d0   : > { %2709 = vrot.lane.b32.xlu1 %v5803_v13, %s3943_s15 }
 0x3d1   : > { %v6360_v54 = vpop.permute.xlu0 %2236 }
 0x3d2   : > { %v6362_v0 = vpop.permute.xlu1 %2234 }
 0x3d3   : > { %2525 = vrot.lane.b32.xlu0 %v5984_v15, %s3941_s28 }
 0x3d4   : > { %2430 = vrot.lane.b32.xlu1 %v5803_v13, %s3940_s27 }
 0x3d5   : > { %v6368_v20 = vpop.permute.xlu0 %2240 }
 0x3d6   : > { %7906 = vst [vmem:[#allocation85_spill] sm:$0xff] %v6368_v20  ;;  %v6370_v56 = vpop.permute.xlu1 %2238 }
 0x3d7   : > { %7907 = vst [vmem:[#allocation86_spill] sm:$0xff] %v6370_v56  ;;  %2527 = vrot.lane.b32.xlu0 %v5978_v32, %s3941_s28 }
 0x3d8   : > { %2799 = vrot.lane.b32.xlu1 %v5978_v32, %s3944_s16 }
 0x3d9   : > { %v6376_v26 = vpop.permute.xlu0 %2244 }
 0x3da   : > { %7908 = vst [vmem:[#allocation112_spill] sm:$0xff] %v6376_v26  ;;  %v6378_v41 = vpop.permute.xlu1 %2242 }
 0x3db   : > { %7909 = vst [vmem:[#allocation115_spill] sm:$0xff] %v6378_v41  ;;  %2623 = vrot.lane.b32.xlu0 %v6188_v3, %s3942_s29 }
 0x3dc   : > { %2621 = vrot.lane.b32.xlu1 %v6195_v57, %s3942_s29 }
 0x3dd   : > { %v6384_v13 = vpop.permute.xlu0 %2248 }
 0x3de   : > { %7910 = vst [vmem:[#allocation130_spill] sm:$0xff] %v6384_v13  ;;  %v6386_v15 = vpop.permute.xlu1 %2246 }
 0x3df   : > { %7911 = vst [vmem:[#allocation133_spill] sm:$0xff] %v6386_v15  ;;  %2432 = vrot.lane.b32.xlu0 %v5815_v63, %s3940_s27 }
 0x3e0   : > { %2711 = vrot.lane.b32.xlu1 %v5815_v63, %s3943_s15 }
 0x3e1   : > { %v6392_v32 = vpop.permute.xlu0 %2252 }
 0x3e2   : > { %7912 = vst [vmem:[#allocation38_spill] sm:$0xff] %v6392_v32  ;;  %v6394_v5 = vpop.permute.xlu1 %2250 }
 0x3e3   : > { %7913 = vst [vmem:[#allocation45_spill] sm:$0xff] %v6394_v5  ;;  %2801 = vrot.lane.b32.xlu0 %v5996_v62, %s3944_s16 }
 0x3e4   : > { %2713 = vrot.lane.b32.xlu1 %v5813_v25, %s3943_s15 }
 0x3e5   : > { %v6400_v26 = vpop.permute.xlu0 %2256 }
 0x3e6   : > { %7914 = vst [vmem:[#allocation39_spill] sm:$0xff] %v6400_v26  ;;  %v6402_v13 = vpop.permute.xlu1 %2254 }
 0x3e7   : > { %7915 = vst [vmem:[#allocation48_spill] sm:$0xff] %v6402_v13  ;;  %2529 = vrot.lane.b32.xlu0 %v5996_v62, %s3941_s28 }
 0x3e8   : > { %2434 = vrot.lane.b32.xlu1 %v5813_v25, %s3940_s27 }
 0x3e9   : > { %v6408_v63 = vpop.permute.xlu0 %2260 }
 0x3ea   : > { %7916 = vst [vmem:[#allocation87_spill] sm:$0xff] %v6408_v63  ;;  %v6410_v32 = vpop.permute.xlu1 %2258 }
 0x3eb   : > { %7917 = vst [vmem:[#allocation88_spill] sm:$0xff] %v6410_v32  ;;  %2531 = vrot.lane.b32.xlu0 %v5990_v52, %s3941_s28 }
 0x3ec   : > { %2803 = vrot.lane.b32.xlu1 %v5990_v52, %s3944_s16 }
 0x3ed   : > { %v6416_v5 = vpop.permute.xlu0 %2264 }
 0x3ee   : > { %7918 = vst [vmem:[#allocation114_spill] sm:$0xff] %v6416_v5  ;;  %v6418_v26 = vpop.permute.xlu1 %2262 }
 0x3ef   : > { %7919 = vst [vmem:[#allocation117_spill] sm:$0xff] %v6418_v26  ;;  %2627 = vrot.lane.b32.xlu0 %v6204_v42, %s3942_s29 }
 0x3f0   : > { %2625 = vrot.lane.b32.xlu1 %v6211_v46, %s3942_s29 }
 0x3f1   : > { %v6424_v25 = vpop.permute.xlu0 %2268 }
 0x3f2   : > { %7920 = vst [vmem:[#allocation132_spill] sm:$0xff] %v6424_v25  ;;  %v6426_v62 = vpop.permute.xlu1 %2266 }
 0x3f3   : > { %7921 = vst [vmem:[#allocation135_spill] sm:$0xff] %v6426_v62  ;;  %2436 = vrot.lane.b32.xlu0 %v5825_v16, %s3940_s27 }
 0x3f4   : > { %2715 = vrot.lane.b32.xlu1 %v5825_v16, %s3943_s15 }
 0x3f5   : > { %v6432_v52 = vpop.permute.xlu0 %2272 }
 0x3f6   : > { %7922 = vst [vmem:[#allocation42_spill] sm:$0xff] %v6432_v52  ;;  %v6434_v5 = vpop.permute.xlu1 %2270 }
 0x3f7   : > { %7923 = vst [vmem:[#allocation49_spill] sm:$0xff] %v6434_v5  ;;  %2805 = vrot.lane.b32.xlu0 %v6008_v34, %s3944_s16 }
 0x3f8   : > { %2717 = vrot.lane.b32.xlu1 %v5823_v39, %s3943_s15 }
 0x3f9   : > { %v6440_v26 = vpop.permute.xlu0 %2276 }
 0x3fa   : > { %7924 = vst [vmem:[#allocation43_spill] sm:$0xff] %v6440_v26  ;;  %v6442_v25 = vpop.permute.xlu1 %2274 }
 0x3fb   : > { %7925 = vst [vmem:[#allocation52_spill] sm:$0xff] %v6442_v25  ;;  %2533 = vrot.lane.b32.xlu0 %v6008_v34, %s3941_s28 }
 0x3fc   : > { %2438 = vrot.lane.b32.xlu1 %v5823_v39, %s3940_s27 }
 0x3fd   : > { %v2327_v16 = vpop.permute.xlu0 %2326 }
 0x3fe   : > { %v2325_v52 = vpop.permute.xlu1 %2324 }
 0x3ff   : > { %2535 = vrot.lane.b32.xlu0 %v6002_v31, %s3941_s28 }
 0x400   : > { %2807 = vrot.lane.b32.xlu1 %v6002_v31, %s3944_s16 }
 0x401   : > { %v6452_v5 = vpop.permute.xlu0 %2330 }
 0x402   : > { %v6454_v62 = vpop.permute.xlu1 %2328 }
 0x403   : > { %2631 = vrot.lane.b32.xlu0 %v6220_v23, %s3942_s29 }
 0x404   : > { %2629 = vrot.lane.b32.xlu1 %v6227_v6, %s3942_s29 }
 0x405   : > { %v6460_v34 = vpop.permute.xlu0 %2334 }
 0x406   : > { %v6462_v39 = vpop.permute.xlu1 %2332 }
 0x407   : > { %2440 = vrot.lane.b32.xlu0 %v5835_v43, %s3940_s27 }
 0x408   : > { %2719 = vrot.lane.b32.xlu1 %v5835_v43, %s3943_s15 }
 0x409   : > { %v6468_v31 = vpop.permute.xlu0 %2338 }
 0x40a   : > { %v6470_v26 = vpop.permute.xlu1 %2336 }
 0x40b   : > { %2809 = vrot.lane.b32.xlu0 %v6020_v59, %s3944_s16 }
 0x40c   : > { %2721 = vrot.lane.b32.xlu1 %v5833_v2, %s3943_s15 }
 0x40d   : > { %v6476_v25 = vpop.permute.xlu0 %2342 }
 0x40e   : > { %v6478_v63 = vpop.permute.xlu1 %2340 }
 0x40f   : > { %2537 = vrot.lane.b32.xlu0 %v6020_v59, %s3941_s28 }
 0x410   : > { %2442 = vrot.lane.b32.xlu1 %v5833_v2, %s3940_s27 }
 0x411   : > { %v6484_v43 = vpop.permute.xlu0 %2346 }
 0x412   : > { %v6486_v32 = vpop.permute.xlu1 %2344 }
 0x413   : > { %2539 = vrot.lane.b32.xlu0 %v6014_v33, %s3941_s28 }
 0x414   : > { %2811 = vrot.lane.b32.xlu1 %v6014_v33, %s3944_s16 }
 0x415   : > { %v6492_v13 = vpop.permute.xlu0 %2350 }
 0x416   : > { %7926 = vst [vmem:[#allocation89_spill] sm:$0xff] %v6492_v13  ;;  %v6494_v15 = vpop.permute.xlu1 %2348 }
 0x417   : > { %7927 = vst [vmem:[#allocation90_spill] sm:$0xff] %v6494_v15  ;;  %2635 = vrot.lane.b32.xlu0 %v6236_v49, %s3942_s29 }
 0x418   : > { %2633 = vrot.lane.b32.xlu1 %v6243_v28, %s3942_s29 }
 0x419   : > { %v6500_v2 = vpop.permute.xlu0 %2354 }
 0x41a   : > { %7928 = vst [vmem:[#allocation116_spill] sm:$0xff] %v6500_v2  ;;  %v6502_v59 = vpop.permute.xlu1 %2352 }
 0x41b   : > { %7929 = vst [vmem:[#allocation119_spill] sm:$0xff] %v6502_v59  ;;  %2444 = vrot.lane.b32.xlu0 %v5845_v10, %s3940_s27 }
 0x41c   : > { %2723 = vrot.lane.b32.xlu1 %v5845_v10, %s3943_s15  ;;  %v2943_v10 = vsel %vm1338_vm4, %v5239_v21, %v2325_v52 }
 0x41d   : > { %v2423_v33 = vpop.permute.xlu0 %2422 }
 0x41e   : > { %v2421_v41 = vpop.permute.xlu1 %2420 }
 0x41f   : > { %2813 = vrot.lane.b32.xlu0 %v6032_v9, %s3944_s16  ;;  %v2975_v20 = vsel %vm1371_vm6, %v2943_v10, %v2421_v41  ;;  %v2944_v41 = vsel %vm1338_vm4, %v5242_v36, %v2327_v16 }
 0x420   : > { %2725 = vrot.lane.b32.xlu1 %v5843_v27, %s3943_s15  ;;  %v2976_v52 = vsel %vm1371_vm6, %v2944_v41, %v2423_v33 }
 0x421   : > { %v2520_v49 = vpop.permute.xlu0 %2519 }
 0x422   : > { %v2518_v28 = vpop.permute.xlu1 %2517 }
 0x423   : > { %2541 = vrot.lane.b32.xlu0 %v6032_v9, %s3941_s28  ;;  %v3007_v9 = vsel %vm1404_vm7, %v2975_v20, %v2518_v28 }
 0x424   : > { %2446 = vrot.lane.b32.xlu1 %v5843_v27, %s3940_s27 }
 0x425   : > { %v2616_v2 = vpop.permute.xlu0 %2615 }
 0x426   : > { %v2614_v59 = vpop.permute.xlu1 %2613 }
 0x427   : > { %2543 = vrot.lane.b32.xlu0 %v6026_v37, %s3941_s28  ;;  %v3039_v27 = vsel %vm1437_vm8, %v3007_v9, %v2614_v59 }
 0x428   : > { %2815 = vrot.lane.b32.xlu1 %v6026_v37, %s3944_s16 }
 0x429   : > { %v2425_v13 = vpop.permute.xlu0 %2424 }
 0x42a   : > { %v2704_v23 = vpop.permute.xlu1 %2703 }
 0x42b   : > { %2639 = vrot.lane.b32.xlu0 %v6252_v48, %s3942_s29  ;;  %v3071_v15 = vsel %vm1470_vm9, %v3039_v27, %v2704_v23  ;;  %v3008_v23 = vsel %vm1404_vm7, %v2976_v52, %v2520_v49  ;;  %v1960_v49 = vrot.slane %v5865_v4, 7 }
 0x42c   : > { %2637 = vrot.lane.b32.xlu1 %v6257_v40, %s3942_s29 }
 0x42d   : > { %v2794_v37 = vpop.permute.xlu0 %2793  ;;  %v6565_v33 = vsel %vm288_vm1, 0.0, %v1960_v49 }
 0x42e   : > { %v2706_v56 = vpop.permute.xlu1 %2705  ;;  %v3103_v21 = vsel %vm1503_vm10, %v3071_v15, %v2794_v37  ;;  %v3040_v15 = vsel %vm1437_vm8, %v3008_v23, %v2616_v2  ;;  %v2883_v2 = vsel %vm1272_vm3, %v6147_v30, %v6125_v50  ;;  %v1961_v50 = vrot.slane %v5863_v7, 7 }
 0x42f   : > { %2448 = vrot.lane.b32.xlu0 %v5855_v29, %s3940_s27  ;;  %3813 = vmatprep.mubr.msk.f32.mxu1 %vm1548_vm11, %v3103_v21 }
 0x430   : > { %2727 = vrot.lane.b32.xlu1 %v5855_v29, %s3943_s15  ;;  %v3072_v29 = vsel %vm1470_vm9, %v3040_v15, %v2706_v56  ;;  %v2913_v56 = vsel %vm1305_vm5, %v2883_v2, %v6330_v17 }
 0x431   : > { %v2522_v28 = vpop.permute.xlu0 %2521 }
 0x432   : > { %v2427_v20 = vpop.permute.xlu1 %2426 }
 0x433   : > { %2817 = vrot.lane.b32.xlu0 %v6044_v60, %s3944_s16 }
 0x434   : > { %2729 = vrot.lane.b32.xlu1 %v5853_v14, %s3943_s15 }
 0x435   : > { %v2524_v59 = vpop.permute.xlu0 %2523 }
 0x436   : > { %v2796_v10 = vpop.permute.xlu1 %2795 }
 0x437   : > { %v3104_v9 = vsel %vm1503_vm10, %v3072_v29, %v2796_v10  ;;  %2545 = vrot.lane.b32.xlu0 %v6044_v60, %s3941_s28  ;;  %v2945_v60 = vsel %vm1338_vm4, %v2913_v56, %v6454_v62  ;;  %v1963_v56 = vrot.slane %v5875_v51, 7 }
 0x438   : > { %2450 = vrot.lane.b32.xlu1 %v5853_v14, %s3940_s27  ;;  %3814 = vmatmul.mubr.msk.f32.vlgmr.msra.gmra.mrb[0].mxu1 %vm1548_vm11, %v3104_v9  ;;  %v2977_v27 = vsel %vm1371_vm6, %v2945_v60, %v2425_v13  ;;  %v6578_v13 = vsel %vm288_vm1, %v1960_v49, %v1961_v50 }
 0x439   : > { %v2620_v36 = vpop.permute.xlu0 %2619  ;;  %v3009_v30 = vsel %vm1404_vm7, %v2977_v27, %v2522_v28  ;;  %v2884_v28 = vsel %vm1272_vm3, %v6140_v8, %v6121_v18 }
 0x43a   : > { %v2618_v16 = vpop.permute.xlu1 %2617  ;;  %v2914_v52 = vsel %vm1305_vm5, %v2884_v28, %v6328_v11 }
 0x43b   : > { %2547 = vrot.lane.b32.xlu0 %v6038_v45, %s3941_s28  ;;  %v3041_v17 = vsel %vm1437_vm8, %v3009_v30, %v2618_v16  ;;  %v2946_v15 = vsel %vm1338_vm4, %v2914_v52, %v6452_v5  ;;  %v7931_v30 = vld [vmem:[#allocation79_spill] sm:$0xff] }
 0x43c   : > { %2819 = vrot.lane.b32.xlu1 %v6038_v45, %s3944_s16  ;;  %v2978_v10 = vsel %vm1371_vm6, %v2946_v15, %v2427_v20  ;;  %v2885_v20 = vsel %vm1272_vm3, %v6163_v35, %v6144_v22 }
 0x43d   : > { %v2429_v14 = vpop.permute.xlu0 %2428  ;;  %v3010_v9 = vsel %vm1404_vm7, %v2978_v10, %v2524_v59  ;;  %v2915_v59 = vsel %vm1305_vm5, %v2885_v20, %v6338_v53  ;;  %v6627_v53 = vsel %vm288_vm1, 0.0, %v1963_v56 }
 0x43e   : > { %v2708_v37 = vpop.permute.xlu1 %2707  ;;  %v3042_v8 = vsel %vm1437_vm8, %v3010_v9, %v2620_v36  ;;  %v2947_v36 = vsel %vm1338_vm4, %v2915_v59, %v6462_v39  ;;  %v7932_v9 = vld [vmem:[#allocation106_spill] sm:$0xff]  ;;  %v7934_v59 = vld [vmem:[#allocation71_spill] sm:$0xff] }
 0x43f   : > { %2356 = vrot.lane.b32.xlu0 %v6565_v33, %s3939_s26  ;;  %v3073_v45 = vsel %vm1470_vm9, %v3041_v17, %v2708_v37  ;;  %v2979_v60 = vsel %vm1371_vm6, %v2947_v36, %v2429_v14  ;;  %v7930_v37 = vld [vmem:[#allocation13_spill] sm:$0xff]  ;;  %v1966_v36 = vrot.slane %v7934_v59, 7 }
 0x440   : > { %2641 = vrot.lane.b32.xlu1 %v6565_v33, %s3942_s29  ;;  %v1964_v50 = vrot.slane %v7930_v37, 7 }
 0x441   : > { %v2798_v62 = vpop.permute.xlu0 %2797 }
 0x442   : > { %v3105_v21 = vsel %vm1503_vm10, %v3073_v45, %v2798_v62  ;;  %v2710_v41 = vpop.permute.xlu1 %2709 }
 0x443   : > { %2731 = vrot.lane.b32.xlu0 %v5865_v4, %s3943_s15  ;;  %3816 = vmatprep.mubr.msk.f32.mxu1 %vm1548_vm11, %v3105_v21  ;;  %v3074_v11 = vsel %vm1470_vm9, %v3042_v8, %v2710_v41  ;;  %v6644_v41 = vsel %vm288_vm1, %v1963_v56, %v1964_v50  ;;  %v2887_v8 = vsel %vm1272_vm3, %v6179_v38, %v7932_v9 }
 0x444   : > { %2643 = vrot.lane.b32.xlu1 %v6578_v13, %s3942_s29 }
 0x445   : > { %v2526_v23 = vpop.permute.xlu0 %2525 }
 0x446   : > { %v2431_v29 = vpop.permute.xlu1 %2430  ;;  %v3011_v22 = vsel %vm1404_vm7, %v2979_v60, %v2526_v23  ;;  %v7936_v60 = vld [vmem:[#allocation80_spill] sm:$0xff] }
 0x447   : > { %2452 = vrot.lane.b32.xlu0 %v5865_v4, %s3940_s27 }
 0x448   : > { %2358 = vrot.lane.b32.xlu1 %v6578_v13, %s3939_s26 }
 0x449   : > { %v2528_v18 = vpop.permute.xlu0 %2527 }
 0x44a   : > { %v2800_v49 = vpop.permute.xlu1 %2799 }
 0x44b   : > { %v3106_v16 = vsel %vm1503_vm10, %v3074_v11, %v2800_v49  ;;  %2821 = vrot.lane.b32.xlu0 %v6056_v12, %s3944_s16  ;;  %v2917_v11 = vsel %vm1305_vm5, %v2887_v8, %v6346_v61 }
 0x44c   : > { %2733 = vrot.lane.b32.xlu1 %v5863_v7, %s3943_s15  ;;  %3817 = vmatmul.mubr.msk.f32.gmra.mrb[2].mxu1 %vm1548_vm11, %v3106_v16 }
 0x44d   : > { %v2624_v4 = vpop.permute.xlu0 %2623 }
 0x44e   : > { %v2622_v5 = vpop.permute.xlu1 %2621 }
 0x44f   : > { %2549 = vrot.lane.b32.xlu0 %v6056_v12, %s3941_s28  ;;  %v3043_v12 = vsel %vm1437_vm8, %v3011_v22, %v2622_v5 }
 0x450   : > { %2454 = vrot.lane.b32.xlu1 %v5863_v7, %s3940_s27 }
 0x451   : > { %v2433_v2 = vpop.permute.xlu0 %2432 }
 0x452   : > { %v2712_v27 = vpop.permute.xlu1 %2711 }
 0x453   : > { %2551 = vrot.lane.b32.xlu0 %v6050_v1, %s3941_s28  ;;  %v3075_v7 = vsel %vm1470_vm9, %v3043_v12, %v2712_v27  ;;  %v2888_v27 = vsel %vm1272_vm3, %v6172_v47, %v7936_v60 }
 0x454   : > { %2823 = vrot.lane.b32.xlu1 %v6050_v1, %s3944_s16  ;;  %v2886_v1 = vsel %vm1272_vm3, %v6156_v55, %v7931_v30  ;;  %v2918_v22 = vsel %vm1305_vm5, %v2888_v27, %v6344_v24 }
 0x455   : > { %v2802_v35 = vpop.permute.xlu0 %2801  ;;  %v2916_v17 = vsel %vm1305_vm5, %v2886_v1, %v6336_v58 }
 0x456   : > { %v3107_v39 = vsel %vm1503_vm10, %v3075_v7, %v2802_v35  ;;  %v2714_v14 = vpop.permute.xlu1 %2713  ;;  %v2948_v62 = vsel %vm1338_vm4, %v2916_v17, %v6460_v34  ;;  %v6692_v7 = vsel %vm288_vm1, 0.0, %v1966_v36  ;;  %v2950_v35 = vsel %vm1338_vm4, %v2918_v22, %v6468_v31 }
 0x457   : > { %2360 = vrot.lane.b32.xlu0 %v6627_v53, %s3939_s26  ;;  %3819 = vmatprep.mubr.msk.f32.mxu1 %vm1548_vm11, %v3107_v39  ;;  %v2980_v28 = vsel %vm1371_vm6, %v2948_v62, %v2431_v29 }
 0x458   : > { %2645 = vrot.lane.b32.xlu1 %v6627_v53, %s3942_s29  ;;  %v3012_v55 = vsel %vm1404_vm7, %v2980_v28, %v2528_v18  ;;  %v7933_v18 = vld [vmem:[#allocation28_spill] sm:$0xff]  ;;  %v7938_v28 = vld [vmem:[#allocation11_spill] sm:$0xff] }
 0x459   : > { %v2530_v45 = vpop.permute.xlu0 %2529  ;;  %v3044_v58 = vsel %vm1437_vm8, %v3012_v55, %v2624_v4  ;;  %v2889_v55 = vsel %vm1272_vm3, %v6195_v57, %v7938_v28  ;;  %v7939_v57 = vld [vmem:[#allocation78_spill] sm:$0xff] }
 0x45a   : > { %v2435_v21 = vpop.permute.xlu1 %2434  ;;  %v3076_v23 = vsel %vm1470_vm9, %v3044_v58, %v2714_v14  ;;  %v7937_v14 = vld [vmem:[#allocation17_spill] sm:$0xff]  ;;  %v2919_v58 = vsel %vm1305_vm5, %v2889_v55, %v6354_v44 }
 0x45b   : > { %2735 = vrot.lane.b32.xlu0 %v5875_v51, %s3943_s15  ;;  %v2982_v50 = vsel %vm1371_vm6, %v2950_v35, %v2435_v21 }
 0x45c   : > { %2647 = vrot.lane.b32.xlu1 %v6644_v41, %s3942_s29 }
 0x45d   : > { %v2532_v52 = vpop.permute.xlu0 %2531 }
 0x45e   : > { %v2804_v34 = vpop.permute.xlu1 %2803  ;;  %v3014_v47 = vsel %vm1404_vm7, %v2982_v50, %v2532_v52  ;;  %v2951_v52 = vsel %vm1338_vm4, %v2919_v58, %v6478_v63 }
 0x45f   : > { %v3108_v15 = vsel %vm1503_vm10, %v3076_v23, %v2804_v34  ;;  %2456 = vrot.lane.b32.xlu0 %v5875_v51, %s3940_s27  ;;  %v2949_v51 = vsel %vm1338_vm4, %v2917_v11, %v6470_v26 }
 0x460   : > { %2362 = vrot.lane.b32.xlu1 %v6644_v41, %s3939_s26  ;;  %3820 = vmatmul.mubr.msk.f32.gmra.mrb[4].mxu1 %vm1548_vm11, %v3108_v15  ;;  %v2981_v16 = vsel %vm1371_vm6, %v2949_v51, %v2433_v2  ;;  %v7935_v2 = vld [vmem:[#allocation19_spill] sm:$0xff] }
 0x461   : > { %v2628_v29 = vpop.permute.xlu0 %2627  ;;  %v3013_v5 = vsel %vm1404_vm7, %v2981_v16, %v2530_v45  ;;  %v7941_v16 = vld [vmem:[#allocation15_spill] sm:$0xff] }
 0x462   : > { %v2626_v10 = vpop.permute.xlu1 %2625  ;;  %v3046_v24 = vsel %vm1437_vm8, %v3014_v47, %v2628_v29 }
 0x463   : > { %2825 = vrot.lane.b32.xlu0 %v7933_v18, %s3944_s16  ;;  %v3045_v38 = vsel %vm1437_vm8, %v3013_v5, %v2626_v10 }
 0x464   : > { %2737 = vrot.lane.b32.xlu1 %v7930_v37, %s3943_s15 }
 0x465   : > { %v2437_v49 = vpop.permute.xlu0 %2436 }
 0x466   : > { %v2716_v4 = vpop.permute.xlu1 %2715  ;;  %v2983_v34 = vsel %vm1371_vm6, %v2951_v52, %v2437_v49 }
 0x467   : > { %2553 = vrot.lane.b32.xlu0 %v7933_v18, %s3941_s28  ;;  %v3077_v61 = vsel %vm1470_vm9, %v3045_v38, %v2716_v4  ;;  %v7940_v18 = vld [vmem:[#allocation109_spill] sm:$0xff]  ;;  %v1969_v4 = vrot.slane %v7941_v16, 7 }
 0x468   : > { %2458 = vrot.lane.b32.xlu1 %v7930_v37, %s3940_s27  ;;  %v1967_v37 = vrot.slane %v7937_v14, 7  ;;  %v2890_v11 = vsel %vm1272_vm3, %v6188_v3, %v7940_v18  ;;  %v7949_v18 = vld [vmem:[#allocation27_spill] sm:$0xff] }
 0x469   : > { %v2806_v20 = vpop.permute.xlu0 %2805  ;;  %v2920_v51 = vsel %vm1305_vm5, %v2890_v11, %v6352_v19  ;;  %v2893_v11 = vsel %vm1272_vm3, %v6227_v6, %v7949_v18 }
 0x46a   : > { %v3109_v26 = vsel %vm1503_vm10, %v3077_v61, %v2806_v20  ;;  %v2718_v56 = vpop.permute.xlu1 %2717  ;;  %v6706_v31 = vsel %vm288_vm1, %v1966_v36, %v1967_v37  ;;  %v2952_v5 = vsel %vm1338_vm4, %v2920_v51, %v6476_v25  ;;  %v7942_v20 = vld [vmem:[#allocation77_spill] sm:$0xff]  ;;  %v6755_v36 = vsel %vm288_vm1, 0.0, %v1969_v4  ;;  %v7950_v51 = vld [vmem:[#allocation16_spill] sm:$0xff] }
 0x46b   : > { %2555 = vrot.lane.b32.xlu0 %v7935_v2, %s3941_s28  ;;  %3822 = vmatprep.mubr.msk.f32.mxu1 %vm1548_vm11, %v3109_v26  ;;  %v3078_v1 = vsel %vm1470_vm9, %v3046_v24, %v2718_v56  ;;  %v7943_v56 = vld [vmem:[#allocation2_spill] sm:$0xff] }
 0x46c   : > { %2827 = vrot.lane.b32.xlu1 %v7935_v2, %s3944_s16  ;;  %v1970_v2 = vrot.slane %v7943_v56, 7 }
 0x46d   : > { %v2534_v12 = vpop.permute.xlu0 %2533 }
 0x46e   : > { %v2439_v39 = vpop.permute.xlu1 %2438  ;;  %v3015_v29 = vsel %vm1404_vm7, %v2983_v34, %v2534_v12  ;;  %v7944_v12 = vld [vmem:[#allocation26_spill] sm:$0xff] }
 0x46f   : > { %2364 = vrot.lane.b32.xlu0 %v6692_v7, %s3939_s26  ;;  %v2984_v61 = vsel %vm1371_vm6, %v2952_v5, %v2439_v39  ;;  %v2891_v35 = vsel %vm1272_vm3, %v6211_v46, %v7944_v12  ;;  %v6769_v39 = vsel %vm288_vm1, %v1969_v4, %v1970_v2  ;;  %v7952_v5 = vld [vmem:[#allocation90_spill] sm:$0xff]  ;;  %v7955_v12 = vld [vmem:[#allocation85_spill] sm:$0xff] }
 0x470   : > { %2649 = vrot.lane.b32.xlu1 %v6692_v7, %s3942_s29 }
 0x471   : > { %v2536_v30 = vpop.permute.xlu0 %2535 }
 0x472   : > { %v2808_v17 = vpop.permute.xlu1 %2807  ;;  %v3016_v3 = vsel %vm1404_vm7, %v2984_v61, %v2536_v30 }
 0x473   : > { %v3110_v45 = vsel %vm1503_vm10, %v3078_v1, %v2808_v17  ;;  %2739 = vrot.lane.b32.xlu0 %v7934_v59, %s3943_s15 }
 0x474   : > { %2651 = vrot.lane.b32.xlu1 %v6706_v31, %s3942_s29  ;;  %3823 = vmatmul.mubr.msk.f32.gmra.mrb[6].mxu1 %vm1548_vm11, %v3110_v45  ;;  %v7945_v45 = vld [vmem:[#allocation107_spill] sm:$0xff] }
 0x475   : > { %v2632_v62 = vpop.permute.xlu0 %2631 }
 0x476   : > { %v2630_v21 = vpop.permute.xlu1 %2629 }
 0x477   : > { %2460 = vrot.lane.b32.xlu0 %v7934_v59, %s3940_s27  ;;  %v3047_v10 = vsel %vm1437_vm8, %v3015_v29, %v2630_v21  ;;  %v3048_v59 = vsel %vm1437_vm8, %v3016_v3, %v2632_v62  ;;  %v7946_v62 = vld [vmem:[#allocation21_spill] sm:$0xff]  ;;  %v7947_v29 = vld [vmem:[#allocation24_spill] sm:$0xff] }
 0x478   : > { %2366 = vrot.lane.b32.xlu1 %v6706_v31, %s3939_s26  ;;  %v2892_v21 = vsel %vm1272_vm3, %v6204_v42, %v7946_v62 }
 0x479   : > { %v2441_v23 = vpop.permute.xlu0 %2440  ;;  %v2922_v28 = vsel %vm1305_vm5, %v2892_v21, %v6360_v54  ;;  %v1972_v54 = vrot.slane %v7947_v29, 7  ;;  %v7958_v21 = vld [vmem:[#allocation76_spill] sm:$0xff] }
 0x47a   : > { %v2720_v15 = vpop.permute.xlu1 %2719  ;;  %v2954_v58 = vsel %vm1338_vm4, %v2922_v28, %v6484_v43  ;;  %v1975_v28 = vrot.slane %v7958_v21, 7 }
 0x47b   : > { %2829 = vrot.lane.b32.xlu0 %v7939_v57, %s3944_s16  ;;  %v3079_v44 = vsel %vm1470_vm9, %v3047_v10, %v2720_v15 }
 0x47c   : > { %2741 = vrot.lane.b32.xlu1 %v7937_v14, %s3943_s15 }
 0x47d   : > { %v2810_v9 = vpop.permute.xlu0 %2809 }
 0x47e   : > { %v3111_v8 = vsel %vm1503_vm10, %v3079_v44, %v2810_v9  ;;  %v2722_v63 = vpop.permute.xlu1 %2721  ;;  %v7948_v44 = vld [vmem:[#allocation104_spill] sm:$0xff] }
 0x47f   : > { %2557 = vrot.lane.b32.xlu0 %v7939_v57, %s3941_s28  ;;  %3825 = vmatprep.mubr.msk.f32.mxu1 %vm1548_vm11, %v3111_v8  ;;  %v3080_v26 = vsel %vm1470_vm9, %v3048_v59, %v2722_v63  ;;  %v6816_v8 = vsel %vm288_vm1, 0.0, %v1972_v54 }
 0x480   : > { %2462 = vrot.lane.b32.xlu1 %v7937_v14, %s3940_s27  ;;  %v2921_v14 = vsel %vm1305_vm5, %v2891_v35, %v6362_v0 }
 0x481   : > { %v2538_v49 = vpop.permute.xlu0 %2537  ;;  %v2953_v37 = vsel %vm1338_vm4, %v2921_v14, %v6486_v32 }
 0x482   : > { %v2443_v38 = vpop.permute.xlu1 %2442  ;;  %v2985_v47 = vsel %vm1371_vm6, %v2953_v37, %v2441_v23  ;;  %v7956_v37 = vld [vmem:[#allocation89_spill] sm:$0xff] }
 0x483   : > { %2559 = vrot.lane.b32.xlu0 %v7942_v20, %s3941_s28  ;;  %v3017_v46 = vsel %vm1404_vm7, %v2985_v47, %v2538_v49  ;;  %v2986_v23 = vsel %vm1371_vm6, %v2954_v58, %v2443_v38  ;;  %v1973_v49 = vrot.slane %v7950_v51, 7  ;;  %v7959_v58 = vld [vmem:[#allocation9_spill] sm:$0xff] }
 0x484   : > { %2831 = vrot.lane.b32.xlu1 %v7942_v20, %s3944_s16 }
 0x485   : > { %v2540_v19 = vpop.permute.xlu0 %2539  ;;  %v6832_v6 = vsel %vm288_vm1, %v1972_v54, %v1973_v49  ;;  %v7962_v54 = vld [vmem:[#allocation74_spill] sm:$0xff] }
 0x486   : > { %v2812_v25 = vpop.permute.xlu1 %2811  ;;  %v3018_v34 = vsel %vm1404_vm7, %v2986_v23, %v2540_v19  ;;  %v6874_v23 = vsel %vm288_vm1, 0.0, %v1975_v28 }
 0x487   : > { %v3112_v60 = vsel %vm1503_vm10, %v3080_v26, %v2812_v25  ;;  %2368 = vrot.lane.b32.xlu0 %v6755_v36, %s3939_s26 }
 0x488   : > { %2653 = vrot.lane.b32.xlu1 %v6755_v36, %s3942_s29  ;;  %3826 = vmatmul.mubr.msk.f32.gmra.mrb[8].mxu1 %vm1548_vm11, %v3112_v60  ;;  %v7953_v60 = vld [vmem:[#allocation33_spill] sm:$0xff] }
 0x489   : > { %v2636_v27 = vpop.permute.xlu0 %2635 }
 0x48a   : > { %v2634_v22 = vpop.permute.xlu1 %2633  ;;  %v3050_v42 = vsel %vm1437_vm8, %v3018_v34, %v2636_v27  ;;  %v7954_v27 = vld [vmem:[#allocation81_spill] sm:$0xff] }
 0x48b   : > { %2743 = vrot.lane.b32.xlu0 %v7941_v16, %s3943_s15  ;;  %v3049_v30 = vsel %vm1437_vm8, %v3017_v46, %v2634_v22  ;;  %v2894_v22 = vsel %vm1272_vm3, %v7954_v27, %v7953_v60  ;;  %v7957_v46 = vld [vmem:[#allocation10_spill] sm:$0xff] }
 0x48c   : > { %2655 = vrot.lane.b32.xlu1 %v6769_v39, %s3942_s29  ;;  %v2924_v35 = vsel %vm1305_vm5, %v2894_v22, %v7955_v12  ;;  %v7969_v22 = vld [vmem:[#allocation29_spill] sm:$0xff] }
 0x48d   : > { %v2445_v50 = vpop.permute.xlu0 %2444 }
 0x48e   : > { %v2724_v24 = vpop.permute.xlu1 %2723 }
 0x48f   : > { %2464 = vrot.lane.b32.xlu0 %v7941_v16, %s3940_s27  ;;  %v3081_v0 = vsel %vm1470_vm9, %v3049_v30, %v2724_v24  ;;  %v7951_v16 = vld [vmem:[#allocation86_spill] sm:$0xff] }
 0x490   : > { %2370 = vrot.lane.b32.xlu1 %v6769_v39, %s3939_s26  ;;  %v2923_v4 = vsel %vm1305_vm5, %v2893_v11, %v7951_v16 }
 0x491   : > { %v2814_v1 = vpop.permute.xlu0 %2813  ;;  %v2955_v38 = vsel %vm1338_vm4, %v2923_v4, %v7952_v5 }
 0x492   : > { %v3113_v17 = vsel %vm1503_vm10, %v3081_v0, %v2814_v1  ;;  %v2726_v32 = vpop.permute.xlu1 %2725  ;;  %v2987_v20 = vsel %vm1371_vm6, %v2955_v38, %v2445_v50  ;;  %v2956_v50 = vsel %vm1338_vm4, %v2924_v35, %v7956_v37 }
 0x493   : > { %2833 = vrot.lane.b32.xlu0 %v7945_v45, %s3944_s16  ;;  %3828 = vmatprep.mubr.msk.f32.mxu1 %vm1548_vm11, %v3113_v17  ;;  %v3082_v57 = vsel %vm1470_vm9, %v3050_v42, %v2726_v32  ;;  %v7960_v42 = vld [vmem:[#allocation82_spill] sm:$0xff] }
 0x494   : > { %2745 = vrot.lane.b32.xlu1 %v7943_v56, %s3943_s15 }
 0x495   : > { %v2542_v55 = vpop.permute.xlu0 %2541 }
 0x496   : > { %v2447_v52 = vpop.permute.xlu1 %2446  ;;  %v3019_v59 = vsel %vm1404_vm7, %v2987_v20, %v2542_v55  ;;  %v7965_v20 = vld [vmem:[#allocation36_spill] sm:$0xff] }
 0x497   : > { %2561 = vrot.lane.b32.xlu0 %v7945_v45, %s3941_s28  ;;  %v2988_v24 = vsel %vm1371_vm6, %v2956_v50, %v2447_v52 }
 0x498   : > { %2466 = vrot.lane.b32.xlu1 %v7943_v56, %s3940_s27 }
 0x499   : > { %v2544_v15 = vpop.permute.xlu0 %2543 }
 0x49a   : > { %v2816_v10 = vpop.permute.xlu1 %2815  ;;  %v3020_v30 = vsel %vm1404_vm7, %v2988_v24, %v2544_v15  ;;  %v7961_v15 = vld [vmem:[#allocation129_spill] sm:$0xff] }
 0x49b   : > { %v3114_v43 = vsel %vm1503_vm10, %v3082_v57, %v2816_v10  ;;  %2563 = vrot.lane.b32.xlu0 %v7948_v44, %s3941_s28  ;;  %v1976_v57 = vrot.slane %v7962_v54, 7  ;;  %v7963_v10 = vld [vmem:[#allocation115_spill] sm:$0xff] }
 0x49c   : > { %2835 = vrot.lane.b32.xlu1 %v7948_v44, %s3944_s16  ;;  %3829 = vmatmul.mubr.msk.f32.gmra.mrb[10].mxu1 %vm1548_vm11, %v3114_v43  ;;  %v7964_v44 = vld [vmem:[#allocation119_spill] sm:$0xff] }
 0x49d   : > { %v2640_v9 = vpop.permute.xlu0 %2639 }
 0x49e   : > { %v2638_v63 = vpop.permute.xlu1 %2637  ;;  %v3052_v0 = vsel %vm1437_vm8, %v3020_v30, %v2640_v9 }
 0x49f   : > { %2372 = vrot.lane.b32.xlu0 %v6816_v8, %s3939_s26  ;;  %v3051_v19 = vsel %vm1437_vm8, %v3019_v59, %v2638_v63 }
 0x4a0   : > { %2657 = vrot.lane.b32.xlu1 %v6816_v8, %s3942_s29 }
 0x4a1   : > { %v2449_v61 = vpop.permute.xlu0 %2448 }
 0x4a2   : > { %v2728_v3 = vpop.permute.xlu1 %2727 }
 0x4a3   : > { %2747 = vrot.lane.b32.xlu0 %v7947_v29, %s3943_s15  ;;  %v3083_v26 = vsel %vm1470_vm9, %v3051_v19, %v2728_v3  ;;  %v7966_v3 = vld [vmem:[#allocation111_spill] sm:$0xff]  ;;  %v7967_v19 = vld [vmem:[#allocation112_spill] sm:$0xff] }
 0x4a4   : > { %2659 = vrot.lane.b32.xlu1 %v6832_v6, %s3942_s29  ;;  %v2896_v59 = vsel %vm1272_vm3, %v7966_v3, %v7965_v20  ;;  %v7977_v20 = vld [vmem:[#allocation32_spill] sm:$0xff] }
 0x4a5   : > { %v2818_v25 = vpop.permute.xlu0 %2817 }
 0x4a6   : > { %v3115_v56 = vsel %vm1503_vm10, %v3083_v26, %v2818_v25  ;;  %v2730_v2 = vpop.permute.xlu1 %2729  ;;  %v2926_v26 = vsel %vm1305_vm5, %v2896_v59, %v7967_v19 }
 0x4a7   : > { %2468 = vrot.lane.b32.xlu0 %v7947_v29, %s3940_s27  ;;  %3831 = vmatprep.mubr.msk.f32.mxu1 %vm1548_vm11, %v3115_v56  ;;  %v3084_v17 = vsel %vm1470_vm9, %v3052_v0, %v2730_v2  ;;  %v2895_v29 = vsel %vm1272_vm3, %v7961_v15, %v7960_v42  ;;  %v7968_v56 = vld [vmem:[#allocation116_spill] sm:$0xff] }
 0x4a8   : > { %2374 = vrot.lane.b32.xlu1 %v6832_v6, %s3939_s26  ;;  %v2925_v43 = vsel %vm1305_vm5, %v2895_v29, %v7963_v10  ;;  %v2958_v2 = vsel %vm1338_vm4, %v2926_v26, %v7968_v56 }
 0x4a9   : > { %v2546_v14 = vpop.permute.xlu0 %2545  ;;  %v2957_v9 = vsel %vm1338_vm4, %v2925_v43, %v7964_v44 }
 0x4aa   : > { %v2451_v47 = vpop.permute.xlu1 %2450  ;;  %v2989_v18 = vsel %vm1371_vm6, %v2957_v9, %v2449_v61 }
 0x4ab   : > { %2837 = vrot.lane.b32.xlu0 %v7957_v46, %s3944_s16  ;;  %v3021_v49 = vsel %vm1404_vm7, %v2989_v18, %v2546_v14  ;;  %v2990_v27 = vsel %vm1371_vm6, %v2958_v2, %v2451_v47  ;;  %v7978_v2 = vld [vmem:[#allocation23_spill] sm:$0xff] }
 0x4ac   : > { %2749 = vrot.lane.b32.xlu1 %v7950_v51, %s3943_s15 }
 0x4ad   : > { %v2548_v1 = vpop.permute.xlu0 %2547 }
 0x4ae   : > { %v2820_v32 = vpop.permute.xlu1 %2819  ;;  %v3022_v12 = vsel %vm1404_vm7, %v2990_v27, %v2548_v1  ;;  %v7971_v1 = vld [vmem:[#allocation22_spill] sm:$0xff] }
 0x4af   : > { %v3116_v45 = vsel %vm1503_vm10, %v3084_v17, %v2820_v32  ;;  %2565 = vrot.lane.b32.xlu0 %v7957_v46, %s3941_s28  ;;  %v7970_v46 = vld [vmem:[#allocation105_spill] sm:$0xff] }
 0x4b0   : > { %2470 = vrot.lane.b32.xlu1 %v7950_v51, %s3940_s27  ;;  %3832 = vmatmul.mubr.msk.f32.gmra.mrb[12].mxu1 %vm1548_vm11, %v3116_v45  ;;  %v6892_v51 = vsel %vm288_vm1, %v1975_v28, %v1976_v57  ;;  %v1978_v30 = vrot.slane %v7970_v46, 7 }
 0x4b1   : > { %v2357_v62 = vpop.permute.xlu0 %2356 }
 0x4b2   : > { %v2642_v55 = vpop.permute.xlu1 %2641  ;;  %v6934_v32 = vsel %vm288_vm1, 0.0, %v1978_v30 }
 0x4b3   : > { %2567 = vrot.lane.b32.xlu0 %v7959_v58, %s3941_s28  ;;  %v3053_v16 = vsel %vm1437_vm8, %v3021_v49, %v2642_v55  ;;  %v7973_v55 = vld [vmem:[#allocation103_spill] sm:$0xff]  ;;  %v7976_v49 = vld [vmem:[#allocation130_spill] sm:$0xff] }
 0x4b4   : > { %2839 = vrot.lane.b32.xlu1 %v7959_v58, %s3944_s16  ;;  %v1979_v58 = vrot.slane %v7973_v55, 7 }
 0x4b5   : > { %v2732_v52 = vpop.permute.xlu0 %2731 }
 0x4b6   : > { %v2644_v34 = vpop.permute.xlu1 %2643  ;;  %v3085_v4 = vsel %vm1470_vm9, %v3053_v16, %v2732_v52  ;;  %v7974_v52 = vld [vmem:[#allocation133_spill] sm:$0xff]  ;;  %v6949_v57 = vsel %vm288_vm1, %v1978_v30, %v1979_v58  ;;  %v7984_v58 = vld [vmem:[#allocation30_spill] sm:$0xff] }
 0x4b7   : > { %2376 = vrot.lane.b32.xlu0 %v6874_v23, %s3939_s26  ;;  %v3054_v35 = vsel %vm1437_vm8, %v3022_v12, %v2644_v34 }
 0x4b8   : > { %2661 = vrot.lane.b32.xlu1 %v6874_v23, %s3942_s29 }
 0x4b9   : > { %v2453_v63 = vpop.permute.xlu0 %2452 }
 0x4ba   : > { %v6889_v11 = vpop.permute.xlu1 %2358 }
 0x4bb   : > { %2751 = vrot.lane.b32.xlu0 %v7958_v21, %s3943_s15 }
 0x4bc   : > { %2663 = vrot.lane.b32.xlu1 %v6892_v51, %s3942_s29 }
 0x4bd   : > { %v2822_v5 = vpop.permute.xlu0 %2821 }
 0x4be   : > { %v3117_v38 = vsel %vm1503_vm10, %v3085_v4, %v2822_v5  ;;  %v2734_v61 = vpop.permute.xlu1 %2733 }
 0x4bf   : > { %2472 = vrot.lane.b32.xlu0 %v7958_v21, %s3940_s27  ;;  %3834 = vmatprep.mubr.msk.f32.mxu1 %vm1548_vm11, %v3117_v38  ;;  %v3086_v37 = vsel %vm1470_vm9, %v3054_v35, %v2734_v61  ;;  %v7972_v21 = vld [vmem:[#allocation14_spill] sm:$0xff] }
 0x4c0   : > { %2378 = vrot.lane.b32.xlu1 %v6892_v51, %s3939_s26  ;;  %v2897_v28 = vsel %vm1272_vm3, %v6257_v40, %v7972_v21 }
 0x4c1   : > { %v2550_v25 = vpop.permute.xlu0 %2549  ;;  %v2927_v34 = vsel %vm1305_vm5, %v2897_v28, %v7974_v52  ;;  %v2900_v52 = vsel %vm1272_vm3, %v6578_v13, %v7984_v58 }
 0x4c2   : > { %v2455_v60 = vpop.permute.xlu1 %2454  ;;  %v2959_v42 = vsel %vm1338_vm4, %v2927_v34, %v2357_v62  ;;  %v7985_v34 = vld [vmem:[#allocation38_spill] sm:$0xff] }
 0x4c3   : > { %2841 = vrot.lane.b32.xlu0 %v7969_v22, %s3944_s16  ;;  %v2991_v29 = vsel %vm1371_vm6, %v2959_v42, %v2453_v63  ;;  %v7975_v63 = vld [vmem:[#allocation108_spill] sm:$0xff]  ;;  %v2930_v42 = vsel %vm1305_vm5, %v2900_v52, %v7985_v34 }
 0x4c4   : > { %2753 = vrot.lane.b32.xlu1 %v7962_v54, %s3943_s15  ;;  %v3023_v40 = vsel %vm1404_vm7, %v2991_v29, %v2550_v25  ;;  %v2898_v18 = vsel %vm1272_vm3, %v6252_v48, %v7975_v63 }
 0x4c5   : > { %v2552_v14 = vpop.permute.xlu0 %2551  ;;  %v2928_v16 = vsel %vm1305_vm5, %v2898_v18, %v7976_v49 }
 0x4c6   : > { %v2824_v50 = vpop.permute.xlu1 %2823  ;;  %v2960_v5 = vsel %vm1338_vm4, %v2928_v16, %v6889_v11 }
 0x4c7   : > { %v3118_v24 = vsel %vm1503_vm10, %v3086_v37, %v2824_v50  ;;  %2569 = vrot.lane.b32.xlu0 %v7969_v22, %s3941_s28  ;;  %v2992_v61 = vsel %vm1371_vm6, %v2960_v5, %v2455_v60  ;;  %v7979_v22 = vld [vmem:[#allocation8_spill] sm:$0xff]  ;;  %v7982_v50 = vld [vmem:[#allocation45_spill] sm:$0xff] }
 0x4c8   : > { %2474 = vrot.lane.b32.xlu1 %v7962_v54, %s3940_s27  ;;  %3835 = vmatmul.mubr.msk.f32.gmra.mrb[14].mxu1 %vm1548_vm11, %v3118_v24  ;;  %v3024_v3 = vsel %vm1404_vm7, %v2992_v61, %v2552_v14  ;;  %v7980_v12 = vrot.slane %v7979_v22, 7  ;;  %v7981_v14 = vld [vmem:[#allocation37_spill] sm:$0xff] }
 0x4c9   : > { %v2361_v47 = vpop.permute.xlu0 %2360  ;;  %v2899_v37 = vsel %vm1272_vm3, %v6565_v33, %v7981_v14  ;;  %v7992_v14 = vld [vmem:[#allocation39_spill] sm:$0xff] }
 0x4ca   : > { %v2646_v0 = vpop.permute.xlu1 %2645  ;;  %v2107_v35 = vsel %vm288_vm1, 0.0, %v7980_v12  ;;  %v2929_v24 = vsel %vm1305_vm5, %v2899_v37, %v7982_v50 }
 0x4cb   : > { %2571 = vrot.lane.b32.xlu0 %v7971_v1, %s3941_s28  ;;  %v3055_v10 = vsel %vm1437_vm8, %v3023_v40, %v2646_v0 }
 0x4cc   : > { %2843 = vrot.lane.b32.xlu1 %v7971_v1, %s3944_s16 }
 0x4cd   : > { %v2736_v17 = vpop.permute.xlu0 %2735 }
 0x4ce   : > { %v2648_v45 = vpop.permute.xlu1 %2647  ;;  %v3087_v43 = vsel %vm1470_vm9, %v3055_v10, %v2736_v17 }
 0x4cf   : > { %2380 = vrot.lane.b32.xlu0 %v6934_v32, %s3939_s26  ;;  %v3056_v48 = vsel %vm1437_vm8, %v3024_v3, %v2648_v45  ;;  %v7983_v45 = vld [vmem:[#allocation18_spill] sm:$0xff] }
 0x4d0   : > { %2665 = vrot.lane.b32.xlu1 %v6934_v32, %s3942_s29 }
 0x4d1   : > { %v2457_v15 = vpop.permute.xlu0 %2456 }
 0x4d2   : > { %v2363_v54 = vpop.permute.xlu1 %2362 }
 0x4d3   : > { %2755 = vrot.lane.b32.xlu0 %v7970_v46, %s3943_s15  ;;  %v2962_v29 = vsel %vm1338_vm4, %v2930_v42, %v2363_v54 }
 0x4d4   : > { %2667 = vrot.lane.b32.xlu1 %v6949_v57, %s3942_s29 }
 0x4d5   : > { %v2826_v62 = vpop.permute.xlu0 %2825 }
 0x4d6   : > { %v3119_v44 = vsel %vm1503_vm10, %v3087_v43, %v2826_v62  ;;  %v2738_v9 = vpop.permute.xlu1 %2737  ;;  %v7986_v43 = vld [vmem:[#allocation25_spill] sm:$0xff] }
 0x4d7   : > { %2476 = vrot.lane.b32.xlu0 %v7970_v46, %s3940_s27  ;;  %3837 = vmatprep.mubr.msk.f32.mxu1 %vm1548_vm11, %v3119_v44  ;;  %v3088_v19 = vsel %vm1470_vm9, %v3056_v48, %v2738_v9  ;;  %v2961_v46 = vsel %vm1338_vm4, %v2929_v24, %v2361_v47  ;;  %v7987_v44 = vld [vmem:[#allocation5_spill] sm:$0xff]  ;;  %v7990_v48 = vld [vmem:[#allocation48_spill] sm:$0xff]  ;;  %v7059_v24 = vld [vmem:[%s7308_s4] ss:$0 sm:$0xff] }
 0x4d8   : > { %2382 = vrot.lane.b32.xlu1 %v6949_v57, %s3939_s26  ;;  %v2993_v0 = vsel %vm1371_vm6, %v2961_v46, %v2457_v15 }
 0x4d9   : > { %v2554_v4 = vpop.permute.xlu0 %2553 }
 0x4da   : > { %v2459_v38 = vpop.permute.xlu1 %2458  ;;  %v3025_v17 = vsel %vm1404_vm7, %v2993_v0, %v2554_v4  ;;  %v7988_v4 = vrot.slane %v7987_v44, 1 }
 0x4db   : > { %2845 = vrot.lane.b32.xlu0 %v7977_v20, %s3944_s16  ;;  %v2994_v10 = vsel %vm1371_vm6, %v2962_v29, %v2459_v38 }
 0x4dc   : > { %2757 = vrot.lane.b32.xlu1 %v7973_v55, %s3943_s15  ;;  %v2112_v5 = vsel %vm384_vm0, %v7988_v4, 0.0 }
 0x4dd   : > { %v2556_v59 = vpop.permute.xlu0 %2555 }
 0x4de   : > { %v2828_v26 = vpop.permute.xlu1 %2827  ;;  %v3026_v62 = vsel %vm1404_vm7, %v2994_v10, %v2556_v59  ;;  %v7993_v10 = vld [vmem:[#allocation84_spill] sm:$0xff] }
 0x4df   : > { %v3120_v25 = vsel %vm1503_vm10, %v3088_v19, %v2828_v26  ;;  %2573 = vrot.lane.b32.xlu0 %v7977_v20, %s3941_s28  ;;  %v7989_v20 = vld [vmem:[#allocation40_spill] sm:$0xff] }
 0x4e0   : > { %2478 = vrot.lane.b32.xlu1 %v7973_v55, %s3940_s27  ;;  %3838 = vmatmul.mubr.msk.f32.gmra.mrb[16].mxu1 %vm1548_vm11, %v3120_v25  ;;  %v2901_v3 = vsel %vm1272_vm3, %v6627_v53, %v7989_v20 }
 0x4e1   : > { %v2365_v11 = vpop.permute.xlu0 %2364  ;;  %v2931_v59 = vsel %vm1305_vm5, %v2901_v3, %v7990_v48 }
 0x4e2   : > { %v2650_v56 = vpop.permute.xlu1 %2649  ;;  %v2963_v19 = vsel %vm1338_vm4, %v2931_v59, %v2365_v11  ;;  %v7996_v59 = vld [vmem:[#allocation87_spill] sm:$0xff] }
 0x4e3   : > { %2575 = vrot.lane.b32.xlu0 %v7978_v2, %s3941_s28  ;;  %v3057_v33 = vsel %vm1437_vm8, %v3025_v17, %v2650_v56 }
 0x4e4   : > { %2847 = vrot.lane.b32.xlu1 %v7978_v2, %s3944_s16 }
 0x4e5   : > { %v2740_v60 = vpop.permute.xlu0 %2739 }
 0x4e6   : > { %v2652_v27 = vpop.permute.xlu1 %2651  ;;  %v3089_v21 = vsel %vm1470_vm9, %v3057_v33, %v2740_v60 }
 0x4e7   : > { %2384 = vrot.lane.b32.xlu0 %v2107_v35, %s3939_s26  ;;  %v3058_v13 = vsel %vm1437_vm8, %v3026_v62, %v2652_v27  ;;  %v7994_v62 = vld [vmem:[#allocation88_spill] sm:$0xff] }
 0x4e8   : > { %2669 = vrot.lane.b32.xlu1 %v2107_v35, %s3942_s29  ;;  %v7991_v35 = vld [vmem:[#allocation31_spill] sm:$0xff] }
 0x4e9   : > { %v2461_v30 = vpop.permute.xlu0 %2460  ;;  %v2902_v11 = vsel %vm1272_vm3, %v6644_v41, %v7991_v35 }
 0x4ea   : > { %v2367_v1 = vpop.permute.xlu1 %2366  ;;  %v2995_v25 = vsel %vm1371_vm6, %v2963_v19, %v2461_v30  ;;  %v2932_v37 = vsel %vm1305_vm5, %v2902_v11, %v7992_v14 }
 0x4eb   : > { %2759 = vrot.lane.b32.xlu0 %v7979_v22, %s3943_s15  ;;  %v2964_v46 = vsel %vm1338_vm4, %v2932_v37, %v2367_v1 }
 0x4ec   : > { %2671 = vrot.lane.b32.xlu1 %v7983_v45, %s3942_s29 }
 0x4ed   : > { %v2830_v28 = vpop.permute.xlu0 %2829 }
 0x4ee   : > { %v3121_v55 = vsel %vm1503_vm10, %v3089_v21, %v2830_v28  ;;  %v2742_v47 = vpop.permute.xlu1 %2741 }
 0x4ef   : > { %2480 = vrot.lane.b32.xlu0 %v7979_v22, %s3940_s27  ;;  %3840 = vmatprep.mubr.msk.f32.mxu1 %vm1548_vm11, %v3121_v55  ;;  %v3090_v63 = vsel %vm1470_vm9, %v3058_v13, %v2742_v47 }
 0x4f0   : > { %2386 = vrot.lane.b32.xlu1 %v7983_v45, %s3939_s26 }
 0x4f1   : > { %v2558_v15 = vpop.permute.xlu0 %2557 }
 0x4f2   : > { %v2463_v40 = vpop.permute.xlu1 %2462  ;;  %v3027_v2 = vsel %vm1404_vm7, %v2995_v25, %v2558_v15 }
 0x4f3   : > { %2849 = vrot.lane.b32.xlu0 %v7986_v43, %s3944_s16  ;;  %v2996_v0 = vsel %vm1371_vm6, %v2964_v46, %v2463_v40 }
 0x4f4   : > { %2761 = vrot.lane.b32.xlu1 %v7987_v44, %s3943_s15 }
 0x4f5   : > { %v2560_v9 = vpop.permute.xlu0 %2559 }
 0x4f6   : > { %v2832_v18 = vpop.permute.xlu1 %2831  ;;  %v3028_v33 = vsel %vm1404_vm7, %v2996_v0, %v2560_v9  ;;  %v7997_v0 = vld [vmem:[#allocation113_spill] sm:$0xff] }
 0x4f7   : > { %v3122_v49 = vsel %vm1503_vm10, %v3090_v63, %v2832_v18  ;;  %2577 = vrot.lane.b32.xlu0 %v7986_v43, %s3941_s28  ;;  %v2903_v43 = vsel %vm1272_vm3, %v6692_v7, %v7993_v10 }
 0x4f8   : > { %2482 = vrot.lane.b32.xlu1 %v7987_v44, %s3940_s27  ;;  %3841 = vmatmul.mubr.msk.f32.gmra.mrb[18].mxu1 %vm1548_vm11, %v3122_v49  ;;  %v2933_v44 = vsel %vm1305_vm5, %v2903_v43, %v7994_v62  ;;  %v7999_v62 = vld [vmem:[#allocation110_spill] sm:$0xff] }
 0x4f9   : > { %v2369_v54 = vpop.permute.xlu0 %2368 }
 0x4fa   : > { %v2654_v16 = vpop.permute.xlu1 %2653  ;;  %v2965_v13 = vsel %vm1338_vm4, %v2933_v44, %v2369_v54  ;;  %v7995_v54 = vld [vmem:[#allocation83_spill] sm:$0xff]  ;;  %v2906_v44 = vsel %vm1272_vm3, %v6769_v39, %v7999_v62 }
 0x4fb   : > { %2579 = vrot.lane.b32.xlu0 %v2112_v5, %s3941_s28  ;;  %v3059_v60 = vsel %vm1437_vm8, %v3027_v2, %v2654_v16  ;;  %v2904_v20 = vsel %vm1272_vm3, %v6706_v31, %v7995_v54 }
 0x4fc   : > { %2851 = vrot.lane.b32.xlu1 %v2112_v5, %s3944_s16  ;;  %v2934_v19 = vsel %vm1305_vm5, %v2904_v20, %v7996_v59  ;;  %v8001_v59 = vld [vmem:[#allocation131_spill] sm:$0xff] }
 0x4fd   : > { %v2744_v38 = vpop.permute.xlu0 %2743 }
 0x4fe   : > { %v2656_v61 = vpop.permute.xlu1 %2655  ;;  %v3091_v27 = vsel %vm1470_vm9, %v3059_v60, %v2744_v38 }
 0x4ff   : > { %v3060_v21 = vsel %vm1437_vm8, %v3028_v33, %v2656_v61  ;;  %v7998_v33 = vld [vmem:[#allocation117_spill] sm:$0xff] }
 0x501   : > { %v2465_v26 = vpop.permute.xlu0 %2464 }
 0x502   : > { %v2371_v56 = vpop.permute.xlu1 %2370  ;;  %v2997_v63 = vsel %vm1371_vm6, %v2965_v13, %v2465_v26  ;;  %v8000_v13 = vld [vmem:[#allocation114_spill] sm:$0xff] }
 0x503   : > { %v2966_v2 = vsel %vm1338_vm4, %v2934_v19, %v2371_v56  ;;  %v2907_v19 = vsel %vm1272_vm3, %v6816_v8, %v8001_v59  ;;  %v8008_v59 = vld [vmem:[#allocation52_spill] sm:$0xff] }
 0x505   : > { %v2834_v22 = vpop.permute.xlu0 %2833 }
 0x506   : > { %v3123_v12 = vsel %vm1503_vm10, %v3091_v27, %v2834_v22  ;;  %v2746_v53 = vpop.permute.xlu1 %2745 }
 0x507   : > { %3843 = vmatprep.mubr.msk.f32.mxu1 %vm1548_vm11, %v3123_v12  ;;  %v3092_v55 = vsel %vm1470_vm9, %v3060_v21, %v2746_v53 }
 0x509   : > { %v2562_v50 = vpop.permute.xlu0 %2561 }
 0x50a   : > { %v2467_v30 = vpop.permute.xlu1 %2466  ;;  %v3029_v49 = vsel %vm1404_vm7, %v2997_v63, %v2562_v50 }
 0x50b   : > { %v3815_v17 = vpop.f32.mrb[0].mxu1  ;;  %v2998_v22 = vsel %vm1371_vm6, %v2966_v2, %v2467_v30 }
 0x50c   : > { %v3318_v45 = vadd.f32 %v3815_v17, %v7059_v24  ;;  %v3312_v41 = vpop.f32.mrb[1].mxu1  ;;  %v2905_v17 = vsel %vm1272_vm3, %v6755_v36, %v7997_v0  ;;  %v8003_v0 = vld [vmem:[#allocation128_spill] sm:$0xff] }
 0x50d   : > { %v3313_v1 = vadd.f32 %v7059_v24, %v3312_v41  ;;  %v2564_v28 = vpop.permute.xlu0 %2563 }
 0x50e   : > { %v3472_v47 = vmax.f32 %v3318_v45, 0.0  ;;  %v2836_v58 = vpop.permute.xlu1 %2835  ;;  %v3030_v53 = vsel %vm1404_vm7, %v2998_v22, %v2564_v28  ;;  %v2935_v45 = vsel %vm1305_vm5, %v2905_v17, %v7998_v33  ;;  %v2908_v17 = vsel %vm1272_vm3, %v6832_v6, %v8003_v0  ;;  %v8004_v33 = vld [vmem:[#allocation132_spill] sm:$0xff] }
 0x50f   : > { %v3471_v52 = vmax.f32 %v3313_v1, 0.0  ;;  %v3124_v34 = vsel %vm1503_vm10, %v3092_v55, %v2836_v58 }
 0x510   : > { %3504 = vst.msk [vmem:[%s7071_s11 + $0x8] sm:$0xff] %vm1305_vm5, %v3472_v47  ;;  %3844 = vmatmul.mubr.msk.f32.gmra.mrb[20].mxu1 %vm1548_vm11, %v3124_v34 }
 0x511   : > { %3503 = vst.msk [vmem:[%s7071_s11] sm:$0xff] %vm1305_vm5, %v3471_v52  ;;  %v2373_v42 = vpop.permute.xlu0 %2372 }
 0x512   : > { %v2658_v15 = vpop.permute.xlu1 %2657  ;;  %v2967_v41 = vsel %vm1338_vm4, %v2935_v45, %v2373_v42  ;;  %v2938_v45 = vsel %vm1305_vm5, %v2908_v17, %v8004_v33  ;;  %v8015_v33 = vld [vmem:[#allocation20_spill] sm:$0xff] }
 0x513   : > { %v3061_v16 = vsel %vm1437_vm8, %v3029_v49, %v2658_v15 }
 0x515   : > { %v2748_v29 = vpop.permute.xlu0 %2747 }
 0x516   : > { %v2660_v40 = vpop.permute.xlu1 %2659  ;;  %v3093_v4 = vsel %vm1470_vm9, %v3061_v16, %v2748_v29 }
 0x517   : > { %v3062_v31 = vsel %vm1437_vm8, %v3030_v53, %v2660_v40 }
 0x519   : > { %v2469_v9 = vpop.permute.xlu0 %2468 }
 0x51a   : > { %v2375_v18 = vpop.permute.xlu1 %2374  ;;  %v2999_v1 = vsel %vm1371_vm6, %v2967_v41, %v2469_v9  ;;  %v2936_v9 = vsel %vm1305_vm5, %v2906_v44, %v8000_v13  ;;  %v8005_v13 = vld [vmem:[#allocation41_spill] sm:$0xff] }
 0x51b   : > { %v2968_v49 = vsel %vm1338_vm4, %v2936_v9, %v2375_v18  ;;  %v2909_v9 = vsel %vm1272_vm3, %v6874_v23, %v8005_v13 }
 0x51d   : > { %v2838_v5 = vpop.permute.xlu0 %2837 }
 0x51e   : > { %v3125_v38 = vsel %vm1503_vm10, %v3093_v4, %v2838_v5  ;;  %v2750_v7 = vpop.permute.xlu1 %2749 }
 0x51f   : > { %v3818_v61 = vpop.f32.mrb[2].mxu1  ;;  %3846 = vmatprep.mubr.msk.f32.mxu1 %vm1548_vm11, %v3125_v38  ;;  %v3094_v11 = vsel %vm1470_vm9, %v3062_v31, %v2750_v7 }
 0x520   : > { %v3328_v3 = vadd.f32 %v3818_v61, %v7059_v24  ;;  %v3322_v48 = vpop.f32.mrb[3].mxu1 }
 0x521   : > { %v3323_v26 = vadd.f32 %v7059_v24, %v3322_v48  ;;  %v2566_v25 = vpop.permute.xlu0 %2565 }
 0x522   : > { %v3474_v60 = vmax.f32 %v3328_v3, 0.0  ;;  %v2471_v27 = vpop.permute.xlu1 %2470  ;;  %v3031_v55 = vsel %vm1404_vm7, %v2999_v1, %v2566_v25  ;;  %v8002_v25 = vld [vmem:[#allocation135_spill] sm:$0xff] }
 0x523   : > { %v3473_v12 = vmax.f32 %v3323_v26, 0.0  ;;  %v3000_v4 = vsel %vm1371_vm6, %v2968_v49, %v2471_v27  ;;  %v2937_v2 = vsel %vm1305_vm5, %v2907_v19, %v8002_v25  ;;  %v8006_v49 = vld [vmem:[#allocation49_spill] sm:$0xff] }
 0x524   : > { %3506 = vst.msk [vmem:[%s7071_s11 + $0x18] sm:$0xff] %vm1305_vm5, %v3474_v60 }
 0x525   : > { %3505 = vst.msk [vmem:[%s7071_s11 + $0x10] sm:$0xff] %vm1305_vm5, %v3473_v12  ;;  %v2568_v35 = vpop.permute.xlu0 %2567 }
 0x526   : > { %v2840_v14 = vpop.permute.xlu1 %2839  ;;  %v3032_v5 = vsel %vm1404_vm7, %v3000_v4, %v2568_v35 }
 0x527   : > { %v3126_v37 = vsel %vm1503_vm10, %v3094_v11, %v2840_v14 }
 0x528   : > { %3847 = vmatmul.mubr.msk.f32.gmra.mrb[22].mxu1 %vm1548_vm11, %v3126_v37 }
 0x529   : > { %v2377_v56 = vpop.permute.xlu0 %2376 }
 0x52a   : > { %v2662_v50 = vpop.permute.xlu1 %2661  ;;  %v2969_v22 = vsel %vm1338_vm4, %v2937_v2, %v2377_v56 }
 0x52b   : > { %v3063_v58 = vsel %vm1437_vm8, %v3031_v55, %v2662_v50 }
 0x52d   : > { %v2752_v46 = vpop.permute.xlu0 %2751 }
 0x52e   : > { %v2664_v30 = vpop.permute.xlu1 %2663  ;;  %v3095_v36 = vsel %vm1470_vm9, %v3063_v58, %v2752_v46 }
 0x52f   : > { %v3064_v38 = vsel %vm1437_vm8, %v3032_v5, %v2664_v30 }
 0x531   : > { %v2473_v21 = vpop.permute.xlu0 %2472 }
 0x532   : > { %v2379_v28 = vpop.permute.xlu1 %2378  ;;  %v3001_v31 = vsel %vm1371_vm6, %v2969_v22, %v2473_v21 }
 0x533   : > { %v3821_v47 = vpop.f32.mrb[4].mxu1  ;;  %v2970_v21 = vsel %vm1338_vm4, %v2938_v45, %v2379_v28 }
 0x534   : > { %v3338_v52 = vadd.f32 %v3821_v47, %v7059_v24  ;;  %v3332_v34 = vpop.f32.mrb[5].mxu1 }
 0x535   : > { %v3333_v15 = vadd.f32 %v7059_v24, %v3332_v34  ;;  %v2842_v29 = vpop.permute.xlu0 %2841 }
 0x536   : > { %v3476_v42 = vmax.f32 %v3338_v52, 0.0  ;;  %v3127_v40 = vsel %vm1503_vm10, %v3095_v36, %v2842_v29  ;;  %v2754_v10 = vpop.permute.xlu1 %2753 }
 0x537   : > { %v3475_v43 = vmax.f32 %v3333_v15, 0.0  ;;  %3849 = vmatprep.mubr.msk.f32.mxu1 %vm1548_vm11, %v3127_v40  ;;  %v3096_v39 = vsel %vm1470_vm9, %v3064_v38, %v2754_v10 }
 0x538   : > { %3508 = vst.msk [vmem:[%s7071_s11 + $0x28] sm:$0xff] %vm1305_vm5, %v3476_v42 }
 0x539   : > { %3507 = vst.msk [vmem:[%s7071_s11 + $0x20] sm:$0xff] %vm1305_vm5, %v3475_v43  ;;  %v2570_v63 = vpop.permute.xlu0 %2569 }
 0x53a   : > { %v2475_v16 = vpop.permute.xlu1 %2474  ;;  %v3033_v14 = vsel %vm1404_vm7, %v3001_v31, %v2570_v63 }
 0x53b   : > { %v3002_v55 = vsel %vm1371_vm6, %v2970_v21, %v2475_v16  ;;  %v2939_v16 = vsel %vm1305_vm5, %v2909_v9, %v8006_v49 }
 0x53d   : > { %v2572_v7 = vpop.permute.xlu0 %2571 }
 0x53e   : > { %v2844_v61 = vpop.permute.xlu1 %2843  ;;  %v3034_v47 = vsel %vm1404_vm7, %v3002_v55, %v2572_v7 }
 0x53f   : > { %v3128_v54 = vsel %vm1503_vm10, %v3096_v39, %v2844_v61 }
 0x540   : > { %3850 = vmatmul.mubr.msk.f32.gmra.mrb[24].mxu1 %vm1548_vm11, %v3128_v54 }
 0x541   : > { %v2381_v20 = vpop.permute.xlu0 %2380 }
 0x542   : > { %v2666_v3 = vpop.permute.xlu1 %2665  ;;  %v2971_v4 = vsel %vm1338_vm4, %v2939_v16, %v2381_v20 }
 0x543   : > { %v3065_v37 = vsel %vm1437_vm8, %v3033_v14, %v2666_v3  ;;  %v8007_v3 = vld [vmem:[#allocation44_spill] sm:$0xff] }
 0x545   : > { %v2756_v48 = vpop.permute.xlu0 %2755 }
 0x546   : > { %v2668_v18 = vpop.permute.xlu1 %2667  ;;  %v3097_v50 = vsel %vm1470_vm9, %v3065_v37, %v2756_v48  ;;  %v2911_v48 = vsel %vm1272_vm3, %v6934_v32, %v8007_v3 }
 0x547   : > { %v3824_v26 = vpop.f32.mrb[6].mxu1  ;;  %v3066_v58 = vsel %vm1437_vm8, %v3034_v47, %v2668_v18  ;;  %v2941_v19 = vsel %vm1305_vm5, %v2911_v48, %v8008_v59 }
 0x548   : > { %v3348_v60 = vadd.f32 %v3824_v26, %v7059_v24  ;;  %v3342_v27 = vpop.f32.mrb[7].mxu1  ;;  %v8009_v26 = vld [vmem:[#allocation34_spill] sm:$0xff] }
 0x549   : > { %v3343_v12 = vadd.f32 %v7059_v24, %v3342_v27  ;;  %v2477_v53 = vpop.permute.xlu0 %2476  ;;  %v2910_v25 = vsel %vm1272_vm3, %v6892_v51, %v8009_v26 }
 0x54a   : > { %v3478_v35 = vmax.f32 %v3348_v60, 0.0  ;;  %v2383_v11 = vpop.permute.xlu1 %2382  ;;  %v3003_v38 = vsel %vm1371_vm6, %v2971_v4, %v2477_v53  ;;  %v8010_v60 = vld [vmem:[#allocation42_spill] sm:$0xff] }
 0x54b   : > { %v3477_v8 = vmax.f32 %v3343_v12, 0.0  ;;  %v2940_v27 = vsel %vm1305_vm5, %v2910_v25, %v8010_v60  ;;  %v8011_v12 = vld [vmem:[#allocation35_spill] sm:$0xff] }
 0x54c   : > { %3510 = vst.msk [vmem:[%s7071_s11 + $0x38] sm:$0xff] %vm1305_vm5, %v3478_v35  ;;  %v2912_v53 = vsel %vm1272_vm3, %v6949_v57, %v8011_v12  ;;  %v2972_v31 = vsel %vm1338_vm4, %v2940_v27, %v2383_v11 }
 0x54d   : > { %3509 = vst.msk [vmem:[%s7071_s11 + $0x30] sm:$0xff] %vm1305_vm5, %v3477_v8  ;;  %v2846_v46 = vpop.permute.xlu0 %2845  ;;  %v8012_v8 = vld [vmem:[#allocation43_spill] sm:$0xff] }
 0x54e   : > { %v3129_v56 = vsel %vm1503_vm10, %v3097_v50, %v2846_v46  ;;  %v2758_v30 = vpop.permute.xlu1 %2757  ;;  %v2942_v51 = vsel %vm1305_vm5, %v2912_v53, %v8012_v8  ;;  %v8013_v50 = vld [vmem:[#allocation7_spill] sm:$0xff] }
 0x54f   : > { %3852 = vmatprep.mubr.msk.f32.mxu1 %vm1548_vm11, %v3129_v56  ;;  %v3098_v34 = vsel %vm1470_vm9, %v3066_v58, %v2758_v30  ;;  %v8014_v46 = vunpack.i.l.bf16 %v8013_v50  ;;  %v8016_v55 = vunpack.i.h.bf16 %v8013_v50 }
 0x551   : > { %v2574_v41 = vpop.permute.xlu0 %2573 }
 0x552   : > { %v2479_v1 = vpop.permute.xlu1 %2478  ;;  %v3035_v39 = vsel %vm1404_vm7, %v3003_v38, %v2574_v41 }
 0x553   : > { %v3004_v37 = vsel %vm1371_vm6, %v2972_v31, %v2479_v1 }
 0x555   : > { %v2576_v52 = vpop.permute.xlu0 %2575 }
 0x556   : > { %v2848_v36 = vpop.permute.xlu1 %2847  ;;  %v3036_v30 = vsel %vm1404_vm7, %v3004_v37, %v2576_v52 }
 0x557   : > { %v3130_v6 = vsel %vm1503_vm10, %v3098_v34, %v2848_v36 }
 0x558   : > { %3853 = vmatmul.mubr.msk.f32.gmra.mrb[26].mxu1 %vm1548_vm11, %v3130_v6  ;;  %v8017_v6 = vld [vmem:[#allocation12_spill] sm:$0xff] }
 0x559   : > { %v2385_v15 = vpop.permute.xlu0 %2384 }
 0x55a   : > { %v2670_v29 = vpop.permute.xlu1 %2669  ;;  %v2973_v2 = vsel %vm1338_vm4, %v2941_v19, %v2385_v15  ;;  %v8018_v15 = vunpack.i.l.bf16 %v8017_v6 }
 0x55b   : > { %v3827_v28 = vpop.f32.mrb[8].mxu1  ;;  %v3067_v61 = vsel %vm1437_vm8, %v3035_v39, %v2670_v29 }
 0x55c   : > { %v3358_v42 = vadd.f32 %v3827_v28, %v7059_v24  ;;  %v3352_v40 = vpop.f32.mrb[9].mxu1 }
 0x55d   : > { %v3353_v10 = vadd.f32 %v7059_v24, %v3352_v40  ;;  %v2760_v43 = vpop.permute.xlu0 %2759 }
 0x55e   : > { %v3480_v62 = vmax.f32 %v3358_v42, 0.0  ;;  %v2672_v44 = vpop.permute.xlu1 %2671  ;;  %v3099_v23 = vsel %vm1470_vm9, %v3067_v61, %v2760_v43  ;;  %v8019_v43 = vunpack.i.h.bf16 %v8017_v6 }
 0x55f   : > { %v3479_v63 = vmax.f32 %v3353_v10, 0.0  ;;  %v3068_v57 = vsel %vm1437_vm8, %v3036_v30, %v2672_v44 }
 0x560   : > { %3512 = vst.msk [vmem:[%s7071_s11 + $0x48] sm:$0xff] %vm1305_vm5, %v3480_v62 }
 0x561   : > { %3511 = vst.msk [vmem:[%s7071_s11 + $0x40] sm:$0xff] %vm1305_vm5, %v3479_v63  ;;  %v2481_v5 = vpop.permute.xlu0 %2480 }
 0x562   : > { %v2387_v7 = vpop.permute.xlu1 %2386  ;;  %v3005_v22 = vsel %vm1371_vm6, %v2973_v2, %v2481_v5 }
 0x563   : > { %v2974_v0 = vsel %vm1338_vm4, %v2942_v51, %v2387_v7 }
 0x565   : > { %v2850_v54 = vpop.permute.xlu0 %2849 }
 0x566   : > { %v3131_v18 = vsel %vm1503_vm10, %v3099_v23, %v2850_v54  ;;  %v2762_v20 = vpop.permute.xlu1 %2761 }
 0x567   : > { %3855 = vmatprep.mubr.msk.f32.mxu1 %vm1548_vm11, %v3131_v18  ;;  %v3100_v41 = vsel %vm1470_vm9, %v3068_v57, %v2762_v20 }
 0x569   : > { %v2578_v32 = vpop.permute.xlu0 %2577 }
 0x56a   : > { %v3037_v35 = vsel %vm1404_vm7, %v3005_v22, %v2578_v32  ;;  %v2483_v14 = vpop.permute.xlu1 %2482 }
 0x56b   : > { %v3069_v56 = vsel %vm1437_vm8, %v3037_v35, %v8014_v46  ;;  %v3006_v11 = vsel %vm1371_vm6, %v2974_v0, %v2483_v14 }
 0x56c   : > { %v3101_v45 = vsel %vm1470_vm9, %v3069_v56, %v8015_v33 }
 0x56d   : > { %v2580_v17 = vpop.permute.xlu0 %2579  ;;  %v3133_v29 = vsel %vm1503_vm10, %v3101_v45, %v8018_v15 }
 0x56e   : > { %v3038_v21 = vsel %vm1404_vm7, %v3006_v11, %v2580_v17  ;;  %v2852_v1 = vpop.permute.xlu1 %2851 }
 0x56f   : > { %v3070_v47 = vsel %vm1437_vm8, %v3038_v21, %v8016_v55  ;;  %v3132_v58 = vsel %vm1503_vm10, %v3100_v41, %v2852_v1  ;;  %v3830_v52 = vpop.f32.mrb[10].mxu1 }
 0x570   : > { %v3368_v34 = vadd.f32 %v3830_v52, %v7059_v24  ;;  %v3362_v36 = vpop.f32.mrb[11].mxu1  ;;  %3856 = vmatmul.mubr.msk.f32.gmra.mrb[28].mxu1 %vm1548_vm11, %v3132_v58  ;;  %v3102_v28 = vsel %vm1470_vm9, %v3070_v47, %v8015_v33 }
 0x571   : > { %v3363_v42 = vadd.f32 %v7059_v24, %v3362_v36  ;;  %3858 = vmatprep.mubr.msk.f32.mxu1 %vm1548_vm11, %v3133_v29  ;;  %v3134_v62 = vsel %vm1503_vm10, %v3102_v28, %v8019_v43 }
 0x572   : > { %v3482_v40 = vmax.f32 %v3368_v34, 0.0 }
 0x573   : > { %v3481_v10 = vmax.f32 %v3363_v42, 0.0 }
 0x574   : > { %3514 = vst.msk [vmem:[%s7071_s11 + $0x58] sm:$0xff] %vm1305_vm5, %v3482_v40  ;;  %3859 = vmatmul.mubr.msk.f32.gmra.mrb[30].mxu1 %vm1548_vm11, %v3134_v62 }
 0x575   : > { %3513 = vst.msk [vmem:[%s7071_s11 + $0x50] sm:$0xff] %vm1305_vm5, %v3481_v10 }
 0x583   : > { %v3833_v44 = vpop.f32.mrb[12].mxu1 }
 0x584   : > { %v3378_v13 = vadd.f32 %v3833_v44, %v7059_v24  ;;  %v3372_v9 = vpop.f32.mrb[13].mxu1 }
 0x585   : > { %v3373_v63 = vadd.f32 %v7059_v24, %v3372_v9 }
 0x586   : > { %v3484_v49 = vmax.f32 %v3378_v13, 0.0 }
 0x587   : > { %v3483_v16 = vmax.f32 %v3373_v63, 0.0 }
 0x588   : > { %3516 = vst.msk [vmem:[%s7071_s11 + $0x68] sm:$0xff] %vm1305_vm5, %v3484_v49 }
 0x589   : > { %3515 = vst.msk [vmem:[%s7071_s11 + $0x60] sm:$0xff] %vm1305_vm5, %v3483_v16 }
 0x59b   : > { %v3836_v4 = vpop.f32.mrb[14].mxu1 }
 0x59c   : > { %v3388_v5 = vadd.f32 %v3836_v4, %v7059_v24  ;;  %v3382_v38 = vpop.f32.mrb[15].mxu1 }
 0x59d   : > { %v3383_v7 = vadd.f32 %v7059_v24, %v3382_v38 }
 0x59e   : > { %v3486_v39 = vmax.f32 %v3388_v5, 0.0 }
 0x59f   : > { %v3485_v61 = vmax.f32 %v3383_v7, 0.0 }
 0x5a0   : > { %3518 = vst.msk [vmem:[%s7071_s11 + $0x78] sm:$0xff] %vm1305_vm5, %v3486_v39 }
 0x5a1   : > { %3517 = vst.msk [vmem:[%s7071_s11 + $0x70] sm:$0xff] %vm1305_vm5, %v3485_v61 }
 0x5b3   : > { %v3839_v23 = vpop.f32.mrb[16].mxu1 }
 0x5b4   : > { %v3398_v54 = vadd.f32 %v3839_v23, %v7059_v24  ;;  %v3392_v3 = vpop.f32.mrb[17].mxu1 }
 0x5b5   : > { %v3393_v48 = vadd.f32 %v7059_v24, %v3392_v3 }
 0x5b6   : > { %v3488_v18 = vmax.f32 %v3398_v54, 0.0 }
 0x5b7   : > { %v3487_v20 = vmax.f32 %v3393_v48, 0.0 }
 0x5b8   : > { %3520 = vst.msk [vmem:[%s7071_s11 + $0x88] sm:$0xff] %vm1305_vm5, %v3488_v18 }
 0x5b9   : > { %3519 = vst.msk [vmem:[%s7071_s11 + $0x80] sm:$0xff] %vm1305_vm5, %v3487_v20 }
 0x5cb   : > { %v3842_v59 = vpop.f32.mrb[18].mxu1 }
 0x5cc   : > { %v3408_v19 = vadd.f32 %v3842_v59, %v7059_v24  ;;  %v3402_v26 = vpop.f32.mrb[19].mxu1 }
 0x5cd   : > { %v3403_v25 = vadd.f32 %v7059_v24, %v3402_v26 }
 0x5ce   : > { %v3490_v2 = vmax.f32 %v3408_v19, 0.0 }
 0x5cf   : > { %v3489_v60 = vmax.f32 %v3403_v25, 0.0 }
 0x5d0   : > { %3522 = vst.msk [vmem:[%s7071_s11 + $0x98] sm:$0xff] %vm1305_vm5, %v3490_v2 }
 0x5d1   : > { %3521 = vst.msk [vmem:[%s7071_s11 + $0x90] sm:$0xff] %vm1305_vm5, %v3489_v60 }
 0x5e3   : > { %v3845_v27 = vpop.f32.mrb[20].mxu1 }
 0x5e4   : > { %v3418_v22 = vadd.f32 %v3845_v27, %v7059_v24  ;;  %v3412_v32 = vpop.f32.mrb[21].mxu1 }
 0x5e5   : > { %v3413_v12 = vadd.f32 %v7059_v24, %v3412_v32 }
 0x5e6   : > { %v3492_v53 = vmax.f32 %v3418_v22, 0.0 }
 0x5e7   : > { %v3491_v31 = vmax.f32 %v3413_v12, 0.0 }
 0x5e8   : > { %3524 = vst.msk [vmem:[%s7071_s11 + $0xa8] sm:$0xff] %vm1305_vm5, %v3492_v53 }
 0x5e9   : > { %3523 = vst.msk [vmem:[%s7071_s11 + $0xa0] sm:$0xff] %vm1305_vm5, %v3491_v31 }
 0x5fb   : > { %v3848_v35 = vpop.f32.mrb[22].mxu1 }
 0x5fc   : > { %v3428_v14 = vadd.f32 %v3848_v35, %v7059_v24  ;;  %v3422_v8 = vpop.f32.mrb[23].mxu1 }
 0x5fd   : > { %v3423_v51 = vadd.f32 %v7059_v24, %v3422_v8 }
 0x5fe   : > { %v3494_v37 = vmax.f32 %v3428_v14, 0.0 }
 0x5ff   : > { %v3493_v50 = vmax.f32 %v3423_v51, 0.0 }
 0x600   : > { %3526 = vst.msk [vmem:[%s7071_s11 + $0xb8] sm:$0xff] %vm1305_vm5, %v3494_v37 }
 0x601   : > { %3525 = vst.msk [vmem:[%s7071_s11 + $0xb0] sm:$0xff] %vm1305_vm5, %v3493_v50 }
 0x613   : > { %v3851_v46 = vpop.f32.mrb[24].mxu1 }
 0x614   : > { %v3438_v56 = vadd.f32 %v3851_v46, %v7059_v24  ;;  %v3432_v30 = vpop.f32.mrb[25].mxu1 }
 0x615   : > { %v3433_v0 = vadd.f32 %v7059_v24, %v3432_v30 }
 0x616   : > { %v3496_v57 = vmax.f32 %v3438_v56, 0.0 }
 0x617   : > { %v3495_v11 = vmax.f32 %v3433_v0, 0.0 }
 0x618   : > { %3528 = vst.msk [vmem:[%s7071_s11 + $0xc8] sm:$0xff] %vm1305_vm5, %v3496_v57 }
 0x619   : > { %3527 = vst.msk [vmem:[%s7071_s11 + $0xc0] sm:$0xff] %vm1305_vm5, %v3495_v11 }
 0x62b   : > { %v3854_v17 = vpop.f32.mrb[26].mxu1 }
 0x62c   : > { %v3448_v33 = vadd.f32 %v3854_v17, %v7059_v24  ;;  %v3442_v45 = vpop.f32.mrb[27].mxu1 }
 0x62d   : > { %v3443_v41 = vadd.f32 %v7059_v24, %v3442_v45 }
 0x62e   : > { %v3498_v21 = vmax.f32 %v3448_v33, 0.0 }
 0x62f   : > { %v3497_v1 = vmax.f32 %v3443_v41, 0.0 }
 0x630   : > { %3530 = vst.msk [vmem:[%s7071_s11 + $0xd8] sm:$0xff] %vm1305_vm5, %v3498_v21 }
 0x631   : > { %3529 = vst.msk [vmem:[%s7071_s11 + $0xd0] sm:$0xff] %vm1305_vm5, %v3497_v1 }
 0x643   : > { %v3857_v55 = vpop.f32.mrb[28].mxu1 }
 0x644   : > { %v3458_v47 = vadd.f32 %v3857_v55, %v7059_v24  ;;  %v3452_v58 = vpop.f32.mrb[29].mxu1 }
 0x645   : > { %v3453_v52 = vadd.f32 %v7059_v24, %v3452_v58 }
 0x646   : > { %v3500_v34 = vmax.f32 %v3458_v47, 0.0 }
 0x647   : > { %v3499_v36 = vmax.f32 %v3453_v52, 0.0  ;;  %v3860_v6 = vpop.f32.mrb[30].mxu1 }
 0x648   : > { %3532 = vst.msk [vmem:[%s7071_s11 + $0xe8] sm:$0xff] %vm1305_vm5, %v3500_v34  ;;  %v3468_v15 = vadd.f32 %v3860_v6, %v7059_v24  ;;  %v3462_v29 = vpop.f32.mrb[31].mxu1 }
 0x649   : > { %3531 = vst.msk [vmem:[%s7071_s11 + $0xe0] sm:$0xff] %vm1305_vm5, %v3499_v36  ;;  %v3463_v28 = vadd.f32 %v7059_v24, %v3462_v29 }
 0x64a   : > { %v3502_v42 = vmax.f32 %v3468_v15, 0.0 }
 0x64b   : > { %v3501_v40 = vmax.f32 %v3463_v28, 0.0 }
 0x64c   : > { %3534 = vst.msk [vmem:[%s7071_s11 + $0xf8] sm:$0xff] %vm1305_vm5, %v3502_v42 }
 0x64d   : > { %3533 = vst.msk [vmem:[%s7071_s11 + $0xf0] sm:$0xff] %vm1305_vm5, %v3501_v40 }
 0x64e PF: > { %s15_s18 = sadd.s32 1, %s3934_s18  }
 0x64f   : > { %p12_p4 = scmp.ge.s32.totalorder %s15_s18, 4  }
 0x651   :  { %14 = sbr.rel (!%p12_p4) target bundleno = 1 (0x1), region = 70 }

</bundles_post_ra>
